<compile_context>
chip_gen: v5e
topology: v5e:2x2
jax: 0.10.0
libtpu: 0.0.40
codegen_flags: <defaults>
</compile_context>

<pallas_src>
import functools

import jax
import jax.numpy as jnp
import numpy as np
from jax import lax
from jax.experimental import pallas as pl
from jax.experimental.pallas import tpu as pltpu

LN_EPS = 1e-5  # PyTorch nn.LayerNorm default


def _vmem_limit_bytes():
    """Generation-aware scoped-VMEM limit: ~80% of physical, capped at 100 MiB.

    v7x (64 MiB physical/TC) -> ~51 MiB; v5e/v6e (128 MiB) -> 100 MiB.
    """
    phys = 64 * 1024 * 1024
    try:
        info = pltpu.get_tpu_info()
        for name in ("vmem_capacity_bytes", "vmem_size_bytes", "vmem_bytes"):
            v = getattr(info, name, None)
            if v:
                phys = int(v)
                break
    except Exception:
        pass
    return min(int(phys) * 4 // 5, 100 * 1024 * 1024)


_VMEM_LIMIT_BYTES = _vmem_limit_bytes()


def _layernorm(h, w, b):
    # LayerNorm over the feature dim in f32 (matches the fp16-safe subclass).
    mu = jnp.mean(h, axis=-1, keepdims=True)
    var = jnp.mean((h - mu) ** 2, axis=-1, keepdims=True)
    return (h - mu) * lax.rsqrt(var + LN_EPS) * w + b


def resblock_kernel(x_ref,
                    ln1_w_ref, ln1_b_ref,
                    in_wt_ref, in_b_ref, out_wt_ref, out_b_ref,
                    ln2_w_ref, ln2_b_ref,
                    fc_wt_ref, fc_b_ref, proj_wt_ref, proj_b_ref,
                    o_ref, *, n_head):
    x = x_ref[0]                                   # (L, D) f32, one batch elem
    L, D = x.shape
    d_head = D // n_head

    # ----- attention branch: x + out_proj(MHA(ln_1(x))) -----
    h = _layernorm(x, ln1_w_ref[0], ln1_b_ref[0])                     # (L, D)
    # in_wt is pre-transposed (D, 3D) bf16 with 1/sqrt(d_head) folded into the
    # q columns (and the q part of the bias); carry qkv in bf16.
    qkv = (jnp.dot(h.astype(jnp.bfloat16), in_wt_ref[...],
                   preferred_element_type=jnp.float32)
           + in_b_ref[0]).astype(jnp.bfloat16)                        # (L, 3D)

    # Head-major relayout once per q/k/v (O(1) relayouts, not O(n_head)).
    q = qkv[:, 0 * D:1 * D].reshape(L, n_head, d_head).swapaxes(0, 1)  # (H,L,dh)
    k = qkv[:, 1 * D:2 * D].reshape(L, n_head, d_head).swapaxes(0, 1)
    v = qkv[:, 2 * D:3 * D].reshape(L, n_head, d_head).swapaxes(0, 1)

    # Head-batched scores + softmax (f32) + p@v, all on the MXU.
    s = jnp.einsum('hqd,hkd->hqk', q, k,
                   preferred_element_type=jnp.float32)                # (H, L, L)
    s = s - jnp.max(s, axis=-1, keepdims=True)
    p = jnp.exp(s)
    p = p * pl.reciprocal(jnp.sum(p, axis=-1, keepdims=True), approx=True)
    ph = jnp.einsum('hqk,hkd->hqd', p.astype(jnp.bfloat16), v,
                    preferred_element_type=jnp.float32)               # (H, L, dh)

    # Relayout back once and do a single K=D out-projection matmul.
    attn = ph.swapaxes(0, 1).reshape(L, D).astype(jnp.bfloat16)       # (L, D)
    attn_out = jnp.dot(attn, out_wt_ref[...],
                       preferred_element_type=jnp.float32)            # (L, D)
    x = x + attn_out + out_b_ref[0]

    # ----- MLP branch: x + c_proj(QuickGELU(c_fc(ln_2(x)))) -----
    h2 = _layernorm(x, ln2_w_ref[0], ln2_b_ref[0])
    f = (jnp.dot(h2.astype(jnp.bfloat16), fc_wt_ref[...],
                 preferred_element_type=jnp.float32)
         + fc_b_ref[0]).astype(jnp.bfloat16)                          # (L, 4D) bf16
    f = f * jax.nn.sigmoid(1.702 * f)      # QuickGELU in bf16 (EUP; f32 on v5e via upcast)
    m = jnp.dot(f, proj_wt_ref[...],
                preferred_element_type=jnp.float32) + proj_b_ref[0]   # (L, D)
    o_ref[0] = x + m


def residual_attention_block(x_bld, kparams, n_head, single_buffer_weights):
    """One ResidualAttentionBlock. x_bld: (B, L, D) f32; kparams pre-prepared."""
    B, L, D = x_bld.shape

    def weight_spec(a):
        nd = a.ndim
        idx = lambda b, _nd=nd: (0,) * _nd      # constant across the grid
        if single_buffer_weights:
            # Constant index_map -> double buffering buys nothing; halve VMEM.
            return pl.BlockSpec(a.shape, idx, pipeline_mode=pl.Buffered(1))
        return pl.BlockSpec(a.shape, idx)

    in_specs = [pl.BlockSpec((1, L, D), lambda b: (b, 0, 0))]
    in_specs += [weight_spec(p) for p in kparams]

    kernel = functools.partial(resblock_kernel, n_head=n_head)
    return pl.pallas_call(
        kernel,
        out_shape=jax.ShapeDtypeStruct((B, L, D), jnp.float32),
        grid_spec=pltpu.PrefetchScalarGridSpec(
            num_scalar_prefetch=0,
            grid=(B,),
            in_specs=in_specs,
            out_specs=pl.BlockSpec((1, L, D), lambda b: (b, 0, 0)),
        ),
        compiler_params=pltpu.CompilerParams(
            dimension_semantics=("parallel",),
            vmem_limit_bytes=_VMEM_LIMIT_BYTES,
        ),
    )(x_bld, *kparams)


@functools.partial(jax.jit, static_argnums=(2, 3))
def transformer_forward(x_lbd, kernel_layer_params, n_head,
                        single_buffer_weights=True):
    """Transformer.forward. x_lbd: (L, B, D) (PyTorch seq-first)."""
    x = jnp.transpose(x_lbd, (1, 0, 2))     # (B, L, D)
    for p in kernel_layer_params:
        x = residual_attention_block(x, p, n_head, single_buffer_weights)
    return jnp.transpose(x, (1, 0, 2))      # back to (L, B, D)


# ---------------- host-side parameter preparation ----------------
def prepare_layer_params(p, n_head):
    """PyTorch-layout params -> kernel params (transposed, bf16, scale-folded)."""
    (ln1_w, ln1_b, in_w, in_b, out_w, out_b,
     ln2_w, ln2_b, fc_w, fc_b, proj_w, proj_b) = p
    D = out_w.shape[0]
    d_head = D // n_head
    scale = 1.0 / float(d_head) ** 0.5
    # Fold 1/sqrt(d_head) into the q rows of in_proj weight & bias.
    row_scale = jnp.concatenate([jnp.full((D,), scale, jnp.float32),
                                 jnp.ones((2 * D,), jnp.float32)])
    in_w_s = in_w * row_scale[:, None]          # (3D, D)
    in_b_s = in_b * row_scale[None, :]          # (1, 3D)
    return (ln1_w, ln1_b,
            in_w_s.T.astype(jnp.bfloat16), in_b_s,           # (D, 3D)
            out_w.T.astype(jnp.bfloat16), out_b,              # (D, D)
            ln2_w, ln2_b,
            fc_w.T.astype(jnp.bfloat16), fc_b,                # (D, 4D)
            proj_w.T.astype(jnp.bfloat16), proj_b)            # (4D, D)


# ---------------- deterministic parameter init (PyTorch layout) ----------------
def init_layer_params(key, D):
    ks = jax.random.split(key, 4)
    scale = 0.02
    ln1_w = jnp.ones((1, D), jnp.float32)
    ln1_b = jnp.zeros((1, D), jnp.float32)
    in_w = scale * jax.random.normal(ks[0], (3 * D, D), jnp.float32)
    in_b = jnp.zeros((1, 3 * D), jnp.float32)
    out_w = scale * jax.random.normal(ks[1], (D, D), jnp.float32)
    out_b = jnp.zeros((1, D), jnp.float32)
    ln2_w = jnp.ones((1, D), jnp.float32)
    ln2_b = jnp.zeros((1, D), jnp.float32)
    fc_w = scale * jax.random.normal(ks[2], (4 * D, D), jnp.float32)
    fc_b = jnp.zeros((1, 4 * D), jnp.float32)
    proj_w = scale * jax.random.normal(ks[3], (D, 4 * D), jnp.float32)
    proj_b = jnp.zeros((1, D), jnp.float32)
    return (ln1_w, ln1_b, in_w, in_b, out_w, out_b,
            ln2_w, ln2_b, fc_w, fc_b, proj_w, proj_b)


# ---------------- pure-JAX f32 reference for a sanity check ----------------
def reference_forward(x_lbd, layer_params, n_head):
    x = jnp.transpose(x_lbd, (1, 0, 2))  # (B, L, D)
    B, L, D = x.shape
    dh = D // n_head
    for (ln1_w, ln1_b, in_w, in_b, out_w, out_b,
         ln2_w, ln2_b, fc_w, fc_b, proj_w, proj_b) in layer_params:
        h = _layernorm(x, ln1_w[0], ln1_b[0])
        qkv = h @ in_w.T + in_b[0]
        q, k, v = jnp.split(qkv, 3, axis=-1)
        q = q.reshape(B, L, n_head, dh).transpose(0, 2, 1, 3) / jnp.sqrt(dh)
        k = k.reshape(B, L, n_head, dh).transpose(0, 2, 1, 3)
        v = v.reshape(B, L, n_head, dh).transpose(0, 2, 1, 3)
        s = jnp.einsum('bhqd,bhkd->bhqk', q, k)
        p = jax.nn.softmax(s, axis=-1)
        a = jnp.einsum('bhqk,bhkd->bhqd', p, v).transpose(0, 2, 1, 3).reshape(B, L, D)
        x = x + (a @ out_w.T + out_b[0])
        h2 = _layernorm(x, ln2_w[0], ln2_b[0])
        f = h2 @ fc_w.T + fc_b[0]
        f = f * jax.nn.sigmoid(1.702 * f)
        x = x + (f @ proj_w.T + proj_b[0])
    return jnp.transpose(x, (1, 0, 2))


if __name__ == "__main__":
    # Small, lane-aligned shapes implied by Transformer(width, layers, heads),
    # seq-first input: (L, B, D) with D a multiple of 128.
    L, B, D, H, N_LAYERS = 8, 2, 128, 4, 2

    key = jax.random.PRNGKey(0)
    k_x, k_p = jax.random.split(key)
    x = jax.random.normal(k_x, (L, B, D), jnp.float32)   # (seq, batch, width)

    layer_keys = jax.random.split(k_p, N_LAYERS)
    layer_params = [init_layer_params(k, D) for k in layer_keys]
    kernel_params = [prepare_layer_params(p, H) for p in layer_params]

    try:
        out = jax.block_until_ready(
            transformer_forward(x, kernel_params, H, True))
    except Exception:
        # Fallback if pipeline_mode=pl.Buffered(1) is unsupported in this
        # jax build: identical kernel with default (double-buffered) weights.
        out = jax.block_until_ready(
            transformer_forward(x, kernel_params, H, False))

    ref = reference_forward(x, layer_params, H)
    # bf16 MXU matmuls / bf16 intermediates + approx reciprocal -> loosened
    # tolerances vs the f32 reference.
    np.testing.assert_allclose(np.asarray(out), np.asarray(ref),
                               rtol=2e-2, atol=2e-2)

    print("KERNEL_OK")
</pallas_src>

<mosaic_0001>
module attributes {stable_mosaic.version = 11 : i64} {
  func.func @resblock_kernel(%arg0: i32, %arg1: memref<1x8x128xf32, #tpu.memory_space<vmem>>, %arg2: memref<1x128xf32, #tpu.memory_space<vmem>>, %arg3: memref<1x128xf32, #tpu.memory_space<vmem>>, %arg4: memref<128x384xbf16, #tpu.memory_space<vmem>>, %arg5: memref<1x384xf32, #tpu.memory_space<vmem>>, %arg6: memref<128x128xbf16, #tpu.memory_space<vmem>>, %arg7: memref<1x128xf32, #tpu.memory_space<vmem>>, %arg8: memref<1x128xf32, #tpu.memory_space<vmem>>, %arg9: memref<1x128xf32, #tpu.memory_space<vmem>>, %arg10: memref<128x512xbf16, #tpu.memory_space<vmem>>, %arg11: memref<1x512xf32, #tpu.memory_space<vmem>>, %arg12: memref<512x128xbf16, #tpu.memory_space<vmem>>, %arg13: memref<1x128xf32, #tpu.memory_space<vmem>>, %arg14: memref<1x8x128xf32, #tpu.memory_space<vmem>>) attributes {dimension_semantics = [#tpu.dimension_semantics<parallel>], iteration_bounds = array<i64: 2>, scalar_prefetch = 0 : i64, scratch_operands = 0 : i64, tpu.core_type = #tpu.core_type<tc>, window_params = [{transform_indices = @transform_0, window_bounds = array<i64: 1, 8, 128>}, {pipeline_mode = #tpu.pipeline_mode<synchronous>, transform_indices = @transform_1, window_bounds = array<i64: 1, 128>}, {pipeline_mode = #tpu.pipeline_mode<synchronous>, transform_indices = @transform_2, window_bounds = array<i64: 1, 128>}, {pipeline_mode = #tpu.pipeline_mode<synchronous>, transform_indices = @transform_3, window_bounds = array<i64: 128, 384>}, {pipeline_mode = #tpu.pipeline_mode<synchronous>, transform_indices = @transform_4, window_bounds = array<i64: 1, 384>}, {pipeline_mode = #tpu.pipeline_mode<synchronous>, transform_indices = @transform_5, window_bounds = array<i64: 128, 128>}, {pipeline_mode = #tpu.pipeline_mode<synchronous>, transform_indices = @transform_6, window_bounds = array<i64: 1, 128>}, {pipeline_mode = #tpu.pipeline_mode<synchronous>, transform_indices = @transform_7, window_bounds = array<i64: 1, 128>}, {pipeline_mode = #tpu.pipeline_mode<synchronous>, transform_indices = @transform_8, window_bounds = array<i64: 1, 128>}, {pipeline_mode = #tpu.pipeline_mode<synchronous>, transform_indices = @transform_9, window_bounds = array<i64: 128, 512>}, {pipeline_mode = #tpu.pipeline_mode<synchronous>, transform_indices = @transform_10, window_bounds = array<i64: 1, 512>}, {pipeline_mode = #tpu.pipeline_mode<synchronous>, transform_indices = @transform_11, window_bounds = array<i64: 512, 128>}, {pipeline_mode = #tpu.pipeline_mode<synchronous>, transform_indices = @transform_12, window_bounds = array<i64: 1, 128>}, {transform_indices = @transform_13, window_bounds = array<i64: 1, 8, 128>}]} {
    %c0 = arith.constant 0 : index
    %c0_0 = arith.constant 0 : index
    %c0_1 = arith.constant 0 : index
    %0 = vector.load %arg1[%c0, %c0_0, %c0_1] : memref<1x8x128xf32, #tpu.memory_space<vmem>>, vector<1x8x128xf32>
    %1 = vector.shape_cast %0 : vector<1x8x128xf32> to vector<8x128xf32>
    %c0_2 = arith.constant 0 : index
    %c0_3 = arith.constant 0 : index
    %2 = vector.load %arg2[%c0_2, %c0_3] : memref<1x128xf32, #tpu.memory_space<vmem>>, vector<1x128xf32>
    %3 = vector.shape_cast %2 : vector<1x128xf32> to vector<128xf32>
    %c0_4 = arith.constant 0 : index
    %c0_5 = arith.constant 0 : index
    %4 = vector.load %arg3[%c0_4, %c0_5] : memref<1x128xf32, #tpu.memory_space<vmem>>, vector<1x128xf32>
    %5 = vector.shape_cast %4 : vector<1x128xf32> to vector<128xf32>
    %cst = arith.constant dense<0.000000e+00> : vector<8xf32>
    %6 = vector.multi_reduction <add>, %1, %cst [1] : vector<8x128xf32> to vector<8xf32>
    %7 = vector.shape_cast %6 : vector<8xf32> to vector<8x1xf32>
    %cst_6 = arith.constant 1.280000e+02 : f32
    %8 = vector.broadcast %cst_6 : f32 to vector<8x1xf32>
    %9 = arith.divf %7, %8 : vector<8x1xf32>
    %10 = vector.broadcast %9 : vector<8x1xf32> to vector<8x128xf32>
    %11 = arith.subf %1, %10 : vector<8x128xf32>
    %12 = arith.mulf %11, %11 : vector<8x128xf32>
    %cst_7 = arith.constant dense<0.000000e+00> : vector<8xf32>
    %13 = vector.multi_reduction <add>, %12, %cst_7 [1] : vector<8x128xf32> to vector<8xf32>
    %14 = vector.shape_cast %13 : vector<8xf32> to vector<8x1xf32>
    %cst_8 = arith.constant 1.280000e+02 : f32
    %15 = vector.broadcast %cst_8 : f32 to vector<8x1xf32>
    %16 = arith.divf %14, %15 : vector<8x1xf32>
    %17 = vector.broadcast %9 : vector<8x1xf32> to vector<8x128xf32>
    %18 = arith.subf %1, %17 : vector<8x128xf32>
    %cst_9 = arith.constant 9.99999974E-6 : f32
    %19 = vector.broadcast %cst_9 : f32 to vector<8x1xf32>
    %20 = arith.addf %16, %19 : vector<8x1xf32>
    %21 = math.rsqrt %20 : vector<8x1xf32>
    %22 = vector.broadcast %21 : vector<8x1xf32> to vector<8x128xf32>
    %23 = arith.mulf %18, %22 : vector<8x128xf32>
    %24 = vector.shape_cast %3 : vector<128xf32> to vector<1x128xf32>
    %25 = vector.broadcast %24 : vector<1x128xf32> to vector<8x128xf32>
    %26 = arith.mulf %23, %25 : vector<8x128xf32>
    %27 = vector.shape_cast %5 : vector<128xf32> to vector<1x128xf32>
    %28 = vector.broadcast %27 : vector<1x128xf32> to vector<8x128xf32>
    %29 = arith.addf %26, %28 : vector<8x128xf32>
    %30 = arith.truncf %29 : vector<8x128xf32> to vector<8x128xbf16>
    %c0_10 = arith.constant 0 : index
    %c0_11 = arith.constant 0 : index
    %31 = vector.load %arg4[%c0_10, %c0_11] : memref<128x384xbf16, #tpu.memory_space<vmem>>, vector<128x384xbf16>
    %cst_12 = arith.constant dense<0.000000e+00> : vector<8x384xf32>
    %32 = tpu.matmul %30, %31, %cst_12 {dimension_numbers = #tpu.dot_dimension_numbers<[1], [0], [0], [1], [0, 0, 1, 1], [], []>} : vector<8x128xbf16>, vector<128x384xbf16>, vector<8x384xf32> -> vector<8x384xf32>
    %c0_13 = arith.constant 0 : index
    %c0_14 = arith.constant 0 : index
    %33 = vector.load %arg5[%c0_13, %c0_14] : memref<1x384xf32, #tpu.memory_space<vmem>>, vector<1x384xf32>
    %34 = vector.shape_cast %33 : vector<1x384xf32> to vector<384xf32>
    %35 = vector.shape_cast %34 : vector<384xf32> to vector<1x384xf32>
    %36 = vector.broadcast %35 : vector<1x384xf32> to vector<8x384xf32>
    %37 = arith.addf %32, %36 : vector<8x384xf32>
    %38 = arith.truncf %37 : vector<8x384xf32> to vector<8x384xbf16>
    %39 = vector.extract_strided_slice %38 {offsets = [0, 0], sizes = [8, 128], strides = [1, 1]} : vector<8x384xbf16> to vector<8x128xbf16>
    %40 = vector.shape_cast %39 : vector<8x128xbf16> to vector<8x4x32xbf16>
    %41 = tpu.transpose %40, [1, 0, 2] : vector<8x4x32xbf16> -> vector<4x8x32xbf16>
    %42 = vector.extract_strided_slice %38 {offsets = [0, 128], sizes = [8, 128], strides = [1, 1]} : vector<8x384xbf16> to vector<8x128xbf16>
    %43 = vector.shape_cast %42 : vector<8x128xbf16> to vector<8x4x32xbf16>
    %44 = tpu.transpose %43, [1, 0, 2] : vector<8x4x32xbf16> -> vector<4x8x32xbf16>
    %45 = vector.extract_strided_slice %38 {offsets = [0, 256], sizes = [8, 128], strides = [1, 1]} : vector<8x384xbf16> to vector<8x128xbf16>
    %46 = vector.shape_cast %45 : vector<8x128xbf16> to vector<8x4x32xbf16>
    %47 = tpu.transpose %46, [1, 0, 2] : vector<8x4x32xbf16> -> vector<4x8x32xbf16>
    "tpu.trace_start"() <{level = 10 : i32, message = "hqd,hkd->hqk"}> : () -> ()
    %cst_15 = arith.constant dense<0.000000e+00> : vector<4x8x8xf32>
    %48 = tpu.matmul %41, %44, %cst_15 {dimension_numbers = #tpu.dot_dimension_numbers<[2], [2], [1], [1], [0, 0, 0, 1, 1, 1], [0], [0]>} : vector<4x8x32xbf16>, vector<4x8x32xbf16>, vector<4x8x8xf32> -> vector<4x8x8xf32>
    "tpu.trace_stop"() : () -> ()
    %cst_16 = arith.constant dense<0xFF800000> : vector<4x8xf32>
    %49 = vector.multi_reduction <maximumf>, %48, %cst_16 [2] : vector<4x8x8xf32> to vector<4x8xf32>
    %50 = vector.shape_cast %49 : vector<4x8xf32> to vector<4x8x1xf32>
    %51 = vector.broadcast %50 : vector<4x8x1xf32> to vector<4x8x8xf32>
    %52 = arith.subf %48, %51 : vector<4x8x8xf32>
    %53 = math.exp %52 : vector<4x8x8xf32>
    %cst_17 = arith.constant dense<0.000000e+00> : vector<4x8xf32>
    %54 = vector.multi_reduction <add>, %53, %cst_17 [2] : vector<4x8x8xf32> to vector<4x8xf32>
    %55 = vector.shape_cast %54 : vector<4x8xf32> to vector<4x8x1xf32>
    %56 = tpu.reciprocal %55 {approx = true} : vector<4x8x1xf32> -> vector<4x8x1xf32>
    %57 = vector.broadcast %56 : vector<4x8x1xf32> to vector<4x8x8xf32>
    %58 = arith.mulf %53, %57 : vector<4x8x8xf32>
    %59 = arith.truncf %58 : vector<4x8x8xf32> to vector<4x8x8xbf16>
    "tpu.trace_start"() <{level = 10 : i32, message = "hqk,hkd->hqd"}> : () -> ()
    %cst_18 = arith.constant dense<0.000000e+00> : vector<4x8x32xf32>
    %60 = tpu.matmul %59, %47, %cst_18 {dimension_numbers = #tpu.dot_dimension_numbers<[2], [1], [1], [2], [0, 0, 0, 1, 1, 2], [0], [0]>} : vector<4x8x8xbf16>, vector<4x8x32xbf16>, vector<4x8x32xf32> -> vector<4x8x32xf32>
    "tpu.trace_stop"() : () -> ()
    %61 = tpu.transpose %60, [1, 0, 2] : vector<4x8x32xf32> -> vector<8x4x32xf32>
    %62 = vector.shape_cast %61 : vector<8x4x32xf32> to vector<8x128xf32>
    %63 = arith.truncf %62 : vector<8x128xf32> to vector<8x128xbf16>
    %c0_19 = arith.constant 0 : index
    %c0_20 = arith.constant 0 : index
    %64 = vector.load %arg6[%c0_19, %c0_20] : memref<128x128xbf16, #tpu.memory_space<vmem>>, vector<128x128xbf16>
    %cst_21 = arith.constant dense<0.000000e+00> : vector<8x128xf32>
    %65 = tpu.matmul %63, %64, %cst_21 {dimension_numbers = #tpu.dot_dimension_numbers<[1], [0], [0], [1], [0, 0, 1, 1], [], []>} : vector<8x128xbf16>, vector<128x128xbf16>, vector<8x128xf32> -> vector<8x128xf32>
    %66 = arith.addf %1, %65 : vector<8x128xf32>
    %c0_22 = arith.constant 0 : index
    %c0_23 = arith.constant 0 : index
    %67 = vector.load %arg7[%c0_22, %c0_23] : memref<1x128xf32, #tpu.memory_space<vmem>>, vector<1x128xf32>
    %68 = vector.shape_cast %67 : vector<1x128xf32> to vector<128xf32>
    %69 = vector.shape_cast %68 : vector<128xf32> to vector<1x128xf32>
    %70 = vector.broadcast %69 : vector<1x128xf32> to vector<8x128xf32>
    %71 = arith.addf %66, %70 : vector<8x128xf32>
    %c0_24 = arith.constant 0 : index
    %c0_25 = arith.constant 0 : index
    %72 = vector.load %arg8[%c0_24, %c0_25] : memref<1x128xf32, #tpu.memory_space<vmem>>, vector<1x128xf32>
    %73 = vector.shape_cast %72 : vector<1x128xf32> to vector<128xf32>
    %c0_26 = arith.constant 0 : index
    %c0_27 = arith.constant 0 : index
    %74 = vector.load %arg9[%c0_26, %c0_27] : memref<1x128xf32, #tpu.memory_space<vmem>>, vector<1x128xf32>
    %75 = vector.shape_cast %74 : vector<1x128xf32> to vector<128xf32>
    %cst_28 = arith.constant dense<0.000000e+00> : vector<8xf32>
    %76 = vector.multi_reduction <add>, %71, %cst_28 [1] : vector<8x128xf32> to vector<8xf32>
    %77 = vector.shape_cast %76 : vector<8xf32> to vector<8x1xf32>
    %cst_29 = arith.constant 1.280000e+02 : f32
    %78 = vector.broadcast %cst_29 : f32 to vector<8x1xf32>
    %79 = arith.divf %77, %78 : vector<8x1xf32>
    %80 = vector.broadcast %79 : vector<8x1xf32> to vector<8x128xf32>
    %81 = arith.subf %71, %80 : vector<8x128xf32>
    %82 = arith.mulf %81, %81 : vector<8x128xf32>
    %cst_30 = arith.constant dense<0.000000e+00> : vector<8xf32>
    %83 = vector.multi_reduction <add>, %82, %cst_30 [1] : vector<8x128xf32> to vector<8xf32>
    %84 = vector.shape_cast %83 : vector<8xf32> to vector<8x1xf32>
    %cst_31 = arith.constant 1.280000e+02 : f32
    %85 = vector.broadcast %cst_31 : f32 to vector<8x1xf32>
    %86 = arith.divf %84, %85 : vector<8x1xf32>
    %87 = vector.broadcast %79 : vector<8x1xf32> to vector<8x128xf32>
    %88 = arith.subf %71, %87 : vector<8x128xf32>
    %cst_32 = arith.constant 9.99999974E-6 : f32
    %89 = vector.broadcast %cst_32 : f32 to vector<8x1xf32>
    %90 = arith.addf %86, %89 : vector<8x1xf32>
    %91 = math.rsqrt %90 : vector<8x1xf32>
    %92 = vector.broadcast %91 : vector<8x1xf32> to vector<8x128xf32>
    %93 = arith.mulf %88, %92 : vector<8x128xf32>
    %94 = vector.shape_cast %73 : vector<128xf32> to vector<1x128xf32>
    %95 = vector.broadcast %94 : vector<1x128xf32> to vector<8x128xf32>
    %96 = arith.mulf %93, %95 : vector<8x128xf32>
    %97 = vector.shape_cast %75 : vector<128xf32> to vector<1x128xf32>
    %98 = vector.broadcast %97 : vector<1x128xf32> to vector<8x128xf32>
    %99 = arith.addf %96, %98 : vector<8x128xf32>
    %100 = arith.truncf %99 : vector<8x128xf32> to vector<8x128xbf16>
    %c0_33 = arith.constant 0 : index
    %c0_34 = arith.constant 0 : index
    %101 = vector.load %arg10[%c0_33, %c0_34] : memref<128x512xbf16, #tpu.memory_space<vmem>>, vector<128x512xbf16>
    %cst_35 = arith.constant dense<0.000000e+00> : vector<8x512xf32>
    %102 = tpu.matmul %100, %101, %cst_35 {dimension_numbers = #tpu.dot_dimension_numbers<[1], [0], [0], [1], [0, 0, 1, 1], [], []>} : vector<8x128xbf16>, vector<128x512xbf16>, vector<8x512xf32> -> vector<8x512xf32>
    %c0_36 = arith.constant 0 : index
    %c0_37 = arith.constant 0 : index
    %103 = vector.load %arg11[%c0_36, %c0_37] : memref<1x512xf32, #tpu.memory_space<vmem>>, vector<1x512xf32>
    %104 = vector.shape_cast %103 : vector<1x512xf32> to vector<512xf32>
    %105 = vector.shape_cast %104 : vector<512xf32> to vector<1x512xf32>
    %106 = vector.broadcast %105 : vector<1x512xf32> to vector<8x512xf32>
    %107 = arith.addf %102, %106 : vector<8x512xf32>
    %108 = arith.truncf %107 : vector<8x512xf32> to vector<8x512xbf16>
    %cst_38 = arith.constant 1.703130e+00 : bf16
    %109 = vector.broadcast %cst_38 : bf16 to vector<8x512xbf16>
    %110 = arith.mulf %109, %108 : vector<8x512xbf16>
    %111 = arith.negf %110 : vector<8x512xbf16>
    %112 = math.exp %111 : vector<8x512xbf16>
    %cst_39 = arith.constant 1.000000e+00 : bf16
    %113 = vector.broadcast %cst_39 : bf16 to vector<8x512xbf16>
    %114 = arith.addf %113, %112 : vector<8x512xbf16>
    %115 = arith.divf %113, %114 : vector<8x512xbf16>
    %116 = arith.mulf %108, %115 : vector<8x512xbf16>
    %c0_40 = arith.constant 0 : index
    %c0_41 = arith.constant 0 : index
    %117 = vector.load %arg12[%c0_40, %c0_41] : memref<512x128xbf16, #tpu.memory_space<vmem>>, vector<512x128xbf16>
    %cst_42 = arith.constant dense<0.000000e+00> : vector<8x128xf32>
    %118 = tpu.matmul %116, %117, %cst_42 {dimension_numbers = #tpu.dot_dimension_numbers<[1], [0], [0], [1], [0, 0, 1, 1], [], []>} : vector<8x512xbf16>, vector<512x128xbf16>, vector<8x128xf32> -> vector<8x128xf32>
    %c0_43 = arith.constant 0 : index
    %c0_44 = arith.constant 0 : index
    %119 = vector.load %arg13[%c0_43, %c0_44] : memref<1x128xf32, #tpu.memory_space<vmem>>, vector<1x128xf32>
    %120 = vector.shape_cast %119 : vector<1x128xf32> to vector<128xf32>
    %121 = vector.shape_cast %120 : vector<128xf32> to vector<1x128xf32>
    %122 = vector.broadcast %121 : vector<1x128xf32> to vector<8x128xf32>
    %123 = arith.addf %118, %122 : vector<8x128xf32>
    %124 = arith.addf %71, %123 : vector<8x128xf32>
    %c0_45 = arith.constant 0 : index
    %c0_46 = arith.constant 0 : index
    %c0_47 = arith.constant 0 : index
    %125 = vector.load %arg14[%c0_45, %c0_46, %c0_47] : memref<1x8x128xf32, #tpu.memory_space<vmem>>, vector<1x8x128xf32>
    %126 = vector.shape_cast %125 : vector<1x8x128xf32> to vector<8x128xf32>
    %127 = vector.shape_cast %124 : vector<8x128xf32> to vector<1x8x128xf32>
    tpu.vector_store %arg14[%c0_45, %c0_46, %c0_47], %127 {strides = array<i32>} : memref<1x8x128xf32, #tpu.memory_space<vmem>>, vector<1x8x128xf32>,
    return
  }
  func.func @transform_0(%arg0: i32) -> (i32, i32, i32) {
    %c0_i32 = arith.constant 0 : i32
    %c0_i32_0 = arith.constant 0 : i32
    %c0_i32_1 = arith.constant 0 : i32
    return %arg0, %c0_i32, %c0_i32_0 : i32, i32, i32
  }
  func.func @transform_1(%arg0: i32) -> (i32, i32) {
    %c0_i32 = arith.constant 0 : i32
    %c0_i32_0 = arith.constant 0 : i32
    %c0_i32_1 = arith.constant 0 : i32
    return %c0_i32, %c0_i32_0 : i32, i32
  }
  func.func @transform_2(%arg0: i32) -> (i32, i32) {
    %c0_i32 = arith.constant 0 : i32
    %c0_i32_0 = arith.constant 0 : i32
    %c0_i32_1 = arith.constant 0 : i32
    return %c0_i32, %c0_i32_0 : i32, i32
  }
  func.func @transform_3(%arg0: i32) -> (i32, i32) {
    %c0_i32 = arith.constant 0 : i32
    %c0_i32_0 = arith.constant 0 : i32
    %c0_i32_1 = arith.constant 0 : i32
    return %c0_i32, %c0_i32_0 : i32, i32
  }
  func.func @transform_4(%arg0: i32) -> (i32, i32) {
    %c0_i32 = arith.constant 0 : i32
    %c0_i32_0 = arith.constant 0 : i32
    %c0_i32_1 = arith.constant 0 : i32
    return %c0_i32, %c0_i32_0 : i32, i32
  }
  func.func @transform_5(%arg0: i32) -> (i32, i32) {
    %c0_i32 = arith.constant 0 : i32
    %c0_i32_0 = arith.constant 0 : i32
    %c0_i32_1 = arith.constant 0 : i32
    return %c0_i32, %c0_i32_0 : i32, i32
  }
  func.func @transform_6(%arg0: i32) -> (i32, i32) {
    %c0_i32 = arith.constant 0 : i32
    %c0_i32_0 = arith.constant 0 : i32
    %c0_i32_1 = arith.constant 0 : i32
    return %c0_i32, %c0_i32_0 : i32, i32
  }
  func.func @transform_7(%arg0: i32) -> (i32, i32) {
    %c0_i32 = arith.constant 0 : i32
    %c0_i32_0 = arith.constant 0 : i32
    %c0_i32_1 = arith.constant 0 : i32
    return %c0_i32, %c0_i32_0 : i32, i32
  }
  func.func @transform_8(%arg0: i32) -> (i32, i32) {
    %c0_i32 = arith.constant 0 : i32
    %c0_i32_0 = arith.constant 0 : i32
    %c0_i32_1 = arith.constant 0 : i32
    return %c0_i32, %c0_i32_0 : i32, i32
  }
  func.func @transform_9(%arg0: i32) -> (i32, i32) {
    %c0_i32 = arith.constant 0 : i32
    %c0_i32_0 = arith.constant 0 : i32
    %c0_i32_1 = arith.constant 0 : i32
    return %c0_i32, %c0_i32_0 : i32, i32
  }
  func.func @transform_10(%arg0: i32) -> (i32, i32) {
    %c0_i32 = arith.constant 0 : i32
    %c0_i32_0 = arith.constant 0 : i32
    %c0_i32_1 = arith.constant 0 : i32
    return %c0_i32, %c0_i32_0 : i32, i32
  }
  func.func @transform_11(%arg0: i32) -> (i32, i32) {
    %c0_i32 = arith.constant 0 : i32
    %c0_i32_0 = arith.constant 0 : i32
    %c0_i32_1 = arith.constant 0 : i32
    return %c0_i32, %c0_i32_0 : i32, i32
  }
  func.func @transform_12(%arg0: i32) -> (i32, i32) {
    %c0_i32 = arith.constant 0 : i32
    %c0_i32_0 = arith.constant 0 : i32
    %c0_i32_1 = arith.constant 0 : i32
    return %c0_i32, %c0_i32_0 : i32, i32
  }
  func.func @transform_13(%arg0: i32) -> (i32, i32, i32) {
    %c0_i32 = arith.constant 0 : i32
    %c0_i32_0 = arith.constant 0 : i32
    %c0_i32_1 = arith.constant 0 : i32
    return %arg0, %c0_i32, %c0_i32_0 : i32, i32, i32
  }
}

module attributes {stable_mosaic.version = 11 : i64} {
  func.func @resblock_kernel(%arg0: i32, %arg1: memref<1x8x128xf32, #tpu.memory_space<vmem>>, %arg2: memref<1x128xf32, #tpu.memory_space<vmem>>, %arg3: memref<1x128xf32, #tpu.memory_space<vmem>>, %arg4: memref<128x384xbf16, #tpu.memory_space<vmem>>, %arg5: memref<1x384xf32, #tpu.memory_space<vmem>>, %arg6: memref<128x128xbf16, #tpu.memory_space<vmem>>, %arg7: memref<1x128xf32, #tpu.memory_space<vmem>>, %arg8: memref<1x128xf32, #tpu.memory_space<vmem>>, %arg9: memref<1x128xf32, #tpu.memory_space<vmem>>, %arg10: memref<128x512xbf16, #tpu.memory_space<vmem>>, %arg11: memref<1x512xf32, #tpu.memory_space<vmem>>, %arg12: memref<512x128xbf16, #tpu.memory_space<vmem>>, %arg13: memref<1x128xf32, #tpu.memory_space<vmem>>, %arg14: memref<1x8x128xf32, #tpu.memory_space<vmem>>) attributes {dimension_semantics = [#tpu.dimension_semantics<parallel>], iteration_bounds = array<i64: 2>, scalar_prefetch = 0 : i64, scratch_operands = 0 : i64, tpu.core_type = #tpu.core_type<tc>, window_params = [{transform_indices = @transform_0, window_bounds = array<i64: 1, 8, 128>}, {pipeline_mode = #tpu.pipeline_mode<synchronous>, transform_indices = @transform_1, window_bounds = array<i64: 1, 128>}, {pipeline_mode = #tpu.pipeline_mode<synchronous>, transform_indices = @transform_2, window_bounds = array<i64: 1, 128>}, {pipeline_mode = #tpu.pipeline_mode<synchronous>, transform_indices = @transform_3, window_bounds = array<i64: 128, 384>}, {pipeline_mode = #tpu.pipeline_mode<synchronous>, transform_indices = @transform_4, window_bounds = array<i64: 1, 384>}, {pipeline_mode = #tpu.pipeline_mode<synchronous>, transform_indices = @transform_5, window_bounds = array<i64: 128, 128>}, {pipeline_mode = #tpu.pipeline_mode<synchronous>, transform_indices = @transform_6, window_bounds = array<i64: 1, 128>}, {pipeline_mode = #tpu.pipeline_mode<synchronous>, transform_indices = @transform_7, window_bounds = array<i64: 1, 128>}, {pipeline_mode = #tpu.pipeline_mode<synchronous>, transform_indices = @transform_8, window_bounds = array<i64: 1, 128>}, {pipeline_mode = #tpu.pipeline_mode<synchronous>, transform_indices = @transform_9, window_bounds = array<i64: 128, 512>}, {pipeline_mode = #tpu.pipeline_mode<synchronous>, transform_indices = @transform_10, window_bounds = array<i64: 1, 512>}, {pipeline_mode = #tpu.pipeline_mode<synchronous>, transform_indices = @transform_11, window_bounds = array<i64: 512, 128>}, {pipeline_mode = #tpu.pipeline_mode<synchronous>, transform_indices = @transform_12, window_bounds = array<i64: 1, 128>}, {transform_indices = @transform_13, window_bounds = array<i64: 1, 8, 128>}]} {
    %c0 = arith.constant 0 : index
    %c0_0 = arith.constant 0 : index
    %c0_1 = arith.constant 0 : index
    %0 = vector.load %arg1[%c0, %c0_0, %c0_1] : memref<1x8x128xf32, #tpu.memory_space<vmem>>, vector<1x8x128xf32>
    %1 = vector.shape_cast %0 : vector<1x8x128xf32> to vector<8x128xf32>
    %c0_2 = arith.constant 0 : index
    %c0_3 = arith.constant 0 : index
    %2 = vector.load %arg2[%c0_2, %c0_3] : memref<1x128xf32, #tpu.memory_space<vmem>>, vector<1x128xf32>
    %3 = vector.shape_cast %2 : vector<1x128xf32> to vector<128xf32>
    %c0_4 = arith.constant 0 : index
    %c0_5 = arith.constant 0 : index
    %4 = vector.load %arg3[%c0_4, %c0_5] : memref<1x128xf32, #tpu.memory_space<vmem>>, vector<1x128xf32>
    %5 = vector.shape_cast %4 : vector<1x128xf32> to vector<128xf32>
    %cst = arith.constant dense<0.000000e+00> : vector<8xf32>
    %6 = vector.multi_reduction <add>, %1, %cst [1] : vector<8x128xf32> to vector<8xf32>
    %7 = vector.shape_cast %6 : vector<8xf32> to vector<8x1xf32>
    %cst_6 = arith.constant 1.280000e+02 : f32
    %8 = vector.broadcast %cst_6 : f32 to vector<8x1xf32>
    %9 = arith.divf %7, %8 : vector<8x1xf32>
    %10 = vector.broadcast %9 : vector<8x1xf32> to vector<8x128xf32>
    %11 = arith.subf %1, %10 : vector<8x128xf32>
    %12 = arith.mulf %11, %11 : vector<8x128xf32>
    %cst_7 = arith.constant dense<0.000000e+00> : vector<8xf32>
    %13 = vector.multi_reduction <add>, %12, %cst_7 [1] : vector<8x128xf32> to vector<8xf32>
    %14 = vector.shape_cast %13 : vector<8xf32> to vector<8x1xf32>
    %cst_8 = arith.constant 1.280000e+02 : f32
    %15 = vector.broadcast %cst_8 : f32 to vector<8x1xf32>
    %16 = arith.divf %14, %15 : vector<8x1xf32>
    %17 = vector.broadcast %9 : vector<8x1xf32> to vector<8x128xf32>
    %18 = arith.subf %1, %17 : vector<8x128xf32>
    %cst_9 = arith.constant 9.99999974E-6 : f32
    %19 = vector.broadcast %cst_9 : f32 to vector<8x1xf32>
    %20 = arith.addf %16, %19 : vector<8x1xf32>
    %21 = math.rsqrt %20 : vector<8x1xf32>
    %22 = vector.broadcast %21 : vector<8x1xf32> to vector<8x128xf32>
    %23 = arith.mulf %18, %22 : vector<8x128xf32>
    %24 = vector.shape_cast %3 : vector<128xf32> to vector<1x128xf32>
    %25 = vector.broadcast %24 : vector<1x128xf32> to vector<8x128xf32>
    %26 = arith.mulf %23, %25 : vector<8x128xf32>
    %27 = vector.shape_cast %5 : vector<128xf32> to vector<1x128xf32>
    %28 = vector.broadcast %27 : vector<1x128xf32> to vector<8x128xf32>
    %29 = arith.addf %26, %28 : vector<8x128xf32>
    %30 = arith.truncf %29 : vector<8x128xf32> to vector<8x128xbf16>
    %c0_10 = arith.constant 0 : index
    %c0_11 = arith.constant 0 : index
    %31 = vector.load %arg4[%c0_10, %c0_11] : memref<128x384xbf16, #tpu.memory_space<vmem>>, vector<128x384xbf16>
    %cst_12 = arith.constant dense<0.000000e+00> : vector<8x384xf32>
    %32 = tpu.matmul %30, %31, %cst_12 {dimension_numbers = #tpu.dot_dimension_numbers<[1], [0], [0], [1], [0, 0, 1, 1], [], []>} : vector<8x128xbf16>, vector<128x384xbf16>, vector<8x384xf32> -> vector<8x384xf32>
    %c0_13 = arith.constant 0 : index
    %c0_14 = arith.constant 0 : index
    %33 = vector.load %arg5[%c0_13, %c0_14] : memref<1x384xf32, #tpu.memory_space<vmem>>, vector<1x384xf32>
    %34 = vector.shape_cast %33 : vector<1x384xf32> to vector<384xf32>
    %35 = vector.shape_cast %34 : vector<384xf32> to vector<1x384xf32>
    %36 = vector.broadcast %35 : vector<1x384xf32> to vector<8x384xf32>
    %37 = arith.addf %32, %36 : vector<8x384xf32>
    %38 = arith.truncf %37 : vector<8x384xf32> to vector<8x384xbf16>
    %39 = vector.extract_strided_slice %38 {offsets = [0, 0], sizes = [8, 128], strides = [1, 1]} : vector<8x384xbf16> to vector<8x128xbf16>
    %40 = vector.shape_cast %39 : vector<8x128xbf16> to vector<8x4x32xbf16>
    %41 = tpu.transpose %40, [1, 0, 2] : vector<8x4x32xbf16> -> vector<4x8x32xbf16>
    %42 = vector.extract_strided_slice %38 {offsets = [0, 128], sizes = [8, 128], strides = [1, 1]} : vector<8x384xbf16> to vector<8x128xbf16>
    %43 = vector.shape_cast %42 : vector<8x128xbf16> to vector<8x4x32xbf16>
    %44 = tpu.transpose %43, [1, 0, 2] : vector<8x4x32xbf16> -> vector<4x8x32xbf16>
    %45 = vector.extract_strided_slice %38 {offsets = [0, 256], sizes = [8, 128], strides = [1, 1]} : vector<8x384xbf16> to vector<8x128xbf16>
    %46 = vector.shape_cast %45 : vector<8x128xbf16> to vector<8x4x32xbf16>
    %47 = tpu.transpose %46, [1, 0, 2] : vector<8x4x32xbf16> -> vector<4x8x32xbf16>
    "tpu.trace_start"() <{level = 10 : i32, message = "hqd,hkd->hqk"}> : () -> ()
    %cst_15 = arith.constant dense<0.000000e+00> : vector<4x8x8xf32>
    %48 = tpu.matmul %41, %44, %cst_15 {dimension_numbers = #tpu.dot_dimension_numbers<[2], [2], [1], [1], [0, 0, 0, 1, 1, 1], [0], [0]>} : vector<4x8x32xbf16>, vector<4x8x32xbf16>, vector<4x8x8xf32> -> vector<4x8x8xf32>
    "tpu.trace_stop"() : () -> ()
    %cst_16 = arith.constant dense<0xFF800000> : vector<4x8xf32>
    %49 = vector.multi_reduction <maximumf>, %48, %cst_16 [2] : vector<4x8x8xf32> to vector<4x8xf32>
    %50 = vector.shape_cast %49 : vector<4x8xf32> to vector<4x8x1xf32>
    %51 = vector.broadcast %50 : vector<4x8x1xf32> to vector<4x8x8xf32>
    %52 = arith.subf %48, %51 : vector<4x8x8xf32>
    %53 = math.exp %52 : vector<4x8x8xf32>
    %cst_17 = arith.constant dense<0.000000e+00> : vector<4x8xf32>
    %54 = vector.multi_reduction <add>, %53, %cst_17 [2] : vector<4x8x8xf32> to vector<4x8xf32>
    %55 = vector.shape_cast %54 : vector<4x8xf32> to vector<4x8x1xf32>
    %56 = tpu.reciprocal %55 {approx = true} : vector<4x8x1xf32> -> vector<4x8x1xf32>
    %57 = vector.broadcast %56 : vector<4x8x1xf32> to vector<4x8x8xf32>
    %58 = arith.mulf %53, %57 : vector<4x8x8xf32>
    %59 = arith.truncf %58 : vector<4x8x8xf32> to vector<4x8x8xbf16>
    "tpu.trace_start"() <{level = 10 : i32, message = "hqk,hkd->hqd"}> : () -> ()
    %cst_18 = arith.constant dense<0.000000e+00> : vector<4x8x32xf32>
    %60 = tpu.matmul %59, %47, %cst_18 {dimension_numbers = #tpu.dot_dimension_numbers<[2], [1], [1], [2], [0, 0, 0, 1, 1, 2], [0], [0]>} : vector<4x8x8xbf16>, vector<4x8x32xbf16>, vector<4x8x32xf32> -> vector<4x8x32xf32>
    "tpu.trace_stop"() : () -> ()
    %61 = tpu.transpose %60, [1, 0, 2] : vector<4x8x32xf32> -> vector<8x4x32xf32>
    %62 = vector.shape_cast %61 : vector<8x4x32xf32> to vector<8x128xf32>
    %63 = arith.truncf %62 : vector<8x128xf32> to vector<8x128xbf16>
    %c0_19 = arith.constant 0 : index
    %c0_20 = arith.constant 0 : index
    %64 = vector.load %arg6[%c0_19, %c0_20] : memref<128x128xbf16, #tpu.memory_space<vmem>>, vector<128x128xbf16>
    %cst_21 = arith.constant dense<0.000000e+00> : vector<8x128xf32>
    %65 = tpu.matmul %63, %64, %cst_21 {dimension_numbers = #tpu.dot_dimension_numbers<[1], [0], [0], [1], [0, 0, 1, 1], [], []>} : vector<8x128xbf16>, vector<128x128xbf16>, vector<8x128xf32> -> vector<8x128xf32>
    %66 = arith.addf %1, %65 : vector<8x128xf32>
    %c0_22 = arith.constant 0 : index
    %c0_23 = arith.constant 0 : index
    %67 = vector.load %arg7[%c0_22, %c0_23] : memref<1x128xf32, #tpu.memory_space<vmem>>, vector<1x128xf32>
    %68 = vector.shape_cast %67 : vector<1x128xf32> to vector<128xf32>
    %69 = vector.shape_cast %68 : vector<128xf32> to vector<1x128xf32>
    %70 = vector.broadcast %69 : vector<1x128xf32> to vector<8x128xf32>
    %71 = arith.addf %66, %70 : vector<8x128xf32>
    %c0_24 = arith.constant 0 : index
    %c0_25 = arith.constant 0 : index
    %72 = vector.load %arg8[%c0_24, %c0_25] : memref<1x128xf32, #tpu.memory_space<vmem>>, vector<1x128xf32>
    %73 = vector.shape_cast %72 : vector<1x128xf32> to vector<128xf32>
    %c0_26 = arith.constant 0 : index
    %c0_27 = arith.constant 0 : index
    %74 = vector.load %arg9[%c0_26, %c0_27] : memref<1x128xf32, #tpu.memory_space<vmem>>, vector<1x128xf32>
    %75 = vector.shape_cast %74 : vector<1x128xf32> to vector<128xf32>
    %cst_28 = arith.constant dense<0.000000e+00> : vector<8xf32>
    %76 = vector.multi_reduction <add>, %71, %cst_28 [1] : vector<8x128xf32> to vector<8xf32>
    %77 = vector.shape_cast %76 : vector<8xf32> to vector<8x1xf32>
    %cst_29 = arith.constant 1.280000e+02 : f32
    %78 = vector.broadcast %cst_29 : f32 to vector<8x1xf32>
    %79 = arith.divf %77, %78 : vector<8x1xf32>
    %80 = vector.broadcast %79 : vector<8x1xf32> to vector<8x128xf32>
    %81 = arith.subf %71, %80 : vector<8x128xf32>
    %82 = arith.mulf %81, %81 : vector<8x128xf32>
    %cst_30 = arith.constant dense<0.000000e+00> : vector<8xf32>
    %83 = vector.multi_reduction <add>, %82, %cst_30 [1] : vector<8x128xf32> to vector<8xf32>
    %84 = vector.shape_cast %83 : vector<8xf32> to vector<8x1xf32>
    %cst_31 = arith.constant 1.280000e+02 : f32
    %85 = vector.broadcast %cst_31 : f32 to vector<8x1xf32>
    %86 = arith.divf %84, %85 : vector<8x1xf32>
    %87 = vector.broadcast %79 : vector<8x1xf32> to vector<8x128xf32>
    %88 = arith.subf %71, %87 : vector<8x128xf32>
    %cst_32 = arith.constant 9.99999974E-6 : f32
    %89 = vector.broadcast %cst_32 : f32 to vector<8x1xf32>
    %90 = arith.addf %86, %89 : vector<8x1xf32>
    %91 = math.rsqrt %90 : vector<8x1xf32>
    %92 = vector.broadcast %91 : vector<8x1xf32> to vector<8x128xf32>
    %93 = arith.mulf %88, %92 : vector<8x128xf32>
    %94 = vector.shape_cast %73 : vector<128xf32> to vector<1x128xf32>
    %95 = vector.broadcast %94 : vector<1x128xf32> to vector<8x128xf32>
    %96 = arith.mulf %93, %95 : vector<8x128xf32>
    %97 = vector.shape_cast %75 : vector<128xf32> to vector<1x128xf32>
    %98 = vector.broadcast %97 : vector<1x128xf32> to vector<8x128xf32>
    %99 = arith.addf %96, %98 : vector<8x128xf32>
    %100 = arith.truncf %99 : vector<8x128xf32> to vector<8x128xbf16>
    %c0_33 = arith.constant 0 : index
    %c0_34 = arith.constant 0 : index
    %101 = vector.load %arg10[%c0_33, %c0_34] : memref<128x512xbf16, #tpu.memory_space<vmem>>, vector<128x512xbf16>
    %cst_35 = arith.constant dense<0.000000e+00> : vector<8x512xf32>
    %102 = tpu.matmul %100, %101, %cst_35 {dimension_numbers = #tpu.dot_dimension_numbers<[1], [0], [0], [1], [0, 0, 1, 1], [], []>} : vector<8x128xbf16>, vector<128x512xbf16>, vector<8x512xf32> -> vector<8x512xf32>
    %c0_36 = arith.constant 0 : index
    %c0_37 = arith.constant 0 : index
    %103 = vector.load %arg11[%c0_36, %c0_37] : memref<1x512xf32, #tpu.memory_space<vmem>>, vector<1x512xf32>
    %104 = vector.shape_cast %103 : vector<1x512xf32> to vector<512xf32>
    %105 = vector.shape_cast %104 : vector<512xf32> to vector<1x512xf32>
    %106 = vector.broadcast %105 : vector<1x512xf32> to vector<8x512xf32>
    %107 = arith.addf %102, %106 : vector<8x512xf32>
    %108 = arith.truncf %107 : vector<8x512xf32> to vector<8x512xbf16>
    %cst_38 = arith.constant 1.703130e+00 : bf16
    %109 = vector.broadcast %cst_38 : bf16 to vector<8x512xbf16>
    %110 = arith.mulf %109, %108 : vector<8x512xbf16>
    %111 = arith.negf %110 : vector<8x512xbf16>
    %112 = math.exp %111 : vector<8x512xbf16>
    %cst_39 = arith.constant 1.000000e+00 : bf16
    %113 = vector.broadcast %cst_39 : bf16 to vector<8x512xbf16>
    %114 = arith.addf %113, %112 : vector<8x512xbf16>
    %115 = arith.divf %113, %114 : vector<8x512xbf16>
    %116 = arith.mulf %108, %115 : vector<8x512xbf16>
    %c0_40 = arith.constant 0 : index
    %c0_41 = arith.constant 0 : index
    %117 = vector.load %arg12[%c0_40, %c0_41] : memref<512x128xbf16, #tpu.memory_space<vmem>>, vector<512x128xbf16>
    %cst_42 = arith.constant dense<0.000000e+00> : vector<8x128xf32>
    %118 = tpu.matmul %116, %117, %cst_42 {dimension_numbers = #tpu.dot_dimension_numbers<[1], [0], [0], [1], [0, 0, 1, 1], [], []>} : vector<8x512xbf16>, vector<512x128xbf16>, vector<8x128xf32> -> vector<8x128xf32>
    %c0_43 = arith.constant 0 : index
    %c0_44 = arith.constant 0 : index
    %119 = vector.load %arg13[%c0_43, %c0_44] : memref<1x128xf32, #tpu.memory_space<vmem>>, vector<1x128xf32>
    %120 = vector.shape_cast %119 : vector<1x128xf32> to vector<128xf32>
    %121 = vector.shape_cast %120 : vector<128xf32> to vector<1x128xf32>
    %122 = vector.broadcast %121 : vector<1x128xf32> to vector<8x128xf32>
    %123 = arith.addf %118, %122 : vector<8x128xf32>
    %124 = arith.addf %71, %123 : vector<8x128xf32>
    %c0_45 = arith.constant 0 : index
    %c0_46 = arith.constant 0 : index
    %c0_47 = arith.constant 0 : index
    %125 = vector.load %arg14[%c0_45, %c0_46, %c0_47] : memref<1x8x128xf32, #tpu.memory_space<vmem>>, vector<1x8x128xf32>
    %126 = vector.shape_cast %125 : vector<1x8x128xf32> to vector<8x128xf32>
    %127 = vector.shape_cast %124 : vector<8x128xf32> to vector<1x8x128xf32>
    tpu.vector_store %arg14[%c0_45, %c0_46, %c0_47], %127 {strides = array<i32>} : memref<1x8x128xf32, #tpu.memory_space<vmem>>, vector<1x8x128xf32>,
    return
  }
  func.func @transform_0(%arg0: i32) -> (i32, i32, i32) {
    %c0_i32 = arith.constant 0 : i32
    %c0_i32_0 = arith.constant 0 : i32
    %c0_i32_1 = arith.constant 0 : i32
    return %arg0, %c0_i32, %c0_i32_0 : i32, i32, i32
  }
  func.func @transform_1(%arg0: i32) -> (i32, i32) {
    %c0_i32 = arith.constant 0 : i32
    %c0_i32_0 = arith.constant 0 : i32
    %c0_i32_1 = arith.constant 0 : i32
    return %c0_i32, %c0_i32_0 : i32, i32
  }
  func.func @transform_2(%arg0: i32) -> (i32, i32) {
    %c0_i32 = arith.constant 0 : i32
    %c0_i32_0 = arith.constant 0 : i32
    %c0_i32_1 = arith.constant 0 : i32
    return %c0_i32, %c0_i32_0 : i32, i32
  }
  func.func @transform_3(%arg0: i32) -> (i32, i32) {
    %c0_i32 = arith.constant 0 : i32
    %c0_i32_0 = arith.constant 0 : i32
    %c0_i32_1 = arith.constant 0 : i32
    return %c0_i32, %c0_i32_0 : i32, i32
  }
  func.func @transform_4(%arg0: i32) -> (i32, i32) {
    %c0_i32 = arith.constant 0 : i32
    %c0_i32_0 = arith.constant 0 : i32
    %c0_i32_1 = arith.constant 0 : i32
    return %c0_i32, %c0_i32_0 : i32, i32
  }
  func.func @transform_5(%arg0: i32) -> (i32, i32) {
    %c0_i32 = arith.constant 0 : i32
    %c0_i32_0 = arith.constant 0 : i32
    %c0_i32_1 = arith.constant 0 : i32
    return %c0_i32, %c0_i32_0 : i32, i32
  }
  func.func @transform_6(%arg0: i32) -> (i32, i32) {
    %c0_i32 = arith.constant 0 : i32
    %c0_i32_0 = arith.constant 0 : i32
    %c0_i32_1 = arith.constant 0 : i32
    return %c0_i32, %c0_i32_0 : i32, i32
  }
  func.func @transform_7(%arg0: i32) -> (i32, i32) {
    %c0_i32 = arith.constant 0 : i32
    %c0_i32_0 = arith.constant 0 : i32
    %c0_i32_1 = arith.constant 0 : i32
    return %c0_i32, %c0_i32_0 : i32, i32
  }
  func.func @transform_8(%arg0: i32) -> (i32, i32) {
    %c0_i32 = arith.constant 0 : i32
    %c0_i32_0 = arith.constant 0 : i32
    %c0_i32_1 = arith.constant 0 : i32
    return %c0_i32, %c0_i32_0 : i32, i32
  }
  func.func @transform_9(%arg0: i32) -> (i32, i32) {
    %c0_i32 = arith.constant 0 : i32
    %c0_i32_0 = arith.constant 0 : i32
    %c0_i32_1 = arith.constant 0 : i32
    return %c0_i32, %c0_i32_0 : i32, i32
  }
  func.func @transform_10(%arg0: i32) -> (i32, i32) {
    %c0_i32 = arith.constant 0 : i32
    %c0_i32_0 = arith.constant 0 : i32
    %c0_i32_1 = arith.constant 0 : i32
    return %c0_i32, %c0_i32_0 : i32, i32
  }
  func.func @transform_11(%arg0: i32) -> (i32, i32) {
    %c0_i32 = arith.constant 0 : i32
    %c0_i32_0 = arith.constant 0 : i32
    %c0_i32_1 = arith.constant 0 : i32
    return %c0_i32, %c0_i32_0 : i32, i32
  }
  func.func @transform_12(%arg0: i32) -> (i32, i32) {
    %c0_i32 = arith.constant 0 : i32
    %c0_i32_0 = arith.constant 0 : i32
    %c0_i32_1 = arith.constant 0 : i32
    return %c0_i32, %c0_i32_0 : i32, i32
  }
  func.func @transform_13(%arg0: i32) -> (i32, i32, i32) {
    %c0_i32 = arith.constant 0 : i32
    %c0_i32_0 = arith.constant 0 : i32
    %c0_i32_1 = arith.constant 0 : i32
    return %arg0, %c0_i32, %c0_i32_0 : i32, i32, i32
  }
}

</mosaic_0001>

<bundles_post_ra>
// kernel: transformer_forward.2
= control target key start
LH: loop header
LB: loop body
LE: loop exit
PB: predicated region body
PF: predicated region fallthrough
CT: control target
= control target key end

     0   :  { %s3467_s0 = inlined_call_operand.vmem [shape: f32[2,8,128], index: 0, kind: input, shape index: {}]   ;;  %s3468_s1 = inlined_call_operand.vmem [shape: f32[1,128], index: 1, kind: input, shape index: {}]   ;;  %s3469_s2 = inlined_call_operand.vmem [shape: f32[1,128], index: 2, kind: input, shape index: {}]   ;;  %s3470_s3 = inlined_call_operand.hbm [shape: bf16[128,384], index: 3, kind: input, shape index: {}]   ;;  %s3471_s4 = inlined_call_operand.vmem [shape: f32[1,384], index: 4, kind: input, shape index: {}]   ;;  %s3472_s5 = inlined_call_operand.hbm [shape: bf16[128,128], index: 5, kind: input, shape index: {}]   ;;  %s3473_s6 = inlined_call_operand.vmem [shape: f32[1,128], index: 6, kind: input, shape index: {}]   ;;  %s3474_s7 = inlined_call_operand.vmem [shape: f32[1,128], index: 7, kind: input, shape index: {}]   ;;  %s3475_s8 = inlined_call_operand.vmem [shape: f32[1,128], index: 8, kind: input, shape index: {}]   ;;  %s3476_s9 = inlined_call_operand.hbm [shape: bf16[128,512], index: 9, kind: input, shape index: {}]   ;;  %s3477_s10 = inlined_call_operand.vmem [shape: f32[1,512], index: 10, kind: input, shape index: {}]   ;;  %s3478_s11 = inlined_call_operand.hbm [shape: bf16[512,128], index: 11, kind: input, shape index: {}]   ;;  %s3479_s12 = inlined_call_operand.vmem [shape: f32[1,128], index: 12, kind: input, shape index: {}]   ;;  %s3480_s13 = inlined_call_operand.vmem [shape: f32[2,8,128], index: 13, kind: output, shape index: {}]  }
   0x1   :  { %3482 = sst [smem:[#allocation13_spill]] %s3470_s3 }
   0x2   :  { %3483 = sst [smem:[#allocation14_spill]] %s3472_s5 }
   0x3   :  { %3484 = sst [smem:[#allocation15_spill]] %s3480_s13 }
   0x4   :  { %18 = vsyncpa [#allocation3], 0 }
   0x5   :  { %19 = vsyncpa [#allocation5], 0 }
   0x6   :  { %20 = vsyncpa [#allocation8], 0  ;;  %s3127_s25 = smov 0  }
   0x7 LB: > { %3485 = sst [smem:[#allocation12_spill]] %s3038_s25  ;;  %s3136_s29 = sadd.s32 4294967295, %s3038_s25   ;;  %s3038_s25 = sphi %s3127_s25, %s26_s25  }
   0x8   : > { %s3486_s5 = sld [smem:[#allocation14_spill]]  ;;  %p2290_p0 = scmp.ge.s32.totalorder %s3038_s25, 1 }
   0x9   : > { %p335_p1 = scmp.lt.s32.totalorder %s3038_s25, 3  ;;  %p2822_p2 = scmp.eq.s32.totalorder %s3136_s29, 0 }
   0xa   : > { %s3040_s14 = smov [#allocation4]   ;;  %s3488_s3 = sld [smem:[#allocation13_spill]] }
   0xb   : > { %p3141_p3 = pnand %p2290_p0, %p335_p1  ;;  %s371_s15 = sshll.u32 %s3040_s14, 4  ;;  %s372_s15 = int_to_ptr.vmem [resolvable:$true] %s371_s15 }
   0xc   : > { %s3041_s20 = smov [#allocation2]   ;;  %s3042_s22 = smov 64  }
   0xd   : > { %p2809_p4 = pneg %p3141_p3  ;;  %s354_s21 = sshll.u32 %s3041_s20, 4  ;;  %s355_s21 = int_to_ptr.vmem [resolvable:$true] %s354_s21 }
   0xe   : > { %s369_s28 = sshll.u32 %s3486_s5, 4  ;;  %s3043_s23 = smov 4   ;;  %s370_s28 = int_to_ptr.hbm [resolvable:$true] %s369_s28 }
   0xf   : > { %p3152_p5 = pnand %p2822_p2, %p2809_p4  ;;  %s392_s27 = sshll.u32 %s3476_s9, 4  ;;  %s393_s27 = int_to_ptr.hbm [resolvable:$true] %s392_s27 }
  0x10   : > { %s352_s18 = sshll.u32 %s3488_s3, 4  ;;  %s3044_s14 = smov 192   ;;  %s353_s18 = int_to_ptr.hbm [resolvable:$true] %s352_s18 }
  0x11   : > { %2815 = dma.hbm_to_vmem [thread:$0]  (!%p3152_p5), %s370_s28, 1024, %s372_s15, [#allocation5], %s3042_s22, %s3042_s22, %s3043_s23  }
  0x12   : > { %s3045_s16 = smov 12   ;;  %s3046_s17 = smov [#allocation6]  }
  0x13   : > { %2812 = dma.hbm_to_vmem [thread:$0]  (!%p3152_p5), %s353_s18, 3072, %s355_s21, [#allocation3], %s3044_s14, %s3044_s14, %s3045_s16  }
  0x14   : > { %s394_s3 = sshll.u32 %s3046_s17, 4  ;;  %s3047_s5 = smov 256   ;;  %s395_s3 = int_to_ptr.vmem [resolvable:$true] %s394_s3 }
  0x15   : > { %s3048_s20 = smov 16   ;;  %s409_s28 = sshll.u32 %s3478_s11, 4  ;;  %s410_s28 = int_to_ptr.hbm [resolvable:$true] %s409_s28 }
  0x16   : > { %2818 = dma.hbm_to_vmem [thread:$0]  (!%p3152_p5), %s393_s27, 4096, %s395_s3, [#allocation5], %s3047_s5, %s3047_s5, %s3048_s20  }
  0x17   : > { %s3049_s15 = smov [#allocation7]   ;;  %437 = sbr.rel (%p3141_p3) target bundleno = 2056 (0x808), region = 72 }
  0x18   : > { %s411_s24 = sshll.u32 %s3049_s15, 4  ;;  %s412_s24 = int_to_ptr.vmem [resolvable:$true] %s411_s24 }
  0x19   : > { %2821 = dma.hbm_to_vmem [thread:$0]  (!%p3152_p5), %s410_s28, 4096, %s412_s24, [#allocation8], %s3042_s22, %s3042_s22, %s3043_s23  }
  0x1c   : > { %3025 = dma.done.wait (%p2822_p2), [#allocation3], 3072  }
  0x1d   : > { %3027 = vsyncadd (%p2822_p2), [#allocation3], 4294964224 }
  0x1e   : > { %3029 = dma.done.wait (%p2822_p2), [#allocation5], 5120  }
  0x1f   : > { %3031 = vsyncadd (%p2822_p2), [#allocation5], 4294962176 }
  0x20   : > { %3033 = dma.done.wait (%p2822_p2), [#allocation8], 4096  }
  0x21   : > { %3035 = vsyncadd (%p2822_p2), [#allocation8], 4294963200  ;;  %p495_p6 = scmp.lt.s32.totalorder %s3136_s29, 1  ;;  %v3050_v1 = vmov 128.0   ;;  %v2389_v2 = vld [vmem:[#allocation2 + $0xa8] sm:$0xf] }
  0x22   : > { %2861 = vrcp.f32 %v3050_v1  ;;  %v2719_v3 = vld [vmem:[#allocation2 + $0xb0] sm:$0xf0]  ;;  %v2718_v4 = vld [vmem:[#allocation2 + $0xac] sm:$0xf]  ;;  %v2391_v6 = vld [vmem:[#allocation2 + $0xb4] sm:$0xf0] }
  0x23   : > { %s3493_s29 = smov (!%p495_p6, %s3136_s29), 1  ;;  %v2390_v5 = vor.u32 %v2719_v3, %v2389_v2  ;;  %v2397_v7 = vld [vmem:[#allocation2 + $0xb0] sm:$0xf]  ;;  %v2720_v8 = vld [vmem:[#allocation2 + $0xb8] sm:$0xf0]  ;;  %v2394_v9 = vor.u32 %v2718_v4, %v2391_v6  ;;  %s3051_s26 = smov 32  }
  0x24   : > { %s2301_s3 = sshll.u32 %s3493_s29, 3  ;;  %v2398_v10 = vor.u32 %v2720_v8, %v2397_v7  ;;  %v2377_v21 = vld [vmem:[#allocation2 + $0x90] sm:$0xf]  ;;  %v2716_v22 = vld [vmem:[#allocation2 + $0x98] sm:$0xf0]  ;;  %s3052_s27 = smov 96  }
  0x25   : > { %s3194_s25 = scalar_lea.vmem %s3467_s0, %s2301_s3  ;;  %712 = vmatpush.bf16.msra.mxu0 %v2390_v5  ;;  %725 = vmatpush.bf16.msra.mxu1 %v2394_v9  ;;  %v2715_v23 = vld [vmem:[#allocation2 + $0x94] sm:$0xf]  ;;  %v2378_v24 = vor.u32 %v2716_v22, %v2377_v21  ;;  %v2379_v25 = vld [vmem:[#allocation2 + $0x9c] sm:$0xf0]  ;;  %v2385_v26 = vld [vmem:[#allocation2 + $0x98] sm:$0xf] }
  0x26   : > { %v505_v0 = vld [vmem:[%s3194_s25] sm:$0xff]  ;;  %738 = vmatpush.bf16.msra.mxu2 %v2398_v10  ;;  %v2382_v28 = vor.u32 %v2715_v23, %v2379_v25  ;;  %v2365_v30 = vld [vmem:[#allocation2 + $0x78] sm:$0xf]  ;;  %v2712_v32 = vld [vmem:[#allocation2 + $0x7c] sm:$0xf]  ;;  %s3053_s14 = smov 64  }
  0x27   : > { %508 = vadd.xlane.f32.xlu0 %v505_v0  ;;  %v2717_v27 = vld [vmem:[#allocation2 + $0xa0] sm:$0xf0]  ;;  %v2367_v34 = vld [vmem:[#allocation2 + $0x84] sm:$0xf0]  ;;  %v2373_v35 = vld [vmem:[#allocation2 + $0x80] sm:$0xf] }
  0x28   : > { %v2862_v11 = vpop.eup %2861  ;;  %v2386_v29 = vor.u32 %v2717_v27, %v2385_v26  ;;  %v2713_v31 = vld [vmem:[#allocation2 + $0x80] sm:$0xf0]  ;;  %v2714_v36 = vld [vmem:[#allocation2 + $0x88] sm:$0xf0]  ;;  %v2370_v37 = vor.u32 %v2712_v32, %v2367_v34  ;;  %v2353_v39 = vld [vmem:[#allocation2 + $0x60] sm:$0xf] }
  0x29   : > { %v511_v12 = vmul.f32 128.0, %v2862_v11  ;;  %vm515_vm0 = vweird.f32 %v2862_v11  ;;  %713 = vmatpush.bf16.msra.mxu0 %v2378_v24  ;;  %726 = vmatpush.bf16.msra.mxu1 %v2382_v28  ;;  %v2366_v33 = vor.u32 %v2713_v31, %v2365_v30  ;;  %v2374_v38 = vor.u32 %v2714_v36, %v2373_v35  ;;  %v2710_v40 = vld [vmem:[#allocation2 + $0x68] sm:$0xf0]  ;;  %v2709_v41 = vld [vmem:[#allocation2 + $0x64] sm:$0xf]  ;;  %s3490_s21 = sld [smem:[#allocation15_spill]] }
  0x2a   : > { %739 = vmatpush.bf16.msra.mxu2 %v2386_v29  ;;  %v2354_v42 = vor.u32 %v2710_v40, %v2353_v39  ;;  %v2355_v43 = vld [vmem:[#allocation2 + $0x6c] sm:$0xf0]  ;;  %v2361_v44 = vld [vmem:[#allocation2 + $0x68] sm:$0xf]  ;;  %v2711_v45 = vld [vmem:[#allocation2 + $0x70] sm:$0xf0] }
  0x2b   : > { %v512_v13 = vsub.f32 1.0, %v511_v12  ;;  %v2358_v46 = vor.u32 %v2709_v41, %v2355_v43  ;;  %v2362_v47 = vor.u32 %v2711_v45, %v2361_v44  ;;  %v2341_v48 = vld [vmem:[#allocation2 + $0x48] sm:$0xf]  ;;  %v2707_v49 = vld [vmem:[#allocation2 + $0x50] sm:$0xf0]  ;;  %vm783_vm4 = vcmask 1047556  }
  0x2c   : > { %v2706_v50 = vld [vmem:[#allocation2 + $0x4c] sm:$0xf]  ;;  %v2342_v51 = vor.u32 %v2707_v49, %v2341_v48  ;;  %v2343_v52 = vld [vmem:[#allocation2 + $0x54] sm:$0xf0]  ;;  %v2349_v53 = vld [vmem:[#allocation2 + $0x50] sm:$0xf] }
  0x2d   : > { %v513_v14 = vmul.f32 %v2862_v11, %v512_v13  ;;  %714 = vmatpush.bf16.msra.mxu0 %v2366_v33  ;;  %727 = vmatpush.bf16.msra.mxu1 %v2370_v37  ;;  %v2708_v54 = vld [vmem:[#allocation2 + $0x58] sm:$0xf0]  ;;  %v2346_v55 = vor.u32 %v2706_v50, %v2343_v52  ;;  %v2329_v57 = vld [vmem:[#allocation2 + $0x30] sm:$0xf]  ;;  %v2703_v59 = vld [vmem:[#allocation2 + $0x34] sm:$0xf] }
  0x2e   : > { %740 = vmatpush.bf16.msra.mxu2 %v2374_v38  ;;  %v2350_v56 = vor.u32 %v2708_v54, %v2349_v53  ;;  %v2704_v58 = vld [vmem:[#allocation2 + $0x38] sm:$0xf0]  ;;  %v2331_v61 = vld [vmem:[#allocation2 + $0x3c] sm:$0xf0]  ;;  %v2337_v62 = vld [vmem:[#allocation2 + $0x38] sm:$0xf] }
  0x2f   : > { %v514_v15 = vadd.f32 %v2862_v11, %v513_v14  ;;  %v2330_v60 = vor.u32 %v2704_v58, %v2329_v57  ;;  %v2705_v63 = vld [vmem:[#allocation2 + $0x40] sm:$0xf0]  ;;  %v2317_v2 = vld [vmem:[#allocation2 + $0x18] sm:$0xf]  ;;  %v2700_v4 = vld [vmem:[#allocation2 + $0x1c] sm:$0xf]  ;;  %s502_s22 = scalar_lea.vmem %s3490_s21, %s2301_s3 }
  0x30   : > { %v2338_v1 = vor.u32 %v2705_v63, %v2337_v62  ;;  %v2701_v3 = vld [vmem:[#allocation2 + $0x20] sm:$0xf0]  ;;  %v2319_v6 = vld [vmem:[#allocation2 + $0x24] sm:$0xf0]  ;;  %v2325_v7 = vld [vmem:[#allocation2 + $0x20] sm:$0xf] }
  0x31   : > { %v3197_v16 = vsel %vm515_vm0, %v2862_v11, %v514_v15  ;;  %715 = vmatpush.bf16.msra.mxu0 %v2354_v42  ;;  %728 = vmatpush.bf16.msra.mxu1 %v2358_v46  ;;  %v2318_v5 = vor.u32 %v2701_v3, %v2317_v2  ;;  %v2702_v8 = vld [vmem:[#allocation2 + $0x28] sm:$0xf0]  ;;  %v2322_v9 = vor.u32 %v2700_v4, %v2319_v6  ;;  %v2305_v11 = vld [vmem:[#allocation2] sm:$0xf]  ;;  %v2697_v13 = vld [vmem:[#allocation2 + $0x4] sm:$0xf] }
  0x32   : > { %741 = vmatpush.bf16.msra.mxu2 %v2362_v47  ;;  %v2326_v10 = vor.u32 %v2702_v8, %v2325_v7  ;;  %v2698_v12 = vld [vmem:[#allocation2 + $0x8] sm:$0xf0]  ;;  %v2307_v15 = vld [vmem:[#allocation2 + $0xc] sm:$0xf0]  ;;  %v2855_v31 = vld [vmem:[%s3468_s1] ss:$0 sm:$0xff] }
  0x33   : > { %v2306_v14 = vor.u32 %v2698_v12, %v2305_v11  ;;  %v2856_v34 = vld [vmem:[%s3469_s2] ss:$0 sm:$0xff]  ;;  %v3054_v49 = vmov 1983009808   ;;  %v3055_v2 = vmov 1934713408  }
  0x34   : > { %v3215_v38 = vld [vmem:[%s3471_s4] sm:$0x7]  ;;  %v774_v50 = vunpack.c.l.s4 %v3054_v49  ;;  %v788_v3 = vunpack.c.l.s4 %v3055_v2  ;;  %vm1114_vm5 = vcmask 261120   ;;  %vm1191_vm6 = vcmask 64512  }
  0x35   : > { %716 = vmatpush.bf16.msra.mxu0 %v2342_v51  ;;  %729 = vmatpush.bf16.msra.mxu1 %v2346_v55  ;;  %v578_v39 = vperm.slane %v3215_v38, 0  ;;  %v579_v40 = vperm.slane %v3215_v38, 1  ;;  %vm1243_vm7 = vcmask 1043456   ;;  %vm1441_vm8 = vcmask 523264  }
  0x36   : > { %742 = vmatpush.bf16.msra.mxu2 %v2350_v56  ;;  %v3224_v56 = vunpack.c.0.s8 %v774_v50  ;;  %vm1443_vm9 = vcmask 785408  }
  0x39   : > { %717 = vmatpush.bf16.msra.mxu0 %v2330_v60 }
  0x3a   : > { %743 = vmatpush.bf16.msra.mxu2 %v2338_v1 }
  0x3d   : > { %718 = vmatpush.bf16.msra.mxu0 %v2318_v5 }
  0x3e   : > { %744 = vmatpush.bf16.msra.mxu2 %v2326_v10 }
  0x41   : > { %719 = vmatpush.bf16.msra.mxu0 %v2306_v14  ;;  %v3230_v14 = vunpack.c.0.s8 %v788_v3 }
  0x9a   : > { %v509_v17 = vpop.xlane.xlu0 %508 }
  0x9b   : > { %v517_v18 = vmul.f32 %v3197_v16, %v509_v17  ;;  %v2313_v17 = vld [vmem:[#allocation2 + $0x8] sm:$0xf] }
  0x9d   : > { %v3200_v19 = vsub.f32 %v505_v0, %v517_v18  ;;  %v2334_v0 = vor.u32 %v2703_v59, %v2331_v61  ;;  %v2699_v18 = vld [vmem:[#allocation2 + $0x10] sm:$0xf0] }
  0x9e   : > { %v2314_v21 = vor.u32 %v2699_v18, %v2313_v17 }
  0x9f   : > { %v519_v20 = vmul.f32 %v3200_v19, %v3200_v19  ;;  %730 = vmatpush.bf16.msra.mxu1 %v2334_v0 }
  0xa0   : > { %745 = vmatpush.bf16.msra.mxu2 %v2314_v21 }
  0xa1   : > { %520 = vadd.xlane.f32.xlu0 %v519_v20  ;;  %v2310_v20 = vor.u32 %v2697_v13, %v2307_v15 }
  0xa3   : > { %731 = vmatpush.bf16.msra.mxu1 %v2322_v9 }
  0xa7   : > { %732 = vmatpush.bf16.msra.mxu1 %v2310_v20 }
 0x114   : > { %v521_v22 = vpop.xlane.xlu0 %520 }
 0x115   : > { %v522_v23 = vmul.f32 %v521_v22, %v3197_v16 }
 0x117   : > { %v523_v24 = vadd.f32 1e-05, %v522_v23 }
 0x119   : > { %2863 = vrsqrt.f32 %v523_v24  ;;  %vm530_vm2 = vweird.f32 %v523_v24 }
 0x11f   : > { %v2864_v25 = vpop.eup %2863 }
 0x120   : > { %v525_v26 = vmul.f32 %v2864_v25, %v523_v24  ;;  %vm531_vm1 = vweird.f32 %v2864_v25 }
 0x121   : > { %vm532_vm3 = vmor %vm530_vm2, %vm531_vm1 }
 0x122   : > { %v526_v27 = vmul.f32 %v2864_v25, %v525_v26 }
 0x124   : > { %v527_v28 = vmul.f32 0.5, %v526_v27 }
 0x126   : > { %v528_v29 = vsub.f32 1.5, %v527_v28 }
 0x128   : > { %v529_v30 = vmul.f32 %v2864_v25, %v528_v29 }
 0x12a   : > { %v533_v32 = vsel %vm532_vm3, %v2864_v25, %v529_v30 }
 0x12b   : > { %v534_v33 = vmul.f32 %v533_v32, %v3200_v19 }
 0x12d   : > { %v538_v35 = vmul.f32 %v2855_v31, %v534_v33 }
 0x12f   : > { %v542_v36 = vadd.f32 %v2856_v34, %v538_v35 }
 0x131   : > { %v543_v37 = vpack.c.bf16 %v542_v36, %v542_v36 }
 0x133   : > { %720 = vmatmul.bf16.vlgmr.msra.gmra.mxu0 %v543_v37  ;;  %733 = vmatmul.bf16.vlgmr.msra.gmra.mxu1 %v543_v37 }
 0x134   : > { %746 = vmatmul.bf16.vlgmr.msra.gmra.mxu2 %v543_v37 }
 0x1b0   : > { %v721_v19 = vpop.f32.mrf.mxu0  ;;  %v734_v41 = vpop.f32.mrf.mxu1 }
 0x1b1   : > { %v722_v42 = vadd.f32 %v721_v19, %v578_v39  ;;  %v735_v43 = vadd.f32 %v734_v41, %v579_v40 }
 0x1b3   : > { %v751_v44 = vpack.c.bf16 %v735_v43, %v722_v42 }
 0x1b5   : > { %758 = vrot.lane.b32.xlu2 %v751_v44, %s3051_s26  ;;  %754 = vrot.lane.b32.xlu1 %v751_v44, %s3052_s27  ;;  %v875_v52 = vrot.slane %v751_v44, 4  ;;  %v763_v58 = vshrl.u32 %v751_v44, 16 }
 0x1b7   : > { %v3221_v45 = vpop.f32.mrf.mxu2  ;;  %v882_v61 = vshrl.u32 %v875_v52, 16 }
 0x1b8   : > { %v723_v46 = vpop.f32.mrf.mxu0  ;;  %v736_v47 = vpop.f32.mrf.mxu1 }
 0x1bd   : > { %756 = vrot.lane.b32.xlu1 %v751_v44, %s3053_s14 }
 0x1bf   : > { %v749_v48 = vpop.f32.mrf.mxu2 }
 0x20f   : > { %v759_v55 = vpop.permute.xlu2 %758 }
 0x210   : > { %v878_v62 = vrot.slane %v759_v55, 4  ;;  %v770_v4 = vshrl.u32 %v759_v55, 16 }
 0x212   : > { %v889_v7 = vshrl.u32 %v878_v62, 16 }
 0x227   : > { %v755_v51 = vpop.permute.xlu1 %754 }
 0x228   : > { %v764_v53 = vshrl.u32 %v755_v51, 16  ;;  %v876_v54 = vrot.slane %v755_v51, 4  ;;  %v762_v57 = vpack.i.b16 %v755_v51, %v751_v44 }
 0x22a   : > { %v883_v59 = vshrl.u32 %v876_v54, 16  ;;  %v765_v60 = vpack.i.b16 %v764_v53, %v763_v58  ;;  %v776_v63 = vperm.slane %v762_v57, %v3224_v56  ;;  %v881_v0 = vpack.i.b16 %v876_v54, %v875_v52 }
 0x22c   : > { %v884_v1 = vpack.i.b16 %v883_v59, %v882_v61  ;;  %v803_v5 = vperm.slane %v765_v60, %v3224_v56  ;;  %v785_v11 = vrot.slane %v776_v63, 4  ;;  %v895_v12 = vperm.slane %v881_v0, %v3224_v56 }
 0x22e   : > { %v921_v13 = vperm.slane %v884_v1, %v3224_v56  ;;  %v811_v21 = vrot.slane %v803_v5, 4  ;;  %v903_v26 = vrot.slane %v895_v12, 4 }
 0x22f   : > { %v757_v6 = vpop.permute.xlu1 %756 }
 0x230   : > { %v768_v8 = vpack.i.b16 %v759_v55, %v757_v6  ;;  %v769_v9 = vshrl.u32 %v757_v6, 16  ;;  %v877_v10 = vrot.slane %v757_v6, 4  ;;  %v929_v27 = vrot.slane %v921_v13, 4 }
 0x232   : > { %v771_v15 = vpack.i.b16 %v770_v4, %v769_v9  ;;  %v781_v17 = vperm.slane %v768_v8, %v3224_v56  ;;  %v887_v18 = vpack.i.b16 %v878_v62, %v877_v10  ;;  %v888_v20 = vshrl.u32 %v877_v10, 16 }
 0x234   : > { %v782_v22 = vrot.slane %v781_v17, 4  ;;  %v786_v23 = vsel %vm783_vm4, %v781_v17, %v785_v11  ;;  %v808_v24 = vperm.slane %v771_v15, %v3224_v56  ;;  %v890_v25 = vpack.i.b16 %v889_v7, %v888_v20 }
 0x235   : > { %v794_v28 = vperm.slane %v786_v23, %v3230_v14  ;;  %v900_v29 = vperm.slane %v887_v18, %v3224_v56 }
 0x236   : > { %v784_v30 = vsel %vm783_vm4, %v782_v22, %v776_v63  ;;  %v809_v31 = vrot.slane %v808_v24, 4  ;;  %v812_v32 = vsel %vm783_vm4, %v808_v24, %v811_v21  ;;  %v926_v33 = vperm.slane %v890_v25, %v3224_v56 }
 0x237   : > { %v790_v34 = vperm.slane %v784_v30, %v3230_v14  ;;  %v797_v35 = vrot.slane %v794_v28, 4  ;;  %v820_v36 = vperm.slane %v812_v32, %v3230_v14  ;;  %v901_v37 = vrot.slane %v900_v29, 4 }
 0x238   : > { %v810_v39 = vsel %vm783_vm4, %v809_v31, %v803_v5  ;;  %v904_v40 = vsel %vm783_vm4, %v900_v29, %v903_v26  ;;  %v927_v19 = vrot.slane %v926_v33, 4  ;;  %v930_v41 = vsel %vm783_vm4, %v926_v33, %v929_v27 }
 0x239   : > { %v795_v42 = vrot.slane %v790_v34, 4  ;;  %v798_v43 = vsel %vm783_vm4, 0, %v797_v35  ;;  %v816_v44 = vperm.slane %v810_v39, %v3230_v14  ;;  %v823_v46 = vrot.slane %v820_v36, 4 }
 0x23a   : > { %v830_v47 = vrot.slane %v798_v43, 4  ;;  %v902_v48 = vsel %vm783_vm4, %v901_v37, %v895_v12  ;;  %v912_v49 = vperm.slane %v904_v40, %v3230_v14  ;;  %v928_v50 = vsel %vm783_vm4, %v927_v19, %v921_v13 }
 0x23b   : > { %v796_v51 = vsel %vm783_vm4, 0, %v795_v42  ;;  %v821_v52 = vrot.slane %v816_v44, 4  ;;  %v824_v53 = vsel %vm783_vm4, 0, %v823_v46  ;;  %v908_v54 = vperm.slane %v902_v48, %v3230_v14 }
 0x23c   : > { %v915_v55 = vrot.slane %v912_v49, 4  ;;  %v934_v57 = vperm.slane %v928_v50, %v3230_v14  ;;  %v938_v58 = vperm.slane %v930_v41, %v3230_v14  ;;  %v831_v60 = vsel %vm783_vm4, %v830_v47, %v796_v51 }
 0x23d   : > { %v913_v59 = vrot.slane %v908_v54, 4  ;;  %v849_v61 = vrot.slane %v824_v53, 4  ;;  %v822_v3 = vsel %vm783_vm4, 0, %v821_v52  ;;  %v835_v6 = vperm.slane %v831_v60, %v3224_v56 }
 0x23e   : > { %v916_v62 = vsel %vm783_vm4, 0, %v915_v55  ;;  %v941_v63 = vrot.slane %v938_v58, 4  ;;  %v939_v0 = vrot.slane %v934_v57, 4  ;;  %v943_v7 = vsel %vm783_vm4, %v915_v55, %v908_v54 }
 0x23f   : > { %v948_v1 = vrot.slane %v916_v62, 4  ;;  %v914_v2 = vsel %vm783_vm4, 0, %v913_v59  ;;  %v825_v11 = vsel %vm783_vm4, %v797_v35, %v790_v34  ;;  %v844_v12 = vsel %vm783_vm4, %v823_v46, %v816_v44 }
 0x240   : > { %v942_v4 = vsel %vm783_vm4, 0, %v941_v63  ;;  %v940_v5 = vsel %vm783_vm4, 0, %v939_v0  ;;  %v850_v13 = vsel %vm783_vm4, %v849_v61, %v822_v3  ;;  %v962_v15 = vsel %vm783_vm4, %v941_v63, %v934_v57 }
 0x241   : > { %v949_v8 = vsel %vm783_vm4, %v948_v1, %v914_v2  ;;  %v967_v9 = vrot.slane %v942_v4, 4  ;;  %v836_v18 = vrot.slane %v835_v6, 4  ;;  %v854_v20 = vperm.slane %v850_v13, %v3224_v56 }
 0x242   : > { %v953_v10 = vperm.slane %v949_v8, %v3224_v56  ;;  %v947_v21 = vperm.slane %v943_v7, %v3224_v56  ;;  %v829_v24 = vperm.slane %v825_v11, %v3224_v56  ;;  %v848_v25 = vperm.slane %v844_v12, %v3224_v56 }
 0x243   : > { %v968_v17 = vsel %vm783_vm4, %v967_v9, %v940_v5  ;;  %v855_v26 = vrot.slane %v854_v20, 4  ;;  %v966_v28 = vperm.slane %v962_v15, %v3224_v56  ;;  %v580_v9 = vperm.slane %v3215_v38, 2 }
 0x244   : > { %v954_v22 = vrot.slane %v953_v10, 4  ;;  %v972_v23 = vperm.slane %v968_v17, %v3224_v56  ;;  %v837_v31 = vsel %vm783_vm4, %v836_v18, %v829_v24 }
 0x245   : > { %v856_v32 = vsel %vm783_vm4, %v855_v26, %v848_v25  ;;  %v841_v39 = vperm.slane %v837_v31, %v3230_v14  ;;  %v748_v10 = vadd.f32 %v3221_v45, %v580_v9 }
 0x246   : > { %v955_v27 = vsel %vm783_vm4, %v954_v22, %v947_v21  ;;  %v973_v29 = vrot.slane %v972_v23, 4  ;;  %v860_v36 = vperm.slane %v856_v32, %v3230_v14 }
 0x247   : > { %v959_v30 = vperm.slane %v955_v27, %v3230_v14  ;;  %v842_v51 = vrot.slane %v841_v39, 4  ;;  %v866_v0 = vshrl.u32 %v841_v39, 16  ;;  %v752_v13 = vpack.c.bf16 %v748_v10, %v748_v10 }
 0x248   : > { %v974_v33 = vsel %vm783_vm4, %v973_v29, %v966_v28  ;;  %v861_v47 = vrot.slane %v860_v36, 4  ;;  %v865_v57 = vpack.i.b16 %v860_v36, %v841_v39  ;;  %v867_v63 = vshrl.u32 %v860_v36, 16 }
 0x249   : > { %v978_v34 = vperm.slane %v974_v33, %v3230_v14  ;;  %v960_v35 = vrot.slane %v959_v30, 4  ;;  %v984_v37 = vshrl.u32 %v959_v30, 16  ;;  %v843_v58 = vsel %vm783_vm4, 0, %v842_v51 }
 0x24a   : > { %v862_v54 = vsel %vm783_vm4, 0, %v861_v47  ;;  %v872_v61 = vshrl.u32 %v843_v58, 16  ;;  %v868_v1 = vpack.i.b16 %v867_v63, %v866_v0 }
 0x24b   : > { %v983_v40 = vpack.i.b16 %v978_v34, %v959_v30  ;;  %v985_v19 = vshrl.u32 %v978_v34, 16  ;;  %v961_v41 = vsel %vm783_vm4, 0, %v960_v35  ;;  %v979_v42 = vrot.slane %v978_v34, 4 }
 0x24c   : > { %v990_v48 = vshrl.u32 %v961_v41, 16  ;;  %v873_v59 = vshrl.u32 %v862_v54, 16  ;;  %v871_v2 = vpack.i.b16 %v862_v54, %v843_v58 }
 0x24d   : > { %v1119_v43 = vsel %vm1114_vm5, %v983_v40, 0  ;;  %v986_v44 = vpack.i.b16 %v985_v19, %v984_v37  ;;  %v980_v46 = vsel %vm783_vm4, 0, %v979_v42 }
 0x24e   : > { %1128 = vmatpush.bf16.xpose.msra.mxu3 %v1119_v43  ;;  %v991_v49 = vshrl.u32 %v980_v46, 16  ;;  %v989_v53 = vpack.i.b16 %v980_v46, %v961_v41  ;;  %v874_v62 = vpack.i.b16 %v873_v59, %v872_v61  ;;  %v1003_v41 = vshrl.u32 %v752_v13, 16 }
 0x24f   : > { %v1138_v50 = vsel %vm1114_vm5, %v986_v44, 0 }
 0x250   : > { %v992_v52 = vpack.i.b16 %v991_v49, %v990_v48  ;;  %v1157_v60 = vsel %vm1114_vm5, %v989_v53, 0 }
 0x252   : > { %v1176_v55 = vsel %vm1114_vm5, %v992_v52, 0 }
 0x253   : > { %1185 = vmatpush.bf16.xpose.msrb.mxu0 %v1176_v55 }
 0x255   : > { %2399 = vmatmul.msk.bf16.vlgmr.msra.gmra.mxu3 %vm1114_vm5, %v865_v57 }
 0x256   : > { %1147 = vmatpush.bf16.xpose.msrb.mxu3 %v1138_v50 }
 0x25a   : > { %2402 = vmatmul.msk.bf16.vlgmr.msrb.gmra.mxu0 %vm1114_vm5, %v874_v62 }
 0x25e   : > { %1166 = vmatpush.bf16.xpose.msra.mxu3 %v1157_v60 }
 0x265   : > { %2400 = vmatmul.msk.bf16.vlgmr.msrb.gmra.mxu3 %vm1114_vm5, %v868_v1 }
 0x275   : > { %2401 = vmatmul.msk.bf16.vlgmr.msra.gmra.mxu3 %vm1114_vm5, %v871_v2 }
 0x2d7   : > { %v1187_v3 = vpop.f32.mrf.mxu0 }
 0x2d8   : > { %v1130_v4 = vpop.f32.mrf.mxu3  ;;  %v1201_v5 = vsel %vm1191_vm6, %v1187_v3, -inf }
 0x2d9   : > { %1202 = vmax.xlane.f32.xlu0 %v1201_v5  ;;  %v1192_v6 = vsel %vm1191_vm6, %v1130_v4, -inf }
 0x2da   : > { %1193 = vmax.xlane.f32.xlu2 %v1192_v6 }
 0x2df   : > { %v1189_v7 = vpop.f32.mrf.mxu0 }
 0x2e0   : > { %v1132_v8 = vpop.f32.mrf.mxu3 }
 0x2e8   : > { %v1149_v11 = vpop.f32.mrf.mxu3 }
 0x2e9   : > { %v1195_v12 = vsel %vm1191_vm6, %v1149_v11, -inf }
 0x2ea   : > { %1196 = vmax.xlane.f32.xlu1 %v1195_v12 }
 0x2ed   : > { %994 = vrot.lane.b32.xlu0 %v752_v13, %s3052_s27 }
 0x2f0   : > { %v1151_v15 = vpop.f32.mrf.mxu3 }
 0x2f2   : > { %996 = vrot.lane.b32.xlu2 %v752_v13, %s3053_s14 }
 0x2f8   : > { %v1168_v17 = vpop.f32.mrf.mxu3 }
 0x2f9   : > { %v1198_v20 = vsel %vm1191_vm6, %v1168_v17, -inf }
 0x300   : > { %v1170_v18 = vpop.f32.mrf.mxu3 }
 0x317   : > { %1199 = vmax.xlane.f32.xlu0 %v1198_v20 }
 0x32b   : > { %998 = vrot.lane.b32.xlu0 %v752_v13, %s3051_s26 }
 0x34c   : > { %v1203_v38 = vpop.xlane.xlu0 %1202 }
 0x34d   : > { %v1207_v21 = vsub.f32 %v1187_v3, %v1203_v38  ;;  %v1194_v45 = vpop.xlane.xlu2 %1193 }
 0x34e   : > { %v1204_v22 = vsub.f32 %v1130_v4, %v1194_v45 }
 0x34f   : > { %v1214_v23 = vmul.f32 1.442695, %v1207_v21 }
 0x350   : > { %v1208_v24 = vmul.f32 1.442695, %v1204_v22 }
 0x351   : > { %2865 = vpow2.f32 %v1214_v23 }
 0x352   : > { %2867 = vpow2.f32 %v1208_v24 }
 0x355   : > { %v997_v44 = vpop.permute.xlu2 %996 }
 0x356   : > { %v1009_v48 = vshrl.u32 %v997_v44, 16 }
 0x357   : > { %v3305_v25 = vpop.eup %2865 }
 0x358   : > { %v3307_v26 = vpop.eup %2867  ;;  %v1225_v27 = vsel %vm1191_vm6, %v3305_v25, 0.0 }
 0x359   : > { %1226 = vadd.xlane.f32.xlu2 %v1225_v27  ;;  %v1216_v28 = vsel %vm1191_vm6, %v3307_v26, 0.0 }
 0x35a   : > { %1217 = vadd.xlane.f32.xlu1 %v1216_v28 }
 0x35d   : > { %v1197_v29 = vpop.xlane.xlu1 %1196 }
 0x35e   : > { %v1205_v30 = vsub.f32 %v1149_v11, %v1197_v29 }
 0x35f   : > { %v995_v34 = vpop.permute.xlu0 %994 }
 0x360   : > { %v1210_v31 = vmul.f32 1.442695, %v1205_v30  ;;  %v1004_v40 = vshrl.u32 %v995_v34, 16  ;;  %v1002_v42 = vpack.i.b16 %v995_v34, %v752_v13 }
 0x362   : > { %2869 = vpow2.f32 %v1210_v31  ;;  %v1005_v43 = vpack.i.b16 %v1004_v40, %v1003_v41  ;;  %v1016_v46 = vperm.slane %v1002_v42, %v3224_v56 }
 0x364   : > { %v1042_v49 = vperm.slane %v1005_v43, %v3224_v56  ;;  %v1024_v52 = vrot.slane %v1016_v46, 4 }
 0x366   : > { %v1050_v55 = vrot.slane %v1042_v49, 4 }
 0x368   : > { %v3313_v32 = vpop.eup %2869 }
 0x369   : > { %v1219_v33 = vsel %vm1191_vm6, %v3313_v32, 0.0 }
 0x36a   : > { %1220 = vadd.xlane.f32.xlu1 %v1219_v33 }
 0x38a   : > { %v1200_v35 = vpop.xlane.xlu0 %1199 }
 0x38b   : > { %v1206_v36 = vsub.f32 %v1168_v17, %v1200_v35 }
 0x38d   : > { %v1212_v37 = vmul.f32 1.442695, %v1206_v36 }
 0x38f   : > { %2871 = vpow2.f32 %v1212_v37 }
 0x395   : > { %v3317_v39 = vpop.eup %2871 }
 0x396   : > { %v1222_v19 = vsel %vm1191_vm6, %v3317_v39, 0.0 }
 0x397   : > { %1223 = vadd.xlane.f32.xlu0 %v1222_v19 }
 0x39d   : > { %v999_v47 = vpop.permute.xlu0 %998 }
 0x39e   : > { %v1008_v50 = vpack.i.b16 %v999_v47, %v997_v44  ;;  %v1010_v51 = vshrl.u32 %v999_v47, 16 }
 0x3a0   : > { %v1011_v53 = vpack.i.b16 %v1010_v51, %v1009_v48  ;;  %v1021_v54 = vperm.slane %v1008_v50, %v3224_v56 }
 0x3a2   : > { %v1022_v57 = vrot.slane %v1021_v54, 4  ;;  %v1025_v58 = vsel %vm783_vm4, %v1021_v54, %v1024_v52  ;;  %v1047_v59 = vperm.slane %v1011_v53, %v3224_v56 }
 0x3a3   : > { %v1033_v60 = vperm.slane %v1025_v58, %v3230_v14 }
 0x3a4   : > { %v1023_v61 = vsel %vm783_vm4, %v1022_v57, %v1016_v46  ;;  %v1048_v62 = vrot.slane %v1047_v59, 4  ;;  %v1051_v63 = vsel %vm783_vm4, %v1047_v59, %v1050_v55 }
 0x3a5   : > { %v1029_v0 = vperm.slane %v1023_v61, %v3230_v14  ;;  %v1036_v1 = vrot.slane %v1033_v60, 4  ;;  %v1059_v2 = vperm.slane %v1051_v63, %v3230_v14 }
 0x3a6   : > { %v1049_v3 = vsel %vm783_vm4, %v1048_v62, %v1042_v49 }
 0x3a7   : > { %v1034_v4 = vrot.slane %v1029_v0, 4  ;;  %v1037_v5 = vsel %vm783_vm4, 0, %v1036_v1  ;;  %v1055_v6 = vperm.slane %v1049_v3, %v3230_v14  ;;  %v1062_v7 = vrot.slane %v1059_v2, 4 }
 0x3a8   : > { %v1069_v8 = vrot.slane %v1037_v5, 4  ;;  %v1064_v13 = vsel %vm783_vm4, %v1036_v1, %v1029_v0 }
 0x3a9   : > { %v1035_v9 = vsel %vm783_vm4, 0, %v1034_v4  ;;  %v1060_v10 = vrot.slane %v1055_v6, 4  ;;  %v1063_v11 = vsel %vm783_vm4, 0, %v1062_v7  ;;  %v1083_v20 = vsel %vm783_vm4, %v1062_v7, %v1055_v6 }
 0x3aa   : > { %v1088_v12 = vrot.slane %v1063_v11, 4  ;;  %v1070_v15 = vsel %vm783_vm4, %v1069_v8, %v1035_v9  ;;  %v1068_v21 = vperm.slane %v1064_v13, %v3224_v56  ;;  %v1087_v24 = vperm.slane %v1083_v20, %v3224_v56 }
 0x3ab   : > { %v1061_v17 = vsel %vm783_vm4, 0, %v1060_v10  ;;  %v1074_v18 = vperm.slane %v1070_v15, %v3224_v56 }
 0x3ac   : > { %v1089_v38 = vsel %vm783_vm4, %v1088_v12, %v1061_v17 }
 0x3ad   : > { %v1075_v45 = vrot.slane %v1074_v18, 4  ;;  %v1093_v22 = vperm.slane %v1089_v38, %v3224_v56  ;;  %v2728_v38 = vld [vmem:[#allocation4 + $0x38] sm:$0xff] }
 0x3ae   : > { %1510 = vmatpush.bf16.msrb.mxu1 %v2728_v38 }
 0x3af   : > { %v1076_v23 = vsel %vm783_vm4, %v1075_v45, %v1068_v21  ;;  %v1094_v27 = vrot.slane %v1093_v22, 4 }
 0x3b0   : > { %v1080_v28 = vperm.slane %v1076_v23, %v3230_v14 }
 0x3b1   : > { %v1095_v29 = vsel %vm783_vm4, %v1094_v27, %v1087_v24  ;;  %v2727_v27 = vld [vmem:[#allocation4 + $0x30] sm:$0xff] }
 0x3b2   : > { %v1099_v30 = vperm.slane %v1095_v29, %v3230_v14  ;;  %v1081_v31 = vrot.slane %v1080_v28, 4  ;;  %v1105_v33 = vshrl.u32 %v1080_v28, 16  ;;  %1511 = vmatpush.bf16.msrb.mxu1 %v2727_v27 }
 0x3b4   : > { %v1104_v34 = vpack.i.b16 %v1099_v30, %v1080_v28  ;;  %v1106_v35 = vshrl.u32 %v1099_v30, 16  ;;  %v1082_v36 = vsel %vm783_vm4, 0, %v1081_v31  ;;  %v1100_v37 = vrot.slane %v1099_v30, 4 }
 0x3b5   : > { %v1111_v43 = vshrl.u32 %v1082_v36, 16 }
 0x3b6   : > { %v1245_v40 = vsel %vm1243_vm7, %v1104_v34, 0  ;;  %v1107_v19 = vpack.i.b16 %v1106_v35, %v1105_v33  ;;  %v1101_v41 = vsel %vm783_vm4, 0, %v1100_v37 }
 0x3b7   : > { %1254 = vmatpush.bf16.msrb.mxu2 %v1245_v40  ;;  %v1110_v42 = vpack.i.b16 %v1101_v41, %v1082_v36  ;;  %v1112_v44 = vshrl.u32 %v1101_v41, 16 }
 0x3b8   : > { %v1264_v46 = vsel %vm1243_vm7, %v1107_v19, 0  ;;  %v2726_v19 = vld [vmem:[#allocation4 + $0x28] sm:$0xff] }
 0x3b9   : > { %v1283_v47 = vsel %vm1243_vm7, %v1110_v42, 0  ;;  %v1113_v48 = vpack.i.b16 %v1112_v44, %v1111_v43  ;;  %1512 = vmatpush.bf16.msrb.mxu1 %v2726_v19 }
 0x3ba   : > { %1292 = vmatpush.bf16.msrb.mxu3 %v1283_v47 }
 0x3bb   : > { %1273 = vmatpush.bf16.msra.mxu2 %v1264_v46  ;;  %v1302_v49 = vsel %vm1243_vm7, %v1113_v48, 0 }
 0x3bc   : > { %1311 = vmatpush.bf16.msra.mxu0 %v1302_v49 }
 0x3cc   : > { %v1227_v50 = vpop.xlane.xlu2 %1226 }
 0x3cd   : > { %2873 = vrcp.f32 %v1227_v50  ;;  %v1218_v51 = vpop.xlane.xlu1 %1217 }
 0x3ce   : > { %2875 = vrcp.f32 %v1218_v51  ;;  %v2725_v51 = vld [vmem:[#allocation4 + $0x20] sm:$0xff] }
 0x3cf   : > { %1513 = vmatpush.bf16.msrb.mxu1 %v2725_v51  ;;  %v2753_v51 = vld [vmem:[#allocation6 + $0xc4] sm:$0xf] }
 0x3d3   : > { %v2874_v52 = vpop.eup %2873 }
 0x3d4   : > { %v2876_v53 = vpop.eup %2875  ;;  %v1235_v54 = vmul.f32 %v2874_v52, %v3305_v25 }
 0x3d5   : > { %v1232_v55 = vmul.f32 %v2876_v53, %v3307_v26 }
 0x3d6   : > { %v1239_v57 = vpack.c.bf16 %v1235_v54, %v1235_v54 }
 0x3d7   : > { %v1236_v58 = vpack.c.bf16 %v1232_v55, %v1232_v55 }
 0x3d8   : > { %2406 = vmatmul.msk.bf16.vlgmr.msra.gmra.mxu0 %vm1191_vm6, %v1239_v57 }
 0x3d9   : > { %2403 = vmatmul.msk.bf16.vlgmr.msrb.gmra.mxu2 %vm1191_vm6, %v1236_v58 }
 0x3dd   : > { %v1221_v59 = vpop.xlane.xlu1 %1220 }
 0x3de   : > { %2877 = vrcp.f32 %v1221_v59 }
 0x3e4   : > { %v2878_v60 = vpop.eup %2877 }
 0x3e5   : > { %v1233_v61 = vmul.f32 %v2878_v60, %v3313_v32 }
 0x3e7   : > { %v1237_v62 = vpack.c.bf16 %v1233_v61, %v1233_v61 }
 0x3e9   : > { %2404 = vmatmul.msk.bf16.vlgmr.msra.gmra.mxu2 %vm1191_vm6, %v1237_v62 }
 0x40a   : > { %v1224_v63 = vpop.xlane.xlu0 %1223 }
 0x40b   : > { %2879 = vrcp.f32 %v1224_v63  ;;  %v2724_v63 = vld [vmem:[#allocation4 + $0x18] sm:$0xff] }
 0x40c   : > { %1514 = vmatpush.bf16.msrb.mxu1 %v2724_v63  ;;  %v2751_v63 = vld [vmem:[#allocation6 + $0xac] sm:$0xf0] }
 0x411   : > { %v2880_v0 = vpop.eup %2879 }
 0x412   : > { %v1234_v25 = vmul.f32 %v2880_v0, %v3317_v39 }
 0x414   : > { %v1238_v26 = vpack.c.bf16 %v1234_v25, %v1234_v25 }
 0x416   : > { %2405 = vmatmul.msk.bf16.vlgmr.msrb.gmra.mxu3 %vm1191_vm6, %v1238_v26 }
 0x455   : > { %v1313_v1 = vpop.f32.mrf.mxu0 }
 0x456   : > { %v1330_v8 = vrot.slane %v1313_v1, 4 }
 0x45c   : > { %v1256_v2 = vpop.f32.mrf.mxu2 }
 0x45d   : > { %v1315_v3 = vpop.f32.mrf.mxu0  ;;  %v1320_v11 = vrot.slane %v1256_v2, 4 }
 0x464   : > { %v1258_v4 = vpop.f32.mrf.mxu2 }
 0x46c   : > { %v1275_v5 = vpop.f32.mrf.mxu2 }
 0x46d   : > { %v1332_v7 = vrot.slane %v1275_v5, 4  ;;  %v1331_v9 = vsel %vm783_vm4, %v1330_v8, %v1275_v5 }
 0x46e   : > { %v1337_v39 = vperm.slane %v1331_v9, %v3224_v56 }
 0x46f   : > { %v1333_v32 = vsel %vm783_vm4, %v1313_v1, %v1332_v7 }
 0x470   : > { %v1341_v10 = vperm.slane %v1333_v32, %v3224_v56  ;;  %v1342_v21 = vrot.slane %v1337_v39, 4 }
 0x472   : > { %v1354_v17 = vrot.slane %v1341_v10, 4 }
 0x474   : > { %v1277_v6 = vpop.f32.mrf.mxu2 }
 0x499   : > { %v1294_v12 = vpop.f32.mrf.mxu3 }
 0x49a   : > { %v1317_v13 = vrot.slane %v1294_v12, 4  ;;  %v1321_v15 = vsel %vm783_vm4, %v1294_v12, %v1320_v11  ;;  %v2723_v12 = vld [vmem:[#allocation4 + $0x10] sm:$0xff] }
 0x49b   : > { %v1329_v18 = vperm.slane %v1321_v15, %v3224_v56  ;;  %1515 = vmatpush.bf16.msrb.mxu1 %v2723_v12 }
 0x49c   : > { %v1319_v20 = vsel %vm783_vm4, %v1317_v13, %v1256_v2  ;;  %v2721_v13 = vld [vmem:[#allocation4] sm:$0xff] }
 0x49d   : > { %v1325_v45 = vperm.slane %v1319_v20, %v3224_v56  ;;  %v1355_v22 = vsel %vm783_vm4, %v1354_v17, %v1329_v18  ;;  %v1356_v23 = vrot.slane %v1329_v18, 4 }
 0x49e   : > { %v1361_v24 = vperm.slane %v1355_v22, %v3230_v14  ;;  %v2857_v22 = vld [vmem:[%s3473_s6] ss:$0 sm:$0xff] }
 0x49f   : > { %v1343_v28 = vsel %vm783_vm4, %v1342_v21, %v1325_v45  ;;  %v1344_v29 = vrot.slane %v1325_v45, 4  ;;  %v1357_v30 = vsel %vm783_vm4, %v1341_v10, %v1356_v23 }
 0x4a0   : > { %v1349_v31 = vperm.slane %v1343_v28, %v3230_v14  ;;  %v1365_v33 = vperm.slane %v1357_v30, %v3230_v14  ;;  %v1370_v37 = vrot.slane %v1361_v24, 4  ;;  %v2553_v30 = vld [vmem:[#allocation6 + $0xe0] sm:$0xf] }
 0x4a1   : > { %v1345_v34 = vsel %vm783_vm4, %v1337_v39, %v1344_v29  ;;  %v1296_v35 = vpop.f32.mrf.mxu3 }
 0x4a2   : > { %v1353_v36 = vperm.slane %v1345_v34, %v3230_v14  ;;  %v1372_v40 = vrot.slane %v1365_v33, 4  ;;  %v1366_v41 = vrot.slane %v1349_v31, 4  ;;  %v1371_v49 = vsel %vm783_vm4, 0.0, %v1370_v37  ;;  %v2757_v33 = vld [vmem:[#allocation6 + $0xe4] sm:$0xf] }
 0x4a3   : > { %v2555_v35 = vld [vmem:[#allocation6 + $0xf0] sm:$0xf0]  ;;  %v2760_v37 = vld [vmem:[#allocation6 + $0xf4] sm:$0xf0] }
 0x4a4   : > { %v1368_v42 = vrot.slane %v1353_v36, 4  ;;  %v1373_v43 = vsel %vm783_vm4, 0.0, %v1372_v40  ;;  %v1385_v44 = vsel %vm783_vm4, %v1372_v40, %v1361_v24  ;;  %v1367_v55 = vsel %vm783_vm4, 0.0, %v1366_v41  ;;  %v2899_v24 = vld [vmem:[%s3194_s25] sm:$0xff]  ;;  %v2561_v36 = vld [vmem:[#allocation6 + $0xe8] sm:$0xf] }
 0x4a5   : > { %v1390_v46 = vrot.slane %v1373_v43, 4  ;;  %v1389_v47 = vperm.slane %v1385_v44, %v3224_v56  ;;  %v2558_v40 = vor.u32 %v2757_v33, %v2555_v35  ;;  %v2562_v19 = vor.u32 %v2760_v37, %v2561_v36  ;;  %v2758_v41 = vld [vmem:[#allocation6 + $0xec] sm:$0xf]  ;;  %v2473_v33 = vld [vmem:[#allocation6 + $0x40] sm:$0xf] }
 0x4a6   : > { %v1369_v48 = vsel %vm783_vm4, 0.0, %v1368_v42  ;;  %v1374_v50 = vsel %vm783_vm4, %v1368_v42, %v1349_v31  ;;  %v2759_v31 = vld [vmem:[#allocation6 + $0xec] sm:$0xf0]  ;;  %v2563_v42 = vld [vmem:[#allocation6 + $0xf8] sm:$0xf0] }
 0x4a7   : > { %v1379_v52 = vrot.slane %v1369_v48, 4  ;;  %v1378_v53 = vperm.slane %v1374_v50, %v3224_v56  ;;  %v1391_v54 = vsel %vm783_vm4, %v1390_v46, %v1371_v49  ;;  %v1410_v58 = vrot.slane %v1389_v47, 4  ;;  %1775 = vmatpush.bf16.msra.mxu3 %v2558_v40  ;;  %1788 = vmatpush.bf16.msrb.mxu0 %v2562_v19  ;;  %v2537_v49 = vld [vmem:[#allocation6 + $0xc0] sm:$0xf]  ;;  %v2755_v50 = vld [vmem:[#allocation6 + $0xcc] sm:$0xf0] }
 0x4a8   : > { %v1395_v57 = vperm.slane %v1391_v54, %v3224_v56  ;;  %v2554_v34 = vor.u32 %v2759_v31, %v2553_v30  ;;  %v2566_v43 = vor.u32 %v2758_v41, %v2563_v42  ;;  %v2545_v54 = vld [vmem:[#allocation6 + $0xc8] sm:$0xf]  ;;  %v2499_v30 = vld [vmem:[#allocation6 + $0x78] sm:$0xf0]  ;;  %v2737_v35 = vld [vmem:[#allocation6 + $0x44] sm:$0xf] }
 0x4a9   : > { %v1380_v59 = vsel %vm783_vm4, %v1379_v52, %v1367_v55  ;;  %v1398_v60 = vrot.slane %v1378_v53, 4  ;;  %v2538_v52 = vor.u32 %v2755_v50, %v2537_v49  ;;  %v2756_v55 = vld [vmem:[#allocation6 + $0xd4] sm:$0xf0]  ;;  %v2475_v37 = vld [vmem:[#allocation6 + $0x50] sm:$0xf0] }
 0x4aa   : > { %v1384_v61 = vperm.slane %v1380_v59, %v3224_v56  ;;  %v1408_v62 = vrot.slane %v1395_v57, 4  ;;  %v1411_v25 = vsel %vm783_vm4, %v1395_v57, %v1410_v58  ;;  %1762 = vmatpush.bf16.msrb.mxu2 %v2554_v34  ;;  %v2546_v58 = vor.u32 %v2756_v55, %v2545_v54  ;;  %v2754_v59 = vld [vmem:[#allocation6 + $0xcc] sm:$0xf]  ;;  %v2739_v34 = vld [vmem:[#allocation6 + $0x4c] sm:$0xf0] }
 0x4ab   : > { %v1419_v5 = vperm.slane %v1411_v25, %v3230_v14  ;;  %v2474_v36 = vor.u32 %v2739_v34, %v2473_v33  ;;  %v2481_v40 = vld [vmem:[#allocation6 + $0x48] sm:$0xf]  ;;  %v2740_v19 = vld [vmem:[#allocation6 + $0x54] sm:$0xf0]  ;;  %v2478_v41 = vor.u32 %v2737_v35, %v2475_v37  ;;  %v2735_v49 = vld [vmem:[#allocation6 + $0x2c] sm:$0xf0] }
 0x4ac   : > { %v1399_v0 = vsel %vm783_vm4, %v1384_v61, %v1398_v60  ;;  %v1396_v26 = vrot.slane %v1384_v61, 4  ;;  %v1409_v1 = vsel %vm783_vm4, %v1408_v62, %v1389_v47  ;;  %v2547_v60 = vld [vmem:[#allocation6 + $0xd8] sm:$0xf0]  ;;  %1789 = vmatpush.bf16.msrb.mxu0 %v2546_v58  ;;  %v2521_v62 = vld [vmem:[#allocation6 + $0xa0] sm:$0xf]  ;;  %v2482_v42 = vor.u32 %v2740_v19, %v2481_v40  ;;  %v2767_v33 = vld [vmem:[#allocation7 + $0x30] sm:$0xff] }
 0x4ad   : > { %v1407_v2 = vperm.slane %v1399_v0, %v3230_v14  ;;  %v1415_v3 = vperm.slane %v1409_v1, %v3230_v14  ;;  %v1424_v11 = vrot.slane %v1419_v5, 4  ;;  %v2550_v61 = vor.u32 %v2754_v59, %v2547_v60  ;;  %v2749_v0 = vld [vmem:[#allocation6 + $0xa4] sm:$0xf]  ;;  %v2529_v1 = vld [vmem:[#allocation6 + $0xa8] sm:$0xf]  ;;  %v2775_v34 = vld [vmem:[#allocation7 + $0x70] sm:$0xff] }
 0x4ae   : > { %v1397_v4 = vsel %vm783_vm4, %v1396_v26, %v1378_v53  ;;  %v2539_v53 = vld [vmem:[#allocation6 + $0xd0] sm:$0xf0]  ;;  %1763 = vmatpush.bf16.msrb.mxu2 %v2538_v52  ;;  %v2522_v25 = vor.u32 %v2751_v63, %v2521_v62  ;;  %v2733_v50 = vld [vmem:[#allocation6 + $0x24] sm:$0xf]  ;;  %v2736_v54 = vld [vmem:[#allocation6 + $0x34] sm:$0xf0] }
 0x4af   : > { %v1426_v56 = vrot.slane %v1407_v2, 4  ;;  %v1403_v6 = vperm.slane %v1397_v4, %v3230_v14  ;;  %v1420_v7 = vrot.slane %v1415_v3, 4  ;;  %v1425_v39 = vsel %vm783_vm4, %v1424_v11, %v1407_v2  ;;  %v2722_v14 = vld [vmem:[#allocation4 + $0x8] sm:$0xff]  ;;  %v2523_v26 = vld [vmem:[#allocation6 + $0xb0] sm:$0xf0]  ;;  %v2781_v37 = vld [vmem:[#allocation7 + $0xa0] sm:$0xff] }
 0x4b0   : > { %1516 = vmatpush.bf16.msrb.mxu1 %v2722_v14  ;;  %v2542_v57 = vor.u32 %v2753_v51, %v2539_v53  ;;  %v2752_v2 = vld [vmem:[#allocation6 + $0xb4] sm:$0xf0]  ;;  %v2513_v11 = vld [vmem:[#allocation6 + $0x88] sm:$0xf]  ;;  %v2459_v52 = vld [vmem:[#allocation6 + $0x30] sm:$0xf0] }
 0x4b1   : > { %v1427_v8 = vsel %vm783_vm4, %v1419_v5, %v1426_v56  ;;  %v1422_v32 = vrot.slane %v1403_v6, 4  ;;  %v1421_v9 = vsel %vm783_vm4, %v1420_v7, %v1403_v6  ;;  %v2530_v4 = vor.u32 %v2752_v2, %v2529_v1  ;;  %v2750_v5 = vld [vmem:[#allocation6 + $0xac] sm:$0xf]  ;;  %v2531_v56 = vld [vmem:[#allocation6 + $0xb8] sm:$0xf0]  ;;  %v2789_v40 = vld [vmem:[#allocation7 + $0xe0] sm:$0xff] }
 0x4b2   : > { %1437 = vrot.lane.b32.xlu0 %v1427_v8, %s3052_s27  ;;  %1776 = vmatpush.bf16.msra.mxu3 %v2542_v57  ;;  %v2534_v6 = vor.u32 %v2750_v5, %v2531_v56  ;;  %v2505_v7 = vld [vmem:[#allocation6 + $0x80] sm:$0xf]  ;;  %v2747_v8 = vld [vmem:[#allocation6 + $0x8c] sm:$0xf0]  ;;  %v2465_v53 = vld [vmem:[#allocation6 + $0x28] sm:$0xf]  ;;  %v2462_v55 = vor.u32 %v2733_v50, %v2459_v52 }
 0x4b3   : > { %v1423_v10 = vsel %vm783_vm4, %v1415_v3, %v1422_v32  ;;  %v2526_v3 = vor.u32 %v2749_v0, %v2523_v26  ;;  %1764 = vmatpush.bf16.msrb.mxu2 %v2522_v25  ;;  %1790 = vmatpush.bf16.msrb.mxu0 %v2530_v4  ;;  %v2745_v32 = vld [vmem:[#allocation6 + $0x84] sm:$0xf]  ;;  %v2466_v57 = vor.u32 %v2736_v54, %v2465_v53  ;;  %v2734_v58 = vld [vmem:[#allocation6 + $0x2c] sm:$0xf]  ;;  %v2467_v59 = vld [vmem:[#allocation6 + $0x38] sm:$0xf0] }
 0x4b4   : > { %1429 = vrot.lane.b32.xlu1 %v1423_v10, %s3051_s26  ;;  %1517 = vmatpush.bf16.msrb.mxu1 %v2721_v13  ;;  %v2507_v10 = vld [vmem:[#allocation6 + $0x90] sm:$0xf0]  ;;  %v2746_v13 = vld [vmem:[#allocation6 + $0x8c] sm:$0xf]  ;;  %v2441_v60 = vld [vmem:[#allocation6] sm:$0xf] }
 0x4b5   : > { %v2510_v12 = vor.u32 %v2745_v32, %v2507_v10  ;;  %v2731_v62 = vld [vmem:[#allocation6 + $0xc] sm:$0xf0]  ;;  %v2729_v63 = vld [vmem:[#allocation6 + $0x4] sm:$0xf]  ;;  %v2443_v0 = vld [vmem:[#allocation6 + $0x10] sm:$0xf0] }
 0x4b6   : > { %1777 = vmatpush.bf16.msra.mxu3 %v2526_v3  ;;  %v2442_v25 = vor.u32 %v2731_v62, %v2441_v60  ;;  %v2449_v26 = vld [vmem:[#allocation6 + $0x8] sm:$0xf]  ;;  %v2732_v1 = vld [vmem:[#allocation6 + $0x14] sm:$0xf0]  ;;  %v2730_v2 = vld [vmem:[#allocation6 + $0xc] sm:$0xf]  ;;  %v2446_v3 = vor.u32 %v2729_v63, %v2443_v0 }
 0x4b7   : > { %v2450_v4 = vor.u32 %v2732_v1, %v2449_v26  ;;  %v2451_v5 = vld [vmem:[#allocation6 + $0x18] sm:$0xf0]  ;;  %v2787_v26 = vld [vmem:[#allocation7 + $0xd0] sm:$0xff] }
 0x4b8   : > { %1801 = vmatpush.bf16.msra.mxu1 %v2566_v43  ;;  %v2738_v43 = vld [vmem:[#allocation6 + $0x4c] sm:$0xf]  ;;  %v2454_v56 = vor.u32 %v2730_v2, %v2451_v5  ;;  %v2788_v50 = vld [vmem:[#allocation7 + $0xd8] sm:$0xff] }
 0x4b9   : > { %v2772_v5 = vld [vmem:[#allocation7 + $0x58] sm:$0xff] }
 0x4ba   : > { %1778 = vmatpush.bf16.msra.mxu3 %v2510_v12 }
 0x4bc   : > { %1433 = vrot.lane.b32.xlu1 %v1425_v39, %s3053_s14  ;;  %1802 = vmatpush.bf16.msra.mxu1 %v2550_v61  ;;  %v2748_v39 = vld [vmem:[#allocation6 + $0x94] sm:$0xf0]  ;;  %v2470_v61 = vor.u32 %v2734_v58, %v2467_v59  ;;  %v2765_v58 = vld [vmem:[#allocation7 + $0x20] sm:$0xff] }
 0x4bd   : > { %v2514_v14 = vor.u32 %v2748_v39, %v2513_v11  ;;  %v2773_v59 = vld [vmem:[#allocation7 + $0x60] sm:$0xff] }
 0x4bf   : > { %1791 = vmatpush.bf16.msrb.mxu0 %v2514_v14  ;;  %v2858_v14 = vld [vmem:[%s3474_s7] ss:$0 sm:$0xff] }
 0x4c0   : > { %1803 = vmatpush.bf16.msra.mxu1 %v2534_v6 }
 0x524   : > { %v1438_v20 = vpop.permute.xlu0 %1437 }
 0x526   : > { %v1430_v15 = vpop.permute.xlu1 %1429 }
 0x527   : > { %v1440_v17 = vsel %vm1114_vm5, %v1421_v9, %v1430_v15  ;;  %v2506_v9 = vor.u32 %v2747_v8, %v2505_v7  ;;  %v2515_v15 = vld [vmem:[#allocation6 + $0x98] sm:$0xf0] }
 0x529   : > { %1765 = vmatpush.bf16.msrb.mxu2 %v2506_v9 }
 0x52e   : > { %v1434_v18 = vpop.permute.xlu1 %1433 }
 0x52f   : > { %v1442_v38 = vsel %vm1441_vm8, %v1440_v17, %v1434_v18  ;;  %v2518_v17 = vor.u32 %v2746_v13, %v2515_v15  ;;  %v2489_v18 = vld [vmem:[#allocation6 + $0x60] sm:$0xf] }
 0x530   : > { %v1444_v21 = vsel %vm1443_vm9, %v1442_v38, %v1438_v20  ;;  %v2743_v20 = vld [vmem:[#allocation6 + $0x6c] sm:$0xf0]  ;;  %v2741_v38 = vld [vmem:[#allocation6 + $0x64] sm:$0xf] }
 0x531   : > { %v1445_v45 = vpack.c.bf16 %v1444_v21, %v1444_v21  ;;  %1804 = vmatpush.bf16.msra.mxu1 %v2518_v17  ;;  %v2490_v21 = vor.u32 %v2743_v20, %v2489_v18 }
 0x533   : > { %1518 = vmatmul.bf16.vlgmr.msrb.gmra.mxu1 %v1445_v45  ;;  %v2491_v45 = vld [vmem:[#allocation6 + $0x70] sm:$0xf0]  ;;  %1766 = vmatpush.bf16.msrb.mxu2 %v2490_v21  ;;  %v2792_v21 = vld [vmem:[#allocation7 + $0xf8] sm:$0xff] }
 0x537   : > { %1767 = vmatpush.bf16.msrb.mxu2 %v2474_v36 }
 0x5b0   : > { %v1519_v23 = vpop.f32.mrf.mxu1 }
 0x5b1   : > { %v1523_v27 = vadd.f32 %v2899_v24, %v1519_v23  ;;  %v2744_v23 = vld [vmem:[#allocation6 + $0x74] sm:$0xf0]  ;;  %v2494_v24 = vor.u32 %v2741_v38, %v2491_v45  ;;  %v2783_v45 = vld [vmem:[#allocation7 + $0xb0] sm:$0xff] }
 0x5b2   : > { %v2784_v38 = vld [vmem:[#allocation7 + $0xb8] sm:$0xff] }
 0x5b3   : > { %v3411_v28 = vadd.f32 %v2857_v22, %v1523_v27  ;;  %v2497_v22 = vld [vmem:[#allocation6 + $0x68] sm:$0xf]  ;;  %1779 = vmatpush.bf16.msra.mxu3 %v2494_v24  ;;  %v2776_v24 = vld [vmem:[#allocation7 + $0x78] sm:$0xff] }
 0x5b4   : > { %v2498_v27 = vor.u32 %v2744_v23, %v2497_v22  ;;  %v2791_v22 = vld [vmem:[#allocation7 + $0xf0] sm:$0xff]  ;;  %v2768_v23 = vld [vmem:[#allocation7 + $0x38] sm:$0xff] }
 0x5b5   : > { %1531 = vadd.xlane.f32.xlu1 %v3411_v28 }
 0x5b6   : > { %1792 = vmatpush.bf16.msrb.mxu0 %v2498_v27  ;;  %v2782_v27 = vld [vmem:[#allocation7 + $0xa8] sm:$0xff] }
 0x5b7   : > { %1780 = vmatpush.bf16.msra.mxu3 %v2478_v41 }
 0x5b8   : > { %v1521_v29 = vpop.f32.mrf.mxu1 }
 0x5b9   : > { %v2742_v29 = vld [vmem:[#allocation6 + $0x6c] sm:$0xf] }
 0x5ba   : > { %v2502_v31 = vor.u32 %v2742_v29, %v2499_v30  ;;  %1793 = vmatpush.bf16.msrb.mxu0 %v2482_v42  ;;  %v2790_v29 = vld [vmem:[#allocation7 + $0xe8] sm:$0xff] }
 0x5bb   : > { %1781 = vmatpush.bf16.msra.mxu3 %v2462_v55 }
 0x5bc   : > { %1805 = vmatpush.bf16.msra.mxu1 %v2502_v31 }
 0x5be   : > { %1794 = vmatpush.bf16.msrb.mxu0 %v2466_v57 }
 0x5bf   : > { %1782 = vmatpush.bf16.msra.mxu3 %v2446_v3 }
 0x5c2   : > { %1795 = vmatpush.bf16.msrb.mxu0 %v2450_v4  ;;  %v2764_v4 = vld [vmem:[#allocation7 + $0x18] sm:$0xff] }
 0x5c3   : > { %2153 = vmatpush.bf16.msrb.mxu3 %v2776_v24  ;;  %v2761_v24 = vld [vmem:[#allocation7] sm:$0xff] }
 0x5c6   : > { %2166 = vmatpush.bf16.msra.mxu0 %v2784_v38 }
 0x5c7   : > { %2154 = vmatpush.bf16.msrb.mxu3 %v2775_v34 }
 0x5ca   : > { %2167 = vmatpush.bf16.msra.mxu0 %v2783_v45  ;;  %v2762_v45 = vld [vmem:[#allocation7 + $0x8] sm:$0xff] }
 0x5ce   : > { %2168 = vmatpush.bf16.msra.mxu0 %v2782_v27  ;;  %v2769_v27 = vld [vmem:[#allocation7 + $0x40] sm:$0xff] }
 0x5d2   : > { %2169 = vmatpush.bf16.msra.mxu0 %v2781_v37 }
 0x628   : > { %v1532_v44 = vpop.xlane.xlu1 %1531 }
 0x629   : > { %v1533_v46 = vmul.f32 %v1532_v44, %v3197_v16  ;;  %v2483_v44 = vld [vmem:[#allocation6 + $0x58] sm:$0xf0] }
 0x62b   : > { %v3416_v47 = vsub.f32 %v3411_v28, %v1533_v46  ;;  %v2486_v46 = vor.u32 %v2738_v43, %v2483_v44  ;;  %v2766_v44 = vld [vmem:[#allocation7 + $0x28] sm:$0xff] }
 0x62d   : > { %v1535_v48 = vmul.f32 %v3416_v47, %v3416_v47  ;;  %1806 = vmatpush.bf16.msra.mxu1 %v2486_v46  ;;  %v2774_v46 = vld [vmem:[#allocation7 + $0x68] sm:$0xff] }
 0x62e   : > { %2155 = vmatpush.bf16.msrb.mxu3 %v2774_v46 }
 0x62f   : > { %1536 = vadd.xlane.f32.xlu2 %v1535_v48  ;;  %v2457_v48 = vld [vmem:[#allocation6 + $0x20] sm:$0xf] }
 0x630   : > { %v2458_v51 = vor.u32 %v2735_v49, %v2457_v48  ;;  %v2780_v49 = vld [vmem:[#allocation7 + $0x98] sm:$0xff] }
 0x631   : > { %1807 = vmatpush.bf16.msra.mxu1 %v2470_v61  ;;  %2170 = vmatpush.bf16.msra.mxu0 %v2780_v49 }
 0x632   : > { %1768 = vmatpush.bf16.msrb.mxu2 %v2458_v51  ;;  %2156 = vmatpush.bf16.msrb.mxu3 %v2773_v59 }
 0x635   : > { %1808 = vmatpush.bf16.msra.mxu1 %v2454_v56 }
 0x636   : > { %1769 = vmatpush.bf16.msrb.mxu2 %v2442_v25  ;;  %v2779_v25 = vld [vmem:[#allocation7 + $0x90] sm:$0xff]  ;;  %2157 = vmatpush.bf16.msrb.mxu3 %v2772_v5 }
 0x637   : > { %2171 = vmatpush.bf16.msra.mxu0 %v2779_v25 }
 0x639   : > { %2179 = vmatpush.bf16.msrb.mxu1 %v2792_v21 }
 0x63a   : > { %2140 = vmatpush.bf16.msra.mxu2 %v2768_v23 }
 0x63d   : > { %2180 = vmatpush.bf16.msrb.mxu1 %v2791_v22  ;;  %v2770_v22 = vld [vmem:[#allocation7 + $0x48] sm:$0xff] }
 0x63e   : > { %2141 = vmatpush.bf16.msra.mxu2 %v2767_v33 }
 0x641   : > { %2181 = vmatpush.bf16.msrb.mxu1 %v2790_v29 }
 0x642   : > { %2142 = vmatpush.bf16.msra.mxu2 %v2766_v44 }
 0x645   : > { %2182 = vmatpush.bf16.msrb.mxu1 %v2789_v40 }
 0x646   : > { %2143 = vmatpush.bf16.msra.mxu2 %v2765_v58 }
 0x649   : > { %2183 = vmatpush.bf16.msrb.mxu1 %v2788_v50 }
 0x64a   : > { %2144 = vmatpush.bf16.msra.mxu2 %v2764_v4 }
 0x64d   : > { %2184 = vmatpush.bf16.msrb.mxu1 %v2787_v26 }
 0x6a2   : > { %v1537_v6 = vpop.xlane.xlu2 %1536 }
 0x6a3   : > { %v1538_v7 = vmul.f32 %v1537_v6, %v3197_v16  ;;  %v2859_v16 = vld [vmem:[%s3475_s8] ss:$0 sm:$0xff] }
 0x6a5   : > { %v1539_v8 = vadd.f32 1e-05, %v1538_v7 }
 0x6a7   : > { %2881 = vrsqrt.f32 %v1539_v8  ;;  %vm1546_vm11 = vweird.f32 %v1539_v8 }
 0x6ad   : > { %v2882_v32 = vpop.eup %2881 }
 0x6ae   : > { %v1541_v9 = vmul.f32 %v2882_v32, %v1539_v8  ;;  %vm1547_vm10 = vweird.f32 %v2882_v32  ;;  %v2778_v8 = vld [vmem:[#allocation7 + $0x88] sm:$0xff] }
 0x6af   : > { %vm1548_vm12 = vmor %vm1546_vm11, %vm1547_vm10  ;;  %2172 = vmatpush.bf16.msra.mxu0 %v2778_v8 }
 0x6b0   : > { %v1542_v10 = vmul.f32 %v2882_v32, %v1541_v9 }
 0x6b2   : > { %v1543_v11 = vmul.f32 0.5, %v1542_v10 }
 0x6b4   : > { %v1544_v39 = vsub.f32 1.5, %v1543_v11 }
 0x6b6   : > { %v1545_v12 = vmul.f32 %v2882_v32, %v1544_v39 }
 0x6b8   : > { %v1549_v13 = vsel %vm1548_vm12, %v2882_v32, %v1545_v12  ;;  %v2786_v32 = vld [vmem:[#allocation7 + $0xc8] sm:$0xff] }
 0x6b9   : > { %v1550_v15 = vmul.f32 %v1549_v13, %v3416_v47  ;;  %v1592_v47 = vld [vmem:[%s3477_s10] sm:$0xf]  ;;  %2185 = vmatpush.bf16.msrb.mxu1 %v2786_v32  ;;  %v2771_v13 = vld [vmem:[#allocation7 + $0x50] sm:$0xff] }
 0x6ba   : > { %v1596_v30 = vperm.slane %v1592_v47, 2  ;;  %v1597_v31 = vperm.slane %v1592_v47, 3  ;;  %v1594_v42 = vperm.slane %v1592_v47, 0  ;;  %v1595_v43 = vperm.slane %v1592_v47, 1  ;;  %2158 = vmatpush.bf16.msrb.mxu3 %v2771_v13 }
 0x6bb   : > { %v1554_v17 = vmul.f32 %v2858_v14, %v1550_v15  ;;  %v2763_v14 = vld [vmem:[#allocation7 + $0x10] sm:$0xff] }
 0x6bc   : > { %2145 = vmatpush.bf16.msra.mxu2 %v2763_v14 }
 0x6bd   : > { %v1558_v18 = vadd.f32 %v2859_v16, %v1554_v17 }
 0x6be   : > { %2159 = vmatpush.bf16.msrb.mxu3 %v2770_v22 }
 0x6bf   : > { %v1559_v20 = vpack.c.bf16 %v1558_v18, %v1558_v18  ;;  %v2777_v18 = vld [vmem:[#allocation7 + $0x80] sm:$0xff] }
 0x6c0   : > { %2173 = vmatpush.bf16.msra.mxu0 %v2777_v18  ;;  %2146 = vmatpush.bf16.msra.mxu2 %v2762_v45 }
 0x6c1   : > { %1770 = vmatmul.bf16.vlgmr.msrb.gmra.mxu2 %v1559_v20  ;;  %1783 = vmatmul.bf16.vlgmr.msra.gmra.mxu3 %v1559_v20 }
 0x6c2   : > { %1796 = vmatmul.bf16.vlgmr.msrb.gmra.mxu0 %v1559_v20  ;;  %1809 = vmatmul.bf16.vlgmr.msra.gmra.mxu1 %v1559_v20  ;;  %v2785_v20 = vld [vmem:[#allocation7 + $0xc0] sm:$0xff] }
 0x6c3   : > { %2186 = vmatpush.bf16.msrb.mxu1 %v2785_v20  ;;  %2160 = vmatpush.bf16.msrb.mxu3 %v2769_v27 }
 0x6c4   : > { %2147 = vmatpush.bf16.msra.mxu2 %v2761_v24 }
 0x73f   : > { %v1797_v35 = vpop.f32.mrf.mxu0  ;;  %v1810_v36 = vpop.f32.mrf.mxu1 }
 0x740   : > { %v1798_v19 = vadd.f32 %v1797_v35, %v1596_v30  ;;  %v1811_v41 = vadd.f32 %v1810_v36, %v1597_v31 }
 0x742   : > { %v3431_v48 = vpack.c.bf16 %v1811_v41, %v1798_v19 }
 0x744   : > { %v1818_v51 = vunpack.c.l.bf16 %v3431_v48  ;;  %v1819_v52 = vunpack.c.h.bf16 %v3431_v48  ;;  %v1771_v53 = vpop.f32.mrf.mxu2  ;;  %v1784_v54 = vpop.f32.mrf.mxu3 }
 0x745   : > { %v1772_v55 = vadd.f32 %v1771_v53, %v1594_v42  ;;  %v1785_v57 = vadd.f32 %v1784_v54, %v1595_v43  ;;  %v3056_v54 = vmov 1065369472  }
 0x746   : > { %v1822_v60 = vmul.f32 1.703125, %v1818_v51  ;;  %v1823_v61 = vmul.f32 1.703125, %v1819_v52  ;;  %v1853_v59 = vunpack.c.l.bf16 %v3056_v54 }
 0x747   : > { %v3439_v62 = vpack.c.bf16 %v1785_v57, %v1772_v55  ;;  %v1799_v63 = vpop.f32.mrf.mxu0  ;;  %v1812_v0 = vpop.f32.mrf.mxu1  ;;  %v1852_v55 = vunpack.c.h.bf16 %v3056_v54 }
 0x748   : > { %v1825_v1 = vpack.c.bf16 %v1823_v61, %v1822_v60 }
 0x749   : > { %v1816_v2 = vunpack.c.l.bf16 %v3439_v62  ;;  %v1817_v3 = vunpack.c.h.bf16 %v3439_v62 }
 0x74a   : > { %v1827_v56 = vxor.u32 2147516416, %v1825_v1 }
 0x74b   : > { %v1820_v6 = vmul.f32 1.703125, %v1816_v2  ;;  %v1821_v7 = vmul.f32 1.703125, %v1817_v3 }
 0x74c   : > { %v1830_v9 = vunpack.c.l.bf16 %v1827_v56  ;;  %v1831_v10 = vunpack.c.h.bf16 %v1827_v56  ;;  %v1773_v11 = vpop.f32.mrf.mxu2  ;;  %v1786_v39 = vpop.f32.mrf.mxu3 }
 0x74d   : > { %v1824_v12 = vpack.c.bf16 %v1821_v7, %v1820_v6 }
 0x74e   : > { %v1836_v15 = vmul.f32 1.442695, %v1830_v9  ;;  %v1838_v16 = vmul.f32 1.442695, %v1831_v10 }
 0x74f   : > { %v1826_v17 = vxor.u32 2147516416, %v1824_v12 }
 0x750   : > { %2883 = vpow2.f32 %v1836_v15 }
 0x751   : > { %2885 = vpow2.f32 %v1838_v16  ;;  %v1828_v38 = vunpack.c.l.bf16 %v1826_v17  ;;  %v1829_v21 = vunpack.c.h.bf16 %v1826_v17  ;;  %v2860_v17 = vld [vmem:[%s3479_s12] ss:$0 sm:$0xff] }
 0x753   : > { %v1832_v47 = vmul.f32 1.442695, %v1828_v38  ;;  %v1834_v23 = vmul.f32 1.442695, %v1829_v21 }
 0x755   : > { %2887 = vpow2.f32 %v1832_v47 }
 0x756   : > { %v2884_v29 = vpop.eup %2883  ;;  %2889 = vpow2.f32 %v1834_v23 }
 0x757   : > { %v2886_v30 = vpop.eup %2885 }
 0x758   : > { %v1841_v31 = vpack.c.bf16 %v2886_v30, %v2884_v29 }
 0x75a   : > { %v1844_v33 = vunpack.c.l.bf16 %v1841_v31  ;;  %v1845_v34 = vunpack.c.h.bf16 %v1841_v31 }
 0x75b   : > { %v2888_v35 = vpop.eup %2887 }
 0x75c   : > { %v2890_v36 = vpop.eup %2889  ;;  %v1848_v37 = vadd.f32 1.0, %v1844_v33  ;;  %v1849_v40 = vadd.f32 1.0, %v1845_v34 }
 0x75d   : > { %v1840_v19 = vpack.c.bf16 %v2890_v36, %v2888_v35 }
 0x75e   : > { %v1851_v41 = vpack.c.bf16 %v1849_v40, %v1848_v37 }
 0x75f   : > { %v1842_v42 = vunpack.c.l.bf16 %v1840_v19  ;;  %v1843_v43 = vunpack.c.h.bf16 %v1840_v19 }
 0x760   : > { %v1861_v44 = vunpack.c.h.bf16 %v1851_v41  ;;  %v1862_v46 = vunpack.c.l.bf16 %v1851_v41 }
 0x761   : > { %v1846_v49 = vadd.f32 1.0, %v1842_v42  ;;  %v1847_v50 = vadd.f32 1.0, %v1843_v43 }
 0x762   : > { %2891 = vrcp.f32 %v1861_v44 }
 0x763   : > { %2893 = vrcp.f32 %v1862_v46  ;;  %v1850_v53 = vpack.c.bf16 %v1847_v50, %v1846_v49 }
 0x765   : > { %v1854_v57 = vunpack.c.h.bf16 %v1850_v53  ;;  %v1855_v58 = vunpack.c.l.bf16 %v1850_v53 }
 0x767   : > { %2895 = vrcp.f32 %v1854_v57 }
 0x768   : > { %v2892_v60 = vpop.eup %2891  ;;  %2897 = vrcp.f32 %v1855_v58 }
 0x769   : > { %v2894_v61 = vpop.eup %2893  ;;  %v1864_v63 = vmul.f32 %v2892_v60, %v1852_v55 }
 0x76a   : > { %v1866_v0 = vmul.f32 %v2894_v61, %v1853_v59 }
 0x76c   : > { %v1867_v25 = vpack.c.bf16 %v1864_v63, %v1866_v0 }
 0x76d   : > { %v2896_v26 = vpop.eup %2895 }
 0x76e   : > { %v2898_v1 = vpop.eup %2897  ;;  %v1870_v4 = vunpack.c.l.bf16 %v1867_v25  ;;  %v1871_v5 = vunpack.c.h.bf16 %v1867_v25  ;;  %v1857_v56 = vmul.f32 %v2896_v26, %v1852_v55 }
 0x76f   : > { %v1859_v6 = vmul.f32 %v2898_v1, %v1853_v59 }
 0x770   : > { %v1874_v7 = vmul.f32 %v1870_v4, %v1818_v51  ;;  %v1875_v8 = vmul.f32 %v1871_v5, %v1819_v52 }
 0x771   : > { %v1860_v32 = vpack.c.bf16 %v1857_v56, %v1859_v6 }
 0x772   : > { %v1878_v9 = vpack.c.bf16 %v1874_v7, %v1874_v7  ;;  %v1879_v10 = vpack.c.bf16 %v1875_v8, %v1875_v8 }
 0x773   : > { %v1868_v11 = vunpack.c.l.bf16 %v1860_v32  ;;  %v1869_v39 = vunpack.c.h.bf16 %v1860_v32 }
 0x774   : > { %2174 = vmatmul.bf16.vlgmr.msra.gmra.mxu0 %v1878_v9  ;;  %2187 = vmatmul.bf16.vlgmr.msrb.gmra.mxu1 %v1879_v10 }
 0x775   : > { %v1872_v12 = vmul.f32 %v1868_v11, %v1816_v2  ;;  %v1873_v14 = vmul.f32 %v1869_v39, %v1817_v3 }
 0x777   : > { %v1876_v13 = vpack.c.bf16 %v1872_v12, %v1872_v12  ;;  %v1877_v15 = vpack.c.bf16 %v1873_v14, %v1873_v14 }
 0x779   : > { %2148 = vmatmul.bf16.vlgmr.msra.gmra.mxu2 %v1876_v13  ;;  %2161 = vmatmul.bf16.vlgmr.msrb.gmra.mxu3 %v1877_v15 }
 0x7f1   : > { %v2175_v48 = vpop.f32.mrf.mxu0  ;;  %v2188_v51 = vpop.f32.mrf.mxu1 }
 0x7f9   : > { %v2177_v52 = vpop.f32.mrf.mxu0  ;;  %v2190_v16 = vpop.f32.mrf.mxu1 }
 0x7fc   : > { %v2149_v18 = vpop.f32.mrf.mxu2  ;;  %v2162_v20 = vpop.f32.mrf.mxu3 }
 0x7fd   : > { %v2150_v38 = vadd.f32 %v2860_v17, %v2149_v18 }
 0x7ff   : > { %v2163_v2 = vadd.f32 %v2162_v20, %v2150_v38 }
 0x801   : > { %v2176_v21 = vadd.f32 %v2175_v48, %v2163_v2 }
 0x803   : > { %v2189_v62 = vadd.f32 %v2188_v51, %v2176_v21 }
 0x804   : > { %v2151_v3 = vpop.f32.mrf.mxu2  ;;  %v2164_v45 = vpop.f32.mrf.mxu3 }
 0x805   : > { %v2192_v22 = vadd.f32 %v2189_v62, %v3411_v28 }
 0x807   : > { %2193 = vst [vmem:[%s502_s22] sm:$0xff] %v2192_v22 }
 0x808 PF: > { %s3491_s23 = sld [smem:[#allocation12_spill]] }
 0x80e   : > { %s26_s25 = sadd.s32 1, %s3491_s23  }
 0x80f   : > { %p23_p7 = scmp.ge.s32.totalorder %s26_s25, 4  }
 0x811   :  { %25 = sbr.rel (!%p23_p7) target bundleno = 7 (0x7), region = 119 }
 0x816   :  { %2213 = vsyncpa [#allocation3], 1 }
 0x817   :  { %2215 = vsyncpa [#allocation3 + $0x1], 1 }
 0x818   :  { %2216 = vsyncpa [#allocation5], 1 }
 0x819   :  { %2217 = vsyncpa [#allocation8], 1 }

// kernel: transformer_forward.2
= control target key start
LH: loop header
LB: loop body
LE: loop exit
PB: predicated region body
PF: predicated region fallthrough
CT: control target
= control target key end

     0   :  { %s3467_s0 = inlined_call_operand.vmem [shape: f32[2,8,128], index: 0, kind: input, shape index: {}]   ;;  %s3468_s1 = inlined_call_operand.vmem [shape: f32[1,128], index: 1, kind: input, shape index: {}]   ;;  %s3469_s2 = inlined_call_operand.vmem [shape: f32[1,128], index: 2, kind: input, shape index: {}]   ;;  %s3470_s3 = inlined_call_operand.hbm [shape: bf16[128,384], index: 3, kind: input, shape index: {}]   ;;  %s3471_s4 = inlined_call_operand.vmem [shape: f32[1,384], index: 4, kind: input, shape index: {}]   ;;  %s3472_s5 = inlined_call_operand.hbm [shape: bf16[128,128], index: 5, kind: input, shape index: {}]   ;;  %s3473_s6 = inlined_call_operand.vmem [shape: f32[1,128], index: 6, kind: input, shape index: {}]   ;;  %s3474_s7 = inlined_call_operand.vmem [shape: f32[1,128], index: 7, kind: input, shape index: {}]   ;;  %s3475_s8 = inlined_call_operand.vmem [shape: f32[1,128], index: 8, kind: input, shape index: {}]   ;;  %s3476_s9 = inlined_call_operand.hbm [shape: bf16[128,512], index: 9, kind: input, shape index: {}]   ;;  %s3477_s10 = inlined_call_operand.vmem [shape: f32[1,512], index: 10, kind: input, shape index: {}]   ;;  %s3478_s11 = inlined_call_operand.hbm [shape: bf16[512,128], index: 11, kind: input, shape index: {}]   ;;  %s3479_s12 = inlined_call_operand.vmem [shape: f32[1,128], index: 12, kind: input, shape index: {}]   ;;  %s3480_s13 = inlined_call_operand.vmem [shape: f32[2,8,128], index: 13, kind: output, shape index: {}]  }
   0x1   :  { %3482 = sst [smem:[#allocation13_spill]] %s3470_s3 }
   0x2   :  { %3483 = sst [smem:[#allocation14_spill]] %s3472_s5 }
   0x3   :  { %3484 = sst [smem:[#allocation15_spill]] %s3480_s13 }
   0x4   :  { %18 = vsyncpa [#allocation3], 0 }
   0x5   :  { %19 = vsyncpa [#allocation5], 0 }
   0x6   :  { %20 = vsyncpa [#allocation8], 0  ;;  %s3127_s25 = smov 0  }
   0x7 LB: > { %3485 = sst [smem:[#allocation12_spill]] %s3038_s25  ;;  %s3136_s29 = sadd.s32 4294967295, %s3038_s25   ;;  %s3038_s25 = sphi %s3127_s25, %s26_s25  }
   0x8   : > { %s3486_s5 = sld [smem:[#allocation14_spill]]  ;;  %p2290_p0 = scmp.ge.s32.totalorder %s3038_s25, 1 }
   0x9   : > { %p335_p1 = scmp.lt.s32.totalorder %s3038_s25, 3  ;;  %p2822_p2 = scmp.eq.s32.totalorder %s3136_s29, 0 }
   0xa   : > { %s3040_s14 = smov [#allocation4]   ;;  %s3488_s3 = sld [smem:[#allocation13_spill]] }
   0xb   : > { %p3141_p3 = pnand %p2290_p0, %p335_p1  ;;  %s371_s15 = sshll.u32 %s3040_s14, 4  ;;  %s372_s15 = int_to_ptr.vmem [resolvable:$true] %s371_s15 }
   0xc   : > { %s3041_s20 = smov [#allocation2]   ;;  %s3042_s22 = smov 64  }
   0xd   : > { %p2809_p4 = pneg %p3141_p3  ;;  %s354_s21 = sshll.u32 %s3041_s20, 4  ;;  %s355_s21 = int_to_ptr.vmem [resolvable:$true] %s354_s21 }
   0xe   : > { %s369_s28 = sshll.u32 %s3486_s5, 4  ;;  %s3043_s23 = smov 4   ;;  %s370_s28 = int_to_ptr.hbm [resolvable:$true] %s369_s28 }
   0xf   : > { %p3152_p5 = pnand %p2822_p2, %p2809_p4  ;;  %s392_s27 = sshll.u32 %s3476_s9, 4  ;;  %s393_s27 = int_to_ptr.hbm [resolvable:$true] %s392_s27 }
  0x10   : > { %s352_s18 = sshll.u32 %s3488_s3, 4  ;;  %s3044_s14 = smov 192   ;;  %s353_s18 = int_to_ptr.hbm [resolvable:$true] %s352_s18 }
  0x11   : > { %2815 = dma.hbm_to_vmem [thread:$0]  (!%p3152_p5), %s370_s28, 1024, %s372_s15, [#allocation5], %s3042_s22, %s3042_s22, %s3043_s23  }
  0x12   : > { %s3045_s16 = smov 12   ;;  %s3046_s17 = smov [#allocation6]  }
  0x13   : > { %2812 = dma.hbm_to_vmem [thread:$0]  (!%p3152_p5), %s353_s18, 3072, %s355_s21, [#allocation3], %s3044_s14, %s3044_s14, %s3045_s16  }
  0x14   : > { %s394_s3 = sshll.u32 %s3046_s17, 4  ;;  %s3047_s5 = smov 256   ;;  %s395_s3 = int_to_ptr.vmem [resolvable:$true] %s394_s3 }
  0x15   : > { %s3048_s20 = smov 16   ;;  %s409_s28 = sshll.u32 %s3478_s11, 4  ;;  %s410_s28 = int_to_ptr.hbm [resolvable:$true] %s409_s28 }
  0x16   : > { %2818 = dma.hbm_to_vmem [thread:$0]  (!%p3152_p5), %s393_s27, 4096, %s395_s3, [#allocation5], %s3047_s5, %s3047_s5, %s3048_s20  }
  0x17   : > { %s3049_s15 = smov [#allocation7]   ;;  %437 = sbr.rel (%p3141_p3) target bundleno = 2056 (0x808), region = 72 }
  0x18   : > { %s411_s24 = sshll.u32 %s3049_s15, 4  ;;  %s412_s24 = int_to_ptr.vmem [resolvable:$true] %s411_s24 }
  0x19   : > { %2821 = dma.hbm_to_vmem [thread:$0]  (!%p3152_p5), %s410_s28, 4096, %s412_s24, [#allocation8], %s3042_s22, %s3042_s22, %s3043_s23  }
  0x1c   : > { %3025 = dma.done.wait (%p2822_p2), [#allocation3], 3072  }
  0x1d   : > { %3027 = vsyncadd (%p2822_p2), [#allocation3], 4294964224 }
  0x1e   : > { %3029 = dma.done.wait (%p2822_p2), [#allocation5], 5120  }
  0x1f   : > { %3031 = vsyncadd (%p2822_p2), [#allocation5], 4294962176 }
  0x20   : > { %3033 = dma.done.wait (%p2822_p2), [#allocation8], 4096  }
  0x21   : > { %3035 = vsyncadd (%p2822_p2), [#allocation8], 4294963200  ;;  %p495_p6 = scmp.lt.s32.totalorder %s3136_s29, 1  ;;  %v3050_v1 = vmov 128.0   ;;  %v2389_v2 = vld [vmem:[#allocation2 + $0xa8] sm:$0xf] }
  0x22   : > { %2861 = vrcp.f32 %v3050_v1  ;;  %v2719_v3 = vld [vmem:[#allocation2 + $0xb0] sm:$0xf0]  ;;  %v2718_v4 = vld [vmem:[#allocation2 + $0xac] sm:$0xf]  ;;  %v2391_v6 = vld [vmem:[#allocation2 + $0xb4] sm:$0xf0] }
  0x23   : > { %s3493_s29 = smov (!%p495_p6, %s3136_s29), 1  ;;  %v2390_v5 = vor.u32 %v2719_v3, %v2389_v2  ;;  %v2397_v7 = vld [vmem:[#allocation2 + $0xb0] sm:$0xf]  ;;  %v2720_v8 = vld [vmem:[#allocation2 + $0xb8] sm:$0xf0]  ;;  %v2394_v9 = vor.u32 %v2718_v4, %v2391_v6  ;;  %s3051_s26 = smov 32  }
  0x24   : > { %s2301_s3 = sshll.u32 %s3493_s29, 3  ;;  %v2398_v10 = vor.u32 %v2720_v8, %v2397_v7  ;;  %v2377_v21 = vld [vmem:[#allocation2 + $0x90] sm:$0xf]  ;;  %v2716_v22 = vld [vmem:[#allocation2 + $0x98] sm:$0xf0]  ;;  %s3052_s27 = smov 96  }
  0x25   : > { %s3194_s25 = scalar_lea.vmem %s3467_s0, %s2301_s3  ;;  %712 = vmatpush.bf16.msra.mxu0 %v2390_v5  ;;  %725 = vmatpush.bf16.msra.mxu1 %v2394_v9  ;;  %v2715_v23 = vld [vmem:[#allocation2 + $0x94] sm:$0xf]  ;;  %v2378_v24 = vor.u32 %v2716_v22, %v2377_v21  ;;  %v2379_v25 = vld [vmem:[#allocation2 + $0x9c] sm:$0xf0]  ;;  %v2385_v26 = vld [vmem:[#allocation2 + $0x98] sm:$0xf] }
  0x26   : > { %v505_v0 = vld [vmem:[%s3194_s25] sm:$0xff]  ;;  %738 = vmatpush.bf16.msra.mxu2 %v2398_v10  ;;  %v2382_v28 = vor.u32 %v2715_v23, %v2379_v25  ;;  %v2365_v30 = vld [vmem:[#allocation2 + $0x78] sm:$0xf]  ;;  %v2712_v32 = vld [vmem:[#allocation2 + $0x7c] sm:$0xf]  ;;  %s3053_s14 = smov 64  }
  0x27   : > { %508 = vadd.xlane.f32.xlu0 %v505_v0  ;;  %v2717_v27 = vld [vmem:[#allocation2 + $0xa0] sm:$0xf0]  ;;  %v2367_v34 = vld [vmem:[#allocation2 + $0x84] sm:$0xf0]  ;;  %v2373_v35 = vld [vmem:[#allocation2 + $0x80] sm:$0xf] }
  0x28   : > { %v2862_v11 = vpop.eup %2861  ;;  %v2386_v29 = vor.u32 %v2717_v27, %v2385_v26  ;;  %v2713_v31 = vld [vmem:[#allocation2 + $0x80] sm:$0xf0]  ;;  %v2714_v36 = vld [vmem:[#allocation2 + $0x88] sm:$0xf0]  ;;  %v2370_v37 = vor.u32 %v2712_v32, %v2367_v34  ;;  %v2353_v39 = vld [vmem:[#allocation2 + $0x60] sm:$0xf] }
  0x29   : > { %v511_v12 = vmul.f32 128.0, %v2862_v11  ;;  %vm515_vm0 = vweird.f32 %v2862_v11  ;;  %713 = vmatpush.bf16.msra.mxu0 %v2378_v24  ;;  %726 = vmatpush.bf16.msra.mxu1 %v2382_v28  ;;  %v2366_v33 = vor.u32 %v2713_v31, %v2365_v30  ;;  %v2374_v38 = vor.u32 %v2714_v36, %v2373_v35  ;;  %v2710_v40 = vld [vmem:[#allocation2 + $0x68] sm:$0xf0]  ;;  %v2709_v41 = vld [vmem:[#allocation2 + $0x64] sm:$0xf]  ;;  %s3490_s21 = sld [smem:[#allocation15_spill]] }
  0x2a   : > { %739 = vmatpush.bf16.msra.mxu2 %v2386_v29  ;;  %v2354_v42 = vor.u32 %v2710_v40, %v2353_v39  ;;  %v2355_v43 = vld [vmem:[#allocation2 + $0x6c] sm:$0xf0]  ;;  %v2361_v44 = vld [vmem:[#allocation2 + $0x68] sm:$0xf]  ;;  %v2711_v45 = vld [vmem:[#allocation2 + $0x70] sm:$0xf0] }
  0x2b   : > { %v512_v13 = vsub.f32 1.0, %v511_v12  ;;  %v2358_v46 = vor.u32 %v2709_v41, %v2355_v43  ;;  %v2362_v47 = vor.u32 %v2711_v45, %v2361_v44  ;;  %v2341_v48 = vld [vmem:[#allocation2 + $0x48] sm:$0xf]  ;;  %v2707_v49 = vld [vmem:[#allocation2 + $0x50] sm:$0xf0]  ;;  %vm783_vm4 = vcmask 1047556  }
  0x2c   : > { %v2706_v50 = vld [vmem:[#allocation2 + $0x4c] sm:$0xf]  ;;  %v2342_v51 = vor.u32 %v2707_v49, %v2341_v48  ;;  %v2343_v52 = vld [vmem:[#allocation2 + $0x54] sm:$0xf0]  ;;  %v2349_v53 = vld [vmem:[#allocation2 + $0x50] sm:$0xf] }
  0x2d   : > { %v513_v14 = vmul.f32 %v2862_v11, %v512_v13  ;;  %714 = vmatpush.bf16.msra.mxu0 %v2366_v33  ;;  %727 = vmatpush.bf16.msra.mxu1 %v2370_v37  ;;  %v2708_v54 = vld [vmem:[#allocation2 + $0x58] sm:$0xf0]  ;;  %v2346_v55 = vor.u32 %v2706_v50, %v2343_v52  ;;  %v2329_v57 = vld [vmem:[#allocation2 + $0x30] sm:$0xf]  ;;  %v2703_v59 = vld [vmem:[#allocation2 + $0x34] sm:$0xf] }
  0x2e   : > { %740 = vmatpush.bf16.msra.mxu2 %v2374_v38  ;;  %v2350_v56 = vor.u32 %v2708_v54, %v2349_v53  ;;  %v2704_v58 = vld [vmem:[#allocation2 + $0x38] sm:$0xf0]  ;;  %v2331_v61 = vld [vmem:[#allocation2 + $0x3c] sm:$0xf0]  ;;  %v2337_v62 = vld [vmem:[#allocation2 + $0x38] sm:$0xf] }
  0x2f   : > { %v514_v15 = vadd.f32 %v2862_v11, %v513_v14  ;;  %v2330_v60 = vor.u32 %v2704_v58, %v2329_v57  ;;  %v2705_v63 = vld [vmem:[#allocation2 + $0x40] sm:$0xf0]  ;;  %v2317_v2 = vld [vmem:[#allocation2 + $0x18] sm:$0xf]  ;;  %v2700_v4 = vld [vmem:[#allocation2 + $0x1c] sm:$0xf]  ;;  %s502_s22 = scalar_lea.vmem %s3490_s21, %s2301_s3 }
  0x30   : > { %v2338_v1 = vor.u32 %v2705_v63, %v2337_v62  ;;  %v2701_v3 = vld [vmem:[#allocation2 + $0x20] sm:$0xf0]  ;;  %v2319_v6 = vld [vmem:[#allocation2 + $0x24] sm:$0xf0]  ;;  %v2325_v7 = vld [vmem:[#allocation2 + $0x20] sm:$0xf] }
  0x31   : > { %v3197_v16 = vsel %vm515_vm0, %v2862_v11, %v514_v15  ;;  %715 = vmatpush.bf16.msra.mxu0 %v2354_v42  ;;  %728 = vmatpush.bf16.msra.mxu1 %v2358_v46  ;;  %v2318_v5 = vor.u32 %v2701_v3, %v2317_v2  ;;  %v2702_v8 = vld [vmem:[#allocation2 + $0x28] sm:$0xf0]  ;;  %v2322_v9 = vor.u32 %v2700_v4, %v2319_v6  ;;  %v2305_v11 = vld [vmem:[#allocation2] sm:$0xf]  ;;  %v2697_v13 = vld [vmem:[#allocation2 + $0x4] sm:$0xf] }
  0x32   : > { %741 = vmatpush.bf16.msra.mxu2 %v2362_v47  ;;  %v2326_v10 = vor.u32 %v2702_v8, %v2325_v7  ;;  %v2698_v12 = vld [vmem:[#allocation2 + $0x8] sm:$0xf0]  ;;  %v2307_v15 = vld [vmem:[#allocation2 + $0xc] sm:$0xf0]  ;;  %v2855_v31 = vld [vmem:[%s3468_s1] ss:$0 sm:$0xff] }
  0x33   : > { %v2306_v14 = vor.u32 %v2698_v12, %v2305_v11  ;;  %v2856_v34 = vld [vmem:[%s3469_s2] ss:$0 sm:$0xff]  ;;  %v3054_v49 = vmov 1983009808   ;;  %v3055_v2 = vmov 1934713408  }
  0x34   : > { %v3215_v38 = vld [vmem:[%s3471_s4] sm:$0x7]  ;;  %v774_v50 = vunpack.c.l.s4 %v3054_v49  ;;  %v788_v3 = vunpack.c.l.s4 %v3055_v2  ;;  %vm1114_vm5 = vcmask 261120   ;;  %vm1191_vm6 = vcmask 64512  }
  0x35   : > { %716 = vmatpush.bf16.msra.mxu0 %v2342_v51  ;;  %729 = vmatpush.bf16.msra.mxu1 %v2346_v55  ;;  %v578_v39 = vperm.slane %v3215_v38, 0  ;;  %v579_v40 = vperm.slane %v3215_v38, 1  ;;  %vm1243_vm7 = vcmask 1043456   ;;  %vm1441_vm8 = vcmask 523264  }
  0x36   : > { %742 = vmatpush.bf16.msra.mxu2 %v2350_v56  ;;  %v3224_v56 = vunpack.c.0.s8 %v774_v50  ;;  %vm1443_vm9 = vcmask 785408  }
  0x39   : > { %717 = vmatpush.bf16.msra.mxu0 %v2330_v60 }
  0x3a   : > { %743 = vmatpush.bf16.msra.mxu2 %v2338_v1 }
  0x3d   : > { %718 = vmatpush.bf16.msra.mxu0 %v2318_v5 }
  0x3e   : > { %744 = vmatpush.bf16.msra.mxu2 %v2326_v10 }
  0x41   : > { %719 = vmatpush.bf16.msra.mxu0 %v2306_v14  ;;  %v3230_v14 = vunpack.c.0.s8 %v788_v3 }
  0x9a   : > { %v509_v17 = vpop.xlane.xlu0 %508 }
  0x9b   : > { %v517_v18 = vmul.f32 %v3197_v16, %v509_v17  ;;  %v2313_v17 = vld [vmem:[#allocation2 + $0x8] sm:$0xf] }
  0x9d   : > { %v3200_v19 = vsub.f32 %v505_v0, %v517_v18  ;;  %v2334_v0 = vor.u32 %v2703_v59, %v2331_v61  ;;  %v2699_v18 = vld [vmem:[#allocation2 + $0x10] sm:$0xf0] }
  0x9e   : > { %v2314_v21 = vor.u32 %v2699_v18, %v2313_v17 }
  0x9f   : > { %v519_v20 = vmul.f32 %v3200_v19, %v3200_v19  ;;  %730 = vmatpush.bf16.msra.mxu1 %v2334_v0 }
  0xa0   : > { %745 = vmatpush.bf16.msra.mxu2 %v2314_v21 }
  0xa1   : > { %520 = vadd.xlane.f32.xlu0 %v519_v20  ;;  %v2310_v20 = vor.u32 %v2697_v13, %v2307_v15 }
  0xa3   : > { %731 = vmatpush.bf16.msra.mxu1 %v2322_v9 }
  0xa7   : > { %732 = vmatpush.bf16.msra.mxu1 %v2310_v20 }
 0x114   : > { %v521_v22 = vpop.xlane.xlu0 %520 }
 0x115   : > { %v522_v23 = vmul.f32 %v521_v22, %v3197_v16 }
 0x117   : > { %v523_v24 = vadd.f32 1e-05, %v522_v23 }
 0x119   : > { %2863 = vrsqrt.f32 %v523_v24  ;;  %vm530_vm2 = vweird.f32 %v523_v24 }
 0x11f   : > { %v2864_v25 = vpop.eup %2863 }
 0x120   : > { %v525_v26 = vmul.f32 %v2864_v25, %v523_v24  ;;  %vm531_vm1 = vweird.f32 %v2864_v25 }
 0x121   : > { %vm532_vm3 = vmor %vm530_vm2, %vm531_vm1 }
 0x122   : > { %v526_v27 = vmul.f32 %v2864_v25, %v525_v26 }
 0x124   : > { %v527_v28 = vmul.f32 0.5, %v526_v27 }
 0x126   : > { %v528_v29 = vsub.f32 1.5, %v527_v28 }
 0x128   : > { %v529_v30 = vmul.f32 %v2864_v25, %v528_v29 }
 0x12a   : > { %v533_v32 = vsel %vm532_vm3, %v2864_v25, %v529_v30 }
 0x12b   : > { %v534_v33 = vmul.f32 %v533_v32, %v3200_v19 }
 0x12d   : > { %v538_v35 = vmul.f32 %v2855_v31, %v534_v33 }
 0x12f   : > { %v542_v36 = vadd.f32 %v2856_v34, %v538_v35 }
 0x131   : > { %v543_v37 = vpack.c.bf16 %v542_v36, %v542_v36 }
 0x133   : > { %720 = vmatmul.bf16.vlgmr.msra.gmra.mxu0 %v543_v37  ;;  %733 = vmatmul.bf16.vlgmr.msra.gmra.mxu1 %v543_v37 }
 0x134   : > { %746 = vmatmul.bf16.vlgmr.msra.gmra.mxu2 %v543_v37 }
 0x1b0   : > { %v721_v19 = vpop.f32.mrf.mxu0  ;;  %v734_v41 = vpop.f32.mrf.mxu1 }
 0x1b1   : > { %v722_v42 = vadd.f32 %v721_v19, %v578_v39  ;;  %v735_v43 = vadd.f32 %v734_v41, %v579_v40 }
 0x1b3   : > { %v751_v44 = vpack.c.bf16 %v735_v43, %v722_v42 }
 0x1b5   : > { %758 = vrot.lane.b32.xlu2 %v751_v44, %s3051_s26  ;;  %754 = vrot.lane.b32.xlu1 %v751_v44, %s3052_s27  ;;  %v875_v52 = vrot.slane %v751_v44, 4  ;;  %v763_v58 = vshrl.u32 %v751_v44, 16 }
 0x1b7   : > { %v3221_v45 = vpop.f32.mrf.mxu2  ;;  %v882_v61 = vshrl.u32 %v875_v52, 16 }
 0x1b8   : > { %v723_v46 = vpop.f32.mrf.mxu0  ;;  %v736_v47 = vpop.f32.mrf.mxu1 }
 0x1bd   : > { %756 = vrot.lane.b32.xlu1 %v751_v44, %s3053_s14 }
 0x1bf   : > { %v749_v48 = vpop.f32.mrf.mxu2 }
 0x20f   : > { %v759_v55 = vpop.permute.xlu2 %758 }
 0x210   : > { %v878_v62 = vrot.slane %v759_v55, 4  ;;  %v770_v4 = vshrl.u32 %v759_v55, 16 }
 0x212   : > { %v889_v7 = vshrl.u32 %v878_v62, 16 }
 0x227   : > { %v755_v51 = vpop.permute.xlu1 %754 }
 0x228   : > { %v764_v53 = vshrl.u32 %v755_v51, 16  ;;  %v876_v54 = vrot.slane %v755_v51, 4  ;;  %v762_v57 = vpack.i.b16 %v755_v51, %v751_v44 }
 0x22a   : > { %v883_v59 = vshrl.u32 %v876_v54, 16  ;;  %v765_v60 = vpack.i.b16 %v764_v53, %v763_v58  ;;  %v776_v63 = vperm.slane %v762_v57, %v3224_v56  ;;  %v881_v0 = vpack.i.b16 %v876_v54, %v875_v52 }
 0x22c   : > { %v884_v1 = vpack.i.b16 %v883_v59, %v882_v61  ;;  %v803_v5 = vperm.slane %v765_v60, %v3224_v56  ;;  %v785_v11 = vrot.slane %v776_v63, 4  ;;  %v895_v12 = vperm.slane %v881_v0, %v3224_v56 }
 0x22e   : > { %v921_v13 = vperm.slane %v884_v1, %v3224_v56  ;;  %v811_v21 = vrot.slane %v803_v5, 4  ;;  %v903_v26 = vrot.slane %v895_v12, 4 }
 0x22f   : > { %v757_v6 = vpop.permute.xlu1 %756 }
 0x230   : > { %v768_v8 = vpack.i.b16 %v759_v55, %v757_v6  ;;  %v769_v9 = vshrl.u32 %v757_v6, 16  ;;  %v877_v10 = vrot.slane %v757_v6, 4  ;;  %v929_v27 = vrot.slane %v921_v13, 4 }
 0x232   : > { %v771_v15 = vpack.i.b16 %v770_v4, %v769_v9  ;;  %v781_v17 = vperm.slane %v768_v8, %v3224_v56  ;;  %v887_v18 = vpack.i.b16 %v878_v62, %v877_v10  ;;  %v888_v20 = vshrl.u32 %v877_v10, 16 }
 0x234   : > { %v782_v22 = vrot.slane %v781_v17, 4  ;;  %v786_v23 = vsel %vm783_vm4, %v781_v17, %v785_v11  ;;  %v808_v24 = vperm.slane %v771_v15, %v3224_v56  ;;  %v890_v25 = vpack.i.b16 %v889_v7, %v888_v20 }
 0x235   : > { %v794_v28 = vperm.slane %v786_v23, %v3230_v14  ;;  %v900_v29 = vperm.slane %v887_v18, %v3224_v56 }
 0x236   : > { %v784_v30 = vsel %vm783_vm4, %v782_v22, %v776_v63  ;;  %v809_v31 = vrot.slane %v808_v24, 4  ;;  %v812_v32 = vsel %vm783_vm4, %v808_v24, %v811_v21  ;;  %v926_v33 = vperm.slane %v890_v25, %v3224_v56 }
 0x237   : > { %v790_v34 = vperm.slane %v784_v30, %v3230_v14  ;;  %v797_v35 = vrot.slane %v794_v28, 4  ;;  %v820_v36 = vperm.slane %v812_v32, %v3230_v14  ;;  %v901_v37 = vrot.slane %v900_v29, 4 }
 0x238   : > { %v810_v39 = vsel %vm783_vm4, %v809_v31, %v803_v5  ;;  %v904_v40 = vsel %vm783_vm4, %v900_v29, %v903_v26  ;;  %v927_v19 = vrot.slane %v926_v33, 4  ;;  %v930_v41 = vsel %vm783_vm4, %v926_v33, %v929_v27 }
 0x239   : > { %v795_v42 = vrot.slane %v790_v34, 4  ;;  %v798_v43 = vsel %vm783_vm4, 0, %v797_v35  ;;  %v816_v44 = vperm.slane %v810_v39, %v3230_v14  ;;  %v823_v46 = vrot.slane %v820_v36, 4 }
 0x23a   : > { %v830_v47 = vrot.slane %v798_v43, 4  ;;  %v902_v48 = vsel %vm783_vm4, %v901_v37, %v895_v12  ;;  %v912_v49 = vperm.slane %v904_v40, %v3230_v14  ;;  %v928_v50 = vsel %vm783_vm4, %v927_v19, %v921_v13 }
 0x23b   : > { %v796_v51 = vsel %vm783_vm4, 0, %v795_v42  ;;  %v821_v52 = vrot.slane %v816_v44, 4  ;;  %v824_v53 = vsel %vm783_vm4, 0, %v823_v46  ;;  %v908_v54 = vperm.slane %v902_v48, %v3230_v14 }
 0x23c   : > { %v915_v55 = vrot.slane %v912_v49, 4  ;;  %v934_v57 = vperm.slane %v928_v50, %v3230_v14  ;;  %v938_v58 = vperm.slane %v930_v41, %v3230_v14  ;;  %v831_v60 = vsel %vm783_vm4, %v830_v47, %v796_v51 }
 0x23d   : > { %v913_v59 = vrot.slane %v908_v54, 4  ;;  %v849_v61 = vrot.slane %v824_v53, 4  ;;  %v822_v3 = vsel %vm783_vm4, 0, %v821_v52  ;;  %v835_v6 = vperm.slane %v831_v60, %v3224_v56 }
 0x23e   : > { %v916_v62 = vsel %vm783_vm4, 0, %v915_v55  ;;  %v941_v63 = vrot.slane %v938_v58, 4  ;;  %v939_v0 = vrot.slane %v934_v57, 4  ;;  %v943_v7 = vsel %vm783_vm4, %v915_v55, %v908_v54 }
 0x23f   : > { %v948_v1 = vrot.slane %v916_v62, 4  ;;  %v914_v2 = vsel %vm783_vm4, 0, %v913_v59  ;;  %v825_v11 = vsel %vm783_vm4, %v797_v35, %v790_v34  ;;  %v844_v12 = vsel %vm783_vm4, %v823_v46, %v816_v44 }
 0x240   : > { %v942_v4 = vsel %vm783_vm4, 0, %v941_v63  ;;  %v940_v5 = vsel %vm783_vm4, 0, %v939_v0  ;;  %v850_v13 = vsel %vm783_vm4, %v849_v61, %v822_v3  ;;  %v962_v15 = vsel %vm783_vm4, %v941_v63, %v934_v57 }
 0x241   : > { %v949_v8 = vsel %vm783_vm4, %v948_v1, %v914_v2  ;;  %v967_v9 = vrot.slane %v942_v4, 4  ;;  %v836_v18 = vrot.slane %v835_v6, 4  ;;  %v854_v20 = vperm.slane %v850_v13, %v3224_v56 }
 0x242   : > { %v953_v10 = vperm.slane %v949_v8, %v3224_v56  ;;  %v947_v21 = vperm.slane %v943_v7, %v3224_v56  ;;  %v829_v24 = vperm.slane %v825_v11, %v3224_v56  ;;  %v848_v25 = vperm.slane %v844_v12, %v3224_v56 }
 0x243   : > { %v968_v17 = vsel %vm783_vm4, %v967_v9, %v940_v5  ;;  %v855_v26 = vrot.slane %v854_v20, 4  ;;  %v966_v28 = vperm.slane %v962_v15, %v3224_v56  ;;  %v580_v9 = vperm.slane %v3215_v38, 2 }
 0x244   : > { %v954_v22 = vrot.slane %v953_v10, 4  ;;  %v972_v23 = vperm.slane %v968_v17, %v3224_v56  ;;  %v837_v31 = vsel %vm783_vm4, %v836_v18, %v829_v24 }
 0x245   : > { %v856_v32 = vsel %vm783_vm4, %v855_v26, %v848_v25  ;;  %v841_v39 = vperm.slane %v837_v31, %v3230_v14  ;;  %v748_v10 = vadd.f32 %v3221_v45, %v580_v9 }
 0x246   : > { %v955_v27 = vsel %vm783_vm4, %v954_v22, %v947_v21  ;;  %v973_v29 = vrot.slane %v972_v23, 4  ;;  %v860_v36 = vperm.slane %v856_v32, %v3230_v14 }
 0x247   : > { %v959_v30 = vperm.slane %v955_v27, %v3230_v14  ;;  %v842_v51 = vrot.slane %v841_v39, 4  ;;  %v866_v0 = vshrl.u32 %v841_v39, 16  ;;  %v752_v13 = vpack.c.bf16 %v748_v10, %v748_v10 }
 0x248   : > { %v974_v33 = vsel %vm783_vm4, %v973_v29, %v966_v28  ;;  %v861_v47 = vrot.slane %v860_v36, 4  ;;  %v865_v57 = vpack.i.b16 %v860_v36, %v841_v39  ;;  %v867_v63 = vshrl.u32 %v860_v36, 16 }
 0x249   : > { %v978_v34 = vperm.slane %v974_v33, %v3230_v14  ;;  %v960_v35 = vrot.slane %v959_v30, 4  ;;  %v984_v37 = vshrl.u32 %v959_v30, 16  ;;  %v843_v58 = vsel %vm783_vm4, 0, %v842_v51 }
 0x24a   : > { %v862_v54 = vsel %vm783_vm4, 0, %v861_v47  ;;  %v872_v61 = vshrl.u32 %v843_v58, 16  ;;  %v868_v1 = vpack.i.b16 %v867_v63, %v866_v0 }
 0x24b   : > { %v983_v40 = vpack.i.b16 %v978_v34, %v959_v30  ;;  %v985_v19 = vshrl.u32 %v978_v34, 16  ;;  %v961_v41 = vsel %vm783_vm4, 0, %v960_v35  ;;  %v979_v42 = vrot.slane %v978_v34, 4 }
 0x24c   : > { %v990_v48 = vshrl.u32 %v961_v41, 16  ;;  %v873_v59 = vshrl.u32 %v862_v54, 16  ;;  %v871_v2 = vpack.i.b16 %v862_v54, %v843_v58 }
 0x24d   : > { %v1119_v43 = vsel %vm1114_vm5, %v983_v40, 0  ;;  %v986_v44 = vpack.i.b16 %v985_v19, %v984_v37  ;;  %v980_v46 = vsel %vm783_vm4, 0, %v979_v42 }
 0x24e   : > { %1128 = vmatpush.bf16.xpose.msra.mxu3 %v1119_v43  ;;  %v991_v49 = vshrl.u32 %v980_v46, 16  ;;  %v989_v53 = vpack.i.b16 %v980_v46, %v961_v41  ;;  %v874_v62 = vpack.i.b16 %v873_v59, %v872_v61  ;;  %v1003_v41 = vshrl.u32 %v752_v13, 16 }
 0x24f   : > { %v1138_v50 = vsel %vm1114_vm5, %v986_v44, 0 }
 0x250   : > { %v992_v52 = vpack.i.b16 %v991_v49, %v990_v48  ;;  %v1157_v60 = vsel %vm1114_vm5, %v989_v53, 0 }
 0x252   : > { %v1176_v55 = vsel %vm1114_vm5, %v992_v52, 0 }
 0x253   : > { %1185 = vmatpush.bf16.xpose.msrb.mxu0 %v1176_v55 }
 0x255   : > { %2399 = vmatmul.msk.bf16.vlgmr.msra.gmra.mxu3 %vm1114_vm5, %v865_v57 }
 0x256   : > { %1147 = vmatpush.bf16.xpose.msrb.mxu3 %v1138_v50 }
 0x25a   : > { %2402 = vmatmul.msk.bf16.vlgmr.msrb.gmra.mxu0 %vm1114_vm5, %v874_v62 }
 0x25e   : > { %1166 = vmatpush.bf16.xpose.msra.mxu3 %v1157_v60 }
 0x265   : > { %2400 = vmatmul.msk.bf16.vlgmr.msrb.gmra.mxu3 %vm1114_vm5, %v868_v1 }
 0x275   : > { %2401 = vmatmul.msk.bf16.vlgmr.msra.gmra.mxu3 %vm1114_vm5, %v871_v2 }
 0x2d7   : > { %v1187_v3 = vpop.f32.mrf.mxu0 }
 0x2d8   : > { %v1130_v4 = vpop.f32.mrf.mxu3  ;;  %v1201_v5 = vsel %vm1191_vm6, %v1187_v3, -inf }
 0x2d9   : > { %1202 = vmax.xlane.f32.xlu0 %v1201_v5  ;;  %v1192_v6 = vsel %vm1191_vm6, %v1130_v4, -inf }
 0x2da   : > { %1193 = vmax.xlane.f32.xlu2 %v1192_v6 }
 0x2df   : > { %v1189_v7 = vpop.f32.mrf.mxu0 }
 0x2e0   : > { %v1132_v8 = vpop.f32.mrf.mxu3 }
 0x2e8   : > { %v1149_v11 = vpop.f32.mrf.mxu3 }
 0x2e9   : > { %v1195_v12 = vsel %vm1191_vm6, %v1149_v11, -inf }
 0x2ea   : > { %1196 = vmax.xlane.f32.xlu1 %v1195_v12 }
 0x2ed   : > { %994 = vrot.lane.b32.xlu0 %v752_v13, %s3052_s27 }
 0x2f0   : > { %v1151_v15 = vpop.f32.mrf.mxu3 }
 0x2f2   : > { %996 = vrot.lane.b32.xlu2 %v752_v13, %s3053_s14 }
 0x2f8   : > { %v1168_v17 = vpop.f32.mrf.mxu3 }
 0x2f9   : > { %v1198_v20 = vsel %vm1191_vm6, %v1168_v17, -inf }
 0x300   : > { %v1170_v18 = vpop.f32.mrf.mxu3 }
 0x317   : > { %1199 = vmax.xlane.f32.xlu0 %v1198_v20 }
 0x32b   : > { %998 = vrot.lane.b32.xlu0 %v752_v13, %s3051_s26 }
 0x34c   : > { %v1203_v38 = vpop.xlane.xlu0 %1202 }
 0x34d   : > { %v1207_v21 = vsub.f32 %v1187_v3, %v1203_v38  ;;  %v1194_v45 = vpop.xlane.xlu2 %1193 }
 0x34e   : > { %v1204_v22 = vsub.f32 %v1130_v4, %v1194_v45 }
 0x34f   : > { %v1214_v23 = vmul.f32 1.442695, %v1207_v21 }
 0x350   : > { %v1208_v24 = vmul.f32 1.442695, %v1204_v22 }
 0x351   : > { %2865 = vpow2.f32 %v1214_v23 }
 0x352   : > { %2867 = vpow2.f32 %v1208_v24 }
 0x355   : > { %v997_v44 = vpop.permute.xlu2 %996 }
 0x356   : > { %v1009_v48 = vshrl.u32 %v997_v44, 16 }
 0x357   : > { %v3305_v25 = vpop.eup %2865 }
 0x358   : > { %v3307_v26 = vpop.eup %2867  ;;  %v1225_v27 = vsel %vm1191_vm6, %v3305_v25, 0.0 }
 0x359   : > { %1226 = vadd.xlane.f32.xlu2 %v1225_v27  ;;  %v1216_v28 = vsel %vm1191_vm6, %v3307_v26, 0.0 }
 0x35a   : > { %1217 = vadd.xlane.f32.xlu1 %v1216_v28 }
 0x35d   : > { %v1197_v29 = vpop.xlane.xlu1 %1196 }
 0x35e   : > { %v1205_v30 = vsub.f32 %v1149_v11, %v1197_v29 }
 0x35f   : > { %v995_v34 = vpop.permute.xlu0 %994 }
 0x360   : > { %v1210_v31 = vmul.f32 1.442695, %v1205_v30  ;;  %v1004_v40 = vshrl.u32 %v995_v34, 16  ;;  %v1002_v42 = vpack.i.b16 %v995_v34, %v752_v13 }
 0x362   : > { %2869 = vpow2.f32 %v1210_v31  ;;  %v1005_v43 = vpack.i.b16 %v1004_v40, %v1003_v41  ;;  %v1016_v46 = vperm.slane %v1002_v42, %v3224_v56 }
 0x364   : > { %v1042_v49 = vperm.slane %v1005_v43, %v3224_v56  ;;  %v1024_v52 = vrot.slane %v1016_v46, 4 }
 0x366   : > { %v1050_v55 = vrot.slane %v1042_v49, 4 }
 0x368   : > { %v3313_v32 = vpop.eup %2869 }
 0x369   : > { %v1219_v33 = vsel %vm1191_vm6, %v3313_v32, 0.0 }
 0x36a   : > { %1220 = vadd.xlane.f32.xlu1 %v1219_v33 }
 0x38a   : > { %v1200_v35 = vpop.xlane.xlu0 %1199 }
 0x38b   : > { %v1206_v36 = vsub.f32 %v1168_v17, %v1200_v35 }
 0x38d   : > { %v1212_v37 = vmul.f32 1.442695, %v1206_v36 }
 0x38f   : > { %2871 = vpow2.f32 %v1212_v37 }
 0x395   : > { %v3317_v39 = vpop.eup %2871 }
 0x396   : > { %v1222_v19 = vsel %vm1191_vm6, %v3317_v39, 0.0 }
 0x397   : > { %1223 = vadd.xlane.f32.xlu0 %v1222_v19 }
 0x39d   : > { %v999_v47 = vpop.permute.xlu0 %998 }
 0x39e   : > { %v1008_v50 = vpack.i.b16 %v999_v47, %v997_v44  ;;  %v1010_v51 = vshrl.u32 %v999_v47, 16 }
 0x3a0   : > { %v1011_v53 = vpack.i.b16 %v1010_v51, %v1009_v48  ;;  %v1021_v54 = vperm.slane %v1008_v50, %v3224_v56 }
 0x3a2   : > { %v1022_v57 = vrot.slane %v1021_v54, 4  ;;  %v1025_v58 = vsel %vm783_vm4, %v1021_v54, %v1024_v52  ;;  %v1047_v59 = vperm.slane %v1011_v53, %v3224_v56 }
 0x3a3   : > { %v1033_v60 = vperm.slane %v1025_v58, %v3230_v14 }
 0x3a4   : > { %v1023_v61 = vsel %vm783_vm4, %v1022_v57, %v1016_v46  ;;  %v1048_v62 = vrot.slane %v1047_v59, 4  ;;  %v1051_v63 = vsel %vm783_vm4, %v1047_v59, %v1050_v55 }
 0x3a5   : > { %v1029_v0 = vperm.slane %v1023_v61, %v3230_v14  ;;  %v1036_v1 = vrot.slane %v1033_v60, 4  ;;  %v1059_v2 = vperm.slane %v1051_v63, %v3230_v14 }
 0x3a6   : > { %v1049_v3 = vsel %vm783_vm4, %v1048_v62, %v1042_v49 }
 0x3a7   : > { %v1034_v4 = vrot.slane %v1029_v0, 4  ;;  %v1037_v5 = vsel %vm783_vm4, 0, %v1036_v1  ;;  %v1055_v6 = vperm.slane %v1049_v3, %v3230_v14  ;;  %v1062_v7 = vrot.slane %v1059_v2, 4 }
 0x3a8   : > { %v1069_v8 = vrot.slane %v1037_v5, 4  ;;  %v1064_v13 = vsel %vm783_vm4, %v1036_v1, %v1029_v0 }
 0x3a9   : > { %v1035_v9 = vsel %vm783_vm4, 0, %v1034_v4  ;;  %v1060_v10 = vrot.slane %v1055_v6, 4  ;;  %v1063_v11 = vsel %vm783_vm4, 0, %v1062_v7  ;;  %v1083_v20 = vsel %vm783_vm4, %v1062_v7, %v1055_v6 }
 0x3aa   : > { %v1088_v12 = vrot.slane %v1063_v11, 4  ;;  %v1070_v15 = vsel %vm783_vm4, %v1069_v8, %v1035_v9  ;;  %v1068_v21 = vperm.slane %v1064_v13, %v3224_v56  ;;  %v1087_v24 = vperm.slane %v1083_v20, %v3224_v56 }
 0x3ab   : > { %v1061_v17 = vsel %vm783_vm4, 0, %v1060_v10  ;;  %v1074_v18 = vperm.slane %v1070_v15, %v3224_v56 }
 0x3ac   : > { %v1089_v38 = vsel %vm783_vm4, %v1088_v12, %v1061_v17 }
 0x3ad   : > { %v1075_v45 = vrot.slane %v1074_v18, 4  ;;  %v1093_v22 = vperm.slane %v1089_v38, %v3224_v56  ;;  %v2728_v38 = vld [vmem:[#allocation4 + $0x38] sm:$0xff] }
 0x3ae   : > { %1510 = vmatpush.bf16.msrb.mxu1 %v2728_v38 }
 0x3af   : > { %v1076_v23 = vsel %vm783_vm4, %v1075_v45, %v1068_v21  ;;  %v1094_v27 = vrot.slane %v1093_v22, 4 }
 0x3b0   : > { %v1080_v28 = vperm.slane %v1076_v23, %v3230_v14 }
 0x3b1   : > { %v1095_v29 = vsel %vm783_vm4, %v1094_v27, %v1087_v24  ;;  %v2727_v27 = vld [vmem:[#allocation4 + $0x30] sm:$0xff] }
 0x3b2   : > { %v1099_v30 = vperm.slane %v1095_v29, %v3230_v14  ;;  %v1081_v31 = vrot.slane %v1080_v28, 4  ;;  %v1105_v33 = vshrl.u32 %v1080_v28, 16  ;;  %1511 = vmatpush.bf16.msrb.mxu1 %v2727_v27 }
 0x3b4   : > { %v1104_v34 = vpack.i.b16 %v1099_v30, %v1080_v28  ;;  %v1106_v35 = vshrl.u32 %v1099_v30, 16  ;;  %v1082_v36 = vsel %vm783_vm4, 0, %v1081_v31  ;;  %v1100_v37 = vrot.slane %v1099_v30, 4 }
 0x3b5   : > { %v1111_v43 = vshrl.u32 %v1082_v36, 16 }
 0x3b6   : > { %v1245_v40 = vsel %vm1243_vm7, %v1104_v34, 0  ;;  %v1107_v19 = vpack.i.b16 %v1106_v35, %v1105_v33  ;;  %v1101_v41 = vsel %vm783_vm4, 0, %v1100_v37 }
 0x3b7   : > { %1254 = vmatpush.bf16.msrb.mxu2 %v1245_v40  ;;  %v1110_v42 = vpack.i.b16 %v1101_v41, %v1082_v36  ;;  %v1112_v44 = vshrl.u32 %v1101_v41, 16 }
 0x3b8   : > { %v1264_v46 = vsel %vm1243_vm7, %v1107_v19, 0  ;;  %v2726_v19 = vld [vmem:[#allocation4 + $0x28] sm:$0xff] }
 0x3b9   : > { %v1283_v47 = vsel %vm1243_vm7, %v1110_v42, 0  ;;  %v1113_v48 = vpack.i.b16 %v1112_v44, %v1111_v43  ;;  %1512 = vmatpush.bf16.msrb.mxu1 %v2726_v19 }
 0x3ba   : > { %1292 = vmatpush.bf16.msrb.mxu3 %v1283_v47 }
 0x3bb   : > { %1273 = vmatpush.bf16.msra.mxu2 %v1264_v46  ;;  %v1302_v49 = vsel %vm1243_vm7, %v1113_v48, 0 }
 0x3bc   : > { %1311 = vmatpush.bf16.msra.mxu0 %v1302_v49 }
 0x3cc   : > { %v1227_v50 = vpop.xlane.xlu2 %1226 }
 0x3cd   : > { %2873 = vrcp.f32 %v1227_v50  ;;  %v1218_v51 = vpop.xlane.xlu1 %1217 }
 0x3ce   : > { %2875 = vrcp.f32 %v1218_v51  ;;  %v2725_v51 = vld [vmem:[#allocation4 + $0x20] sm:$0xff] }
 0x3cf   : > { %1513 = vmatpush.bf16.msrb.mxu1 %v2725_v51  ;;  %v2753_v51 = vld [vmem:[#allocation6 + $0xc4] sm:$0xf] }
 0x3d3   : > { %v2874_v52 = vpop.eup %2873 }
 0x3d4   : > { %v2876_v53 = vpop.eup %2875  ;;  %v1235_v54 = vmul.f32 %v2874_v52, %v3305_v25 }
 0x3d5   : > { %v1232_v55 = vmul.f32 %v2876_v53, %v3307_v26 }
 0x3d6   : > { %v1239_v57 = vpack.c.bf16 %v1235_v54, %v1235_v54 }
 0x3d7   : > { %v1236_v58 = vpack.c.bf16 %v1232_v55, %v1232_v55 }
 0x3d8   : > { %2406 = vmatmul.msk.bf16.vlgmr.msra.gmra.mxu0 %vm1191_vm6, %v1239_v57 }
 0x3d9   : > { %2403 = vmatmul.msk.bf16.vlgmr.msrb.gmra.mxu2 %vm1191_vm6, %v1236_v58 }
 0x3dd   : > { %v1221_v59 = vpop.xlane.xlu1 %1220 }
 0x3de   : > { %2877 = vrcp.f32 %v1221_v59 }
 0x3e4   : > { %v2878_v60 = vpop.eup %2877 }
 0x3e5   : > { %v1233_v61 = vmul.f32 %v2878_v60, %v3313_v32 }
 0x3e7   : > { %v1237_v62 = vpack.c.bf16 %v1233_v61, %v1233_v61 }
 0x3e9   : > { %2404 = vmatmul.msk.bf16.vlgmr.msra.gmra.mxu2 %vm1191_vm6, %v1237_v62 }
 0x40a   : > { %v1224_v63 = vpop.xlane.xlu0 %1223 }
 0x40b   : > { %2879 = vrcp.f32 %v1224_v63  ;;  %v2724_v63 = vld [vmem:[#allocation4 + $0x18] sm:$0xff] }
 0x40c   : > { %1514 = vmatpush.bf16.msrb.mxu1 %v2724_v63  ;;  %v2751_v63 = vld [vmem:[#allocation6 + $0xac] sm:$0xf0] }
 0x411   : > { %v2880_v0 = vpop.eup %2879 }
 0x412   : > { %v1234_v25 = vmul.f32 %v2880_v0, %v3317_v39 }
 0x414   : > { %v1238_v26 = vpack.c.bf16 %v1234_v25, %v1234_v25 }
 0x416   : > { %2405 = vmatmul.msk.bf16.vlgmr.msrb.gmra.mxu3 %vm1191_vm6, %v1238_v26 }
 0x455   : > { %v1313_v1 = vpop.f32.mrf.mxu0 }
 0x456   : > { %v1330_v8 = vrot.slane %v1313_v1, 4 }
 0x45c   : > { %v1256_v2 = vpop.f32.mrf.mxu2 }
 0x45d   : > { %v1315_v3 = vpop.f32.mrf.mxu0  ;;  %v1320_v11 = vrot.slane %v1256_v2, 4 }
 0x464   : > { %v1258_v4 = vpop.f32.mrf.mxu2 }
 0x46c   : > { %v1275_v5 = vpop.f32.mrf.mxu2 }
 0x46d   : > { %v1332_v7 = vrot.slane %v1275_v5, 4  ;;  %v1331_v9 = vsel %vm783_vm4, %v1330_v8, %v1275_v5 }
 0x46e   : > { %v1337_v39 = vperm.slane %v1331_v9, %v3224_v56 }
 0x46f   : > { %v1333_v32 = vsel %vm783_vm4, %v1313_v1, %v1332_v7 }
 0x470   : > { %v1341_v10 = vperm.slane %v1333_v32, %v3224_v56  ;;  %v1342_v21 = vrot.slane %v1337_v39, 4 }
 0x472   : > { %v1354_v17 = vrot.slane %v1341_v10, 4 }
 0x474   : > { %v1277_v6 = vpop.f32.mrf.mxu2 }
 0x499   : > { %v1294_v12 = vpop.f32.mrf.mxu3 }
 0x49a   : > { %v1317_v13 = vrot.slane %v1294_v12, 4  ;;  %v1321_v15 = vsel %vm783_vm4, %v1294_v12, %v1320_v11  ;;  %v2723_v12 = vld [vmem:[#allocation4 + $0x10] sm:$0xff] }
 0x49b   : > { %v1329_v18 = vperm.slane %v1321_v15, %v3224_v56  ;;  %1515 = vmatpush.bf16.msrb.mxu1 %v2723_v12 }
 0x49c   : > { %v1319_v20 = vsel %vm783_vm4, %v1317_v13, %v1256_v2  ;;  %v2721_v13 = vld [vmem:[#allocation4] sm:$0xff] }
 0x49d   : > { %v1325_v45 = vperm.slane %v1319_v20, %v3224_v56  ;;  %v1355_v22 = vsel %vm783_vm4, %v1354_v17, %v1329_v18  ;;  %v1356_v23 = vrot.slane %v1329_v18, 4 }
 0x49e   : > { %v1361_v24 = vperm.slane %v1355_v22, %v3230_v14  ;;  %v2857_v22 = vld [vmem:[%s3473_s6] ss:$0 sm:$0xff] }
 0x49f   : > { %v1343_v28 = vsel %vm783_vm4, %v1342_v21, %v1325_v45  ;;  %v1344_v29 = vrot.slane %v1325_v45, 4  ;;  %v1357_v30 = vsel %vm783_vm4, %v1341_v10, %v1356_v23 }
 0x4a0   : > { %v1349_v31 = vperm.slane %v1343_v28, %v3230_v14  ;;  %v1365_v33 = vperm.slane %v1357_v30, %v3230_v14  ;;  %v1370_v37 = vrot.slane %v1361_v24, 4  ;;  %v2553_v30 = vld [vmem:[#allocation6 + $0xe0] sm:$0xf] }
 0x4a1   : > { %v1345_v34 = vsel %vm783_vm4, %v1337_v39, %v1344_v29  ;;  %v1296_v35 = vpop.f32.mrf.mxu3 }
 0x4a2   : > { %v1353_v36 = vperm.slane %v1345_v34, %v3230_v14  ;;  %v1372_v40 = vrot.slane %v1365_v33, 4  ;;  %v1366_v41 = vrot.slane %v1349_v31, 4  ;;  %v1371_v49 = vsel %vm783_vm4, 0.0, %v1370_v37  ;;  %v2757_v33 = vld [vmem:[#allocation6 + $0xe4] sm:$0xf] }
 0x4a3   : > { %v2555_v35 = vld [vmem:[#allocation6 + $0xf0] sm:$0xf0]  ;;  %v2760_v37 = vld [vmem:[#allocation6 + $0xf4] sm:$0xf0] }
 0x4a4   : > { %v1368_v42 = vrot.slane %v1353_v36, 4  ;;  %v1373_v43 = vsel %vm783_vm4, 0.0, %v1372_v40  ;;  %v1385_v44 = vsel %vm783_vm4, %v1372_v40, %v1361_v24  ;;  %v1367_v55 = vsel %vm783_vm4, 0.0, %v1366_v41  ;;  %v2899_v24 = vld [vmem:[%s3194_s25] sm:$0xff]  ;;  %v2561_v36 = vld [vmem:[#allocation6 + $0xe8] sm:$0xf] }
 0x4a5   : > { %v1390_v46 = vrot.slane %v1373_v43, 4  ;;  %v1389_v47 = vperm.slane %v1385_v44, %v3224_v56  ;;  %v2558_v40 = vor.u32 %v2757_v33, %v2555_v35  ;;  %v2562_v19 = vor.u32 %v2760_v37, %v2561_v36  ;;  %v2758_v41 = vld [vmem:[#allocation6 + $0xec] sm:$0xf]  ;;  %v2473_v33 = vld [vmem:[#allocation6 + $0x40] sm:$0xf] }
 0x4a6   : > { %v1369_v48 = vsel %vm783_vm4, 0.0, %v1368_v42  ;;  %v1374_v50 = vsel %vm783_vm4, %v1368_v42, %v1349_v31  ;;  %v2759_v31 = vld [vmem:[#allocation6 + $0xec] sm:$0xf0]  ;;  %v2563_v42 = vld [vmem:[#allocation6 + $0xf8] sm:$0xf0] }
 0x4a7   : > { %v1379_v52 = vrot.slane %v1369_v48, 4  ;;  %v1378_v53 = vperm.slane %v1374_v50, %v3224_v56  ;;  %v1391_v54 = vsel %vm783_vm4, %v1390_v46, %v1371_v49  ;;  %v1410_v58 = vrot.slane %v1389_v47, 4  ;;  %1775 = vmatpush.bf16.msra.mxu3 %v2558_v40  ;;  %1788 = vmatpush.bf16.msrb.mxu0 %v2562_v19  ;;  %v2537_v49 = vld [vmem:[#allocation6 + $0xc0] sm:$0xf]  ;;  %v2755_v50 = vld [vmem:[#allocation6 + $0xcc] sm:$0xf0] }
 0x4a8   : > { %v1395_v57 = vperm.slane %v1391_v54, %v3224_v56  ;;  %v2554_v34 = vor.u32 %v2759_v31, %v2553_v30  ;;  %v2566_v43 = vor.u32 %v2758_v41, %v2563_v42  ;;  %v2545_v54 = vld [vmem:[#allocation6 + $0xc8] sm:$0xf]  ;;  %v2499_v30 = vld [vmem:[#allocation6 + $0x78] sm:$0xf0]  ;;  %v2737_v35 = vld [vmem:[#allocation6 + $0x44] sm:$0xf] }
 0x4a9   : > { %v1380_v59 = vsel %vm783_vm4, %v1379_v52, %v1367_v55  ;;  %v1398_v60 = vrot.slane %v1378_v53, 4  ;;  %v2538_v52 = vor.u32 %v2755_v50, %v2537_v49  ;;  %v2756_v55 = vld [vmem:[#allocation6 + $0xd4] sm:$0xf0]  ;;  %v2475_v37 = vld [vmem:[#allocation6 + $0x50] sm:$0xf0] }
 0x4aa   : > { %v1384_v61 = vperm.slane %v1380_v59, %v3224_v56  ;;  %v1408_v62 = vrot.slane %v1395_v57, 4  ;;  %v1411_v25 = vsel %vm783_vm4, %v1395_v57, %v1410_v58  ;;  %1762 = vmatpush.bf16.msrb.mxu2 %v2554_v34  ;;  %v2546_v58 = vor.u32 %v2756_v55, %v2545_v54  ;;  %v2754_v59 = vld [vmem:[#allocation6 + $0xcc] sm:$0xf]  ;;  %v2739_v34 = vld [vmem:[#allocation6 + $0x4c] sm:$0xf0] }
 0x4ab   : > { %v1419_v5 = vperm.slane %v1411_v25, %v3230_v14  ;;  %v2474_v36 = vor.u32 %v2739_v34, %v2473_v33  ;;  %v2481_v40 = vld [vmem:[#allocation6 + $0x48] sm:$0xf]  ;;  %v2740_v19 = vld [vmem:[#allocation6 + $0x54] sm:$0xf0]  ;;  %v2478_v41 = vor.u32 %v2737_v35, %v2475_v37  ;;  %v2735_v49 = vld [vmem:[#allocation6 + $0x2c] sm:$0xf0] }
 0x4ac   : > { %v1399_v0 = vsel %vm783_vm4, %v1384_v61, %v1398_v60  ;;  %v1396_v26 = vrot.slane %v1384_v61, 4  ;;  %v1409_v1 = vsel %vm783_vm4, %v1408_v62, %v1389_v47  ;;  %v2547_v60 = vld [vmem:[#allocation6 + $0xd8] sm:$0xf0]  ;;  %1789 = vmatpush.bf16.msrb.mxu0 %v2546_v58  ;;  %v2521_v62 = vld [vmem:[#allocation6 + $0xa0] sm:$0xf]  ;;  %v2482_v42 = vor.u32 %v2740_v19, %v2481_v40  ;;  %v2767_v33 = vld [vmem:[#allocation7 + $0x30] sm:$0xff] }
 0x4ad   : > { %v1407_v2 = vperm.slane %v1399_v0, %v3230_v14  ;;  %v1415_v3 = vperm.slane %v1409_v1, %v3230_v14  ;;  %v1424_v11 = vrot.slane %v1419_v5, 4  ;;  %v2550_v61 = vor.u32 %v2754_v59, %v2547_v60  ;;  %v2749_v0 = vld [vmem:[#allocation6 + $0xa4] sm:$0xf]  ;;  %v2529_v1 = vld [vmem:[#allocation6 + $0xa8] sm:$0xf]  ;;  %v2775_v34 = vld [vmem:[#allocation7 + $0x70] sm:$0xff] }
 0x4ae   : > { %v1397_v4 = vsel %vm783_vm4, %v1396_v26, %v1378_v53  ;;  %v2539_v53 = vld [vmem:[#allocation6 + $0xd0] sm:$0xf0]  ;;  %1763 = vmatpush.bf16.msrb.mxu2 %v2538_v52  ;;  %v2522_v25 = vor.u32 %v2751_v63, %v2521_v62  ;;  %v2733_v50 = vld [vmem:[#allocation6 + $0x24] sm:$0xf]  ;;  %v2736_v54 = vld [vmem:[#allocation6 + $0x34] sm:$0xf0] }
 0x4af   : > { %v1426_v56 = vrot.slane %v1407_v2, 4  ;;  %v1403_v6 = vperm.slane %v1397_v4, %v3230_v14  ;;  %v1420_v7 = vrot.slane %v1415_v3, 4  ;;  %v1425_v39 = vsel %vm783_vm4, %v1424_v11, %v1407_v2  ;;  %v2722_v14 = vld [vmem:[#allocation4 + $0x8] sm:$0xff]  ;;  %v2523_v26 = vld [vmem:[#allocation6 + $0xb0] sm:$0xf0]  ;;  %v2781_v37 = vld [vmem:[#allocation7 + $0xa0] sm:$0xff] }
 0x4b0   : > { %1516 = vmatpush.bf16.msrb.mxu1 %v2722_v14  ;;  %v2542_v57 = vor.u32 %v2753_v51, %v2539_v53  ;;  %v2752_v2 = vld [vmem:[#allocation6 + $0xb4] sm:$0xf0]  ;;  %v2513_v11 = vld [vmem:[#allocation6 + $0x88] sm:$0xf]  ;;  %v2459_v52 = vld [vmem:[#allocation6 + $0x30] sm:$0xf0] }
 0x4b1   : > { %v1427_v8 = vsel %vm783_vm4, %v1419_v5, %v1426_v56  ;;  %v1422_v32 = vrot.slane %v1403_v6, 4  ;;  %v1421_v9 = vsel %vm783_vm4, %v1420_v7, %v1403_v6  ;;  %v2530_v4 = vor.u32 %v2752_v2, %v2529_v1  ;;  %v2750_v5 = vld [vmem:[#allocation6 + $0xac] sm:$0xf]  ;;  %v2531_v56 = vld [vmem:[#allocation6 + $0xb8] sm:$0xf0]  ;;  %v2789_v40 = vld [vmem:[#allocation7 + $0xe0] sm:$0xff] }
 0x4b2   : > { %1437 = vrot.lane.b32.xlu0 %v1427_v8, %s3052_s27  ;;  %1776 = vmatpush.bf16.msra.mxu3 %v2542_v57  ;;  %v2534_v6 = vor.u32 %v2750_v5, %v2531_v56  ;;  %v2505_v7 = vld [vmem:[#allocation6 + $0x80] sm:$0xf]  ;;  %v2747_v8 = vld [vmem:[#allocation6 + $0x8c] sm:$0xf0]  ;;  %v2465_v53 = vld [vmem:[#allocation6 + $0x28] sm:$0xf]  ;;  %v2462_v55 = vor.u32 %v2733_v50, %v2459_v52 }
 0x4b3   : > { %v1423_v10 = vsel %vm783_vm4, %v1415_v3, %v1422_v32  ;;  %v2526_v3 = vor.u32 %v2749_v0, %v2523_v26  ;;  %1764 = vmatpush.bf16.msrb.mxu2 %v2522_v25  ;;  %1790 = vmatpush.bf16.msrb.mxu0 %v2530_v4  ;;  %v2745_v32 = vld [vmem:[#allocation6 + $0x84] sm:$0xf]  ;;  %v2466_v57 = vor.u32 %v2736_v54, %v2465_v53  ;;  %v2734_v58 = vld [vmem:[#allocation6 + $0x2c] sm:$0xf]  ;;  %v2467_v59 = vld [vmem:[#allocation6 + $0x38] sm:$0xf0] }
 0x4b4   : > { %1429 = vrot.lane.b32.xlu1 %v1423_v10, %s3051_s26  ;;  %1517 = vmatpush.bf16.msrb.mxu1 %v2721_v13  ;;  %v2507_v10 = vld [vmem:[#allocation6 + $0x90] sm:$0xf0]  ;;  %v2746_v13 = vld [vmem:[#allocation6 + $0x8c] sm:$0xf]  ;;  %v2441_v60 = vld [vmem:[#allocation6] sm:$0xf] }
 0x4b5   : > { %v2510_v12 = vor.u32 %v2745_v32, %v2507_v10  ;;  %v2731_v62 = vld [vmem:[#allocation6 + $0xc] sm:$0xf0]  ;;  %v2729_v63 = vld [vmem:[#allocation6 + $0x4] sm:$0xf]  ;;  %v2443_v0 = vld [vmem:[#allocation6 + $0x10] sm:$0xf0] }
 0x4b6   : > { %1777 = vmatpush.bf16.msra.mxu3 %v2526_v3  ;;  %v2442_v25 = vor.u32 %v2731_v62, %v2441_v60  ;;  %v2449_v26 = vld [vmem:[#allocation6 + $0x8] sm:$0xf]  ;;  %v2732_v1 = vld [vmem:[#allocation6 + $0x14] sm:$0xf0]  ;;  %v2730_v2 = vld [vmem:[#allocation6 + $0xc] sm:$0xf]  ;;  %v2446_v3 = vor.u32 %v2729_v63, %v2443_v0 }
 0x4b7   : > { %v2450_v4 = vor.u32 %v2732_v1, %v2449_v26  ;;  %v2451_v5 = vld [vmem:[#allocation6 + $0x18] sm:$0xf0]  ;;  %v2787_v26 = vld [vmem:[#allocation7 + $0xd0] sm:$0xff] }
 0x4b8   : > { %1801 = vmatpush.bf16.msra.mxu1 %v2566_v43  ;;  %v2738_v43 = vld [vmem:[#allocation6 + $0x4c] sm:$0xf]  ;;  %v2454_v56 = vor.u32 %v2730_v2, %v2451_v5  ;;  %v2788_v50 = vld [vmem:[#allocation7 + $0xd8] sm:$0xff] }
 0x4b9   : > { %v2772_v5 = vld [vmem:[#allocation7 + $0x58] sm:$0xff] }
 0x4ba   : > { %1778 = vmatpush.bf16.msra.mxu3 %v2510_v12 }
 0x4bc   : > { %1433 = vrot.lane.b32.xlu1 %v1425_v39, %s3053_s14  ;;  %1802 = vmatpush.bf16.msra.mxu1 %v2550_v61  ;;  %v2748_v39 = vld [vmem:[#allocation6 + $0x94] sm:$0xf0]  ;;  %v2470_v61 = vor.u32 %v2734_v58, %v2467_v59  ;;  %v2765_v58 = vld [vmem:[#allocation7 + $0x20] sm:$0xff] }
 0x4bd   : > { %v2514_v14 = vor.u32 %v2748_v39, %v2513_v11  ;;  %v2773_v59 = vld [vmem:[#allocation7 + $0x60] sm:$0xff] }
 0x4bf   : > { %1791 = vmatpush.bf16.msrb.mxu0 %v2514_v14  ;;  %v2858_v14 = vld [vmem:[%s3474_s7] ss:$0 sm:$0xff] }
 0x4c0   : > { %1803 = vmatpush.bf16.msra.mxu1 %v2534_v6 }
 0x524   : > { %v1438_v20 = vpop.permute.xlu0 %1437 }
 0x526   : > { %v1430_v15 = vpop.permute.xlu1 %1429 }
 0x527   : > { %v1440_v17 = vsel %vm1114_vm5, %v1421_v9, %v1430_v15  ;;  %v2506_v9 = vor.u32 %v2747_v8, %v2505_v7  ;;  %v2515_v15 = vld [vmem:[#allocation6 + $0x98] sm:$0xf0] }
 0x529   : > { %1765 = vmatpush.bf16.msrb.mxu2 %v2506_v9 }
 0x52e   : > { %v1434_v18 = vpop.permute.xlu1 %1433 }
 0x52f   : > { %v1442_v38 = vsel %vm1441_vm8, %v1440_v17, %v1434_v18  ;;  %v2518_v17 = vor.u32 %v2746_v13, %v2515_v15  ;;  %v2489_v18 = vld [vmem:[#allocation6 + $0x60] sm:$0xf] }
 0x530   : > { %v1444_v21 = vsel %vm1443_vm9, %v1442_v38, %v1438_v20  ;;  %v2743_v20 = vld [vmem:[#allocation6 + $0x6c] sm:$0xf0]  ;;  %v2741_v38 = vld [vmem:[#allocation6 + $0x64] sm:$0xf] }
 0x531   : > { %v1445_v45 = vpack.c.bf16 %v1444_v21, %v1444_v21  ;;  %1804 = vmatpush.bf16.msra.mxu1 %v2518_v17  ;;  %v2490_v21 = vor.u32 %v2743_v20, %v2489_v18 }
 0x533   : > { %1518 = vmatmul.bf16.vlgmr.msrb.gmra.mxu1 %v1445_v45  ;;  %v2491_v45 = vld [vmem:[#allocation6 + $0x70] sm:$0xf0]  ;;  %1766 = vmatpush.bf16.msrb.mxu2 %v2490_v21  ;;  %v2792_v21 = vld [vmem:[#allocation7 + $0xf8] sm:$0xff] }
 0x537   : > { %1767 = vmatpush.bf16.msrb.mxu2 %v2474_v36 }
 0x5b0   : > { %v1519_v23 = vpop.f32.mrf.mxu1 }
 0x5b1   : > { %v1523_v27 = vadd.f32 %v2899_v24, %v1519_v23  ;;  %v2744_v23 = vld [vmem:[#allocation6 + $0x74] sm:$0xf0]  ;;  %v2494_v24 = vor.u32 %v2741_v38, %v2491_v45  ;;  %v2783_v45 = vld [vmem:[#allocation7 + $0xb0] sm:$0xff] }
 0x5b2   : > { %v2784_v38 = vld [vmem:[#allocation7 + $0xb8] sm:$0xff] }
 0x5b3   : > { %v3411_v28 = vadd.f32 %v2857_v22, %v1523_v27  ;;  %v2497_v22 = vld [vmem:[#allocation6 + $0x68] sm:$0xf]  ;;  %1779 = vmatpush.bf16.msra.mxu3 %v2494_v24  ;;  %v2776_v24 = vld [vmem:[#allocation7 + $0x78] sm:$0xff] }
 0x5b4   : > { %v2498_v27 = vor.u32 %v2744_v23, %v2497_v22  ;;  %v2791_v22 = vld [vmem:[#allocation7 + $0xf0] sm:$0xff]  ;;  %v2768_v23 = vld [vmem:[#allocation7 + $0x38] sm:$0xff] }
 0x5b5   : > { %1531 = vadd.xlane.f32.xlu1 %v3411_v28 }
 0x5b6   : > { %1792 = vmatpush.bf16.msrb.mxu0 %v2498_v27  ;;  %v2782_v27 = vld [vmem:[#allocation7 + $0xa8] sm:$0xff] }
 0x5b7   : > { %1780 = vmatpush.bf16.msra.mxu3 %v2478_v41 }
 0x5b8   : > { %v1521_v29 = vpop.f32.mrf.mxu1 }
 0x5b9   : > { %v2742_v29 = vld [vmem:[#allocation6 + $0x6c] sm:$0xf] }
 0x5ba   : > { %v2502_v31 = vor.u32 %v2742_v29, %v2499_v30  ;;  %1793 = vmatpush.bf16.msrb.mxu0 %v2482_v42  ;;  %v2790_v29 = vld [vmem:[#allocation7 + $0xe8] sm:$0xff] }
 0x5bb   : > { %1781 = vmatpush.bf16.msra.mxu3 %v2462_v55 }
 0x5bc   : > { %1805 = vmatpush.bf16.msra.mxu1 %v2502_v31 }
 0x5be   : > { %1794 = vmatpush.bf16.msrb.mxu0 %v2466_v57 }
 0x5bf   : > { %1782 = vmatpush.bf16.msra.mxu3 %v2446_v3 }
 0x5c2   : > { %1795 = vmatpush.bf16.msrb.mxu0 %v2450_v4  ;;  %v2764_v4 = vld [vmem:[#allocation7 + $0x18] sm:$0xff] }
 0x5c3   : > { %2153 = vmatpush.bf16.msrb.mxu3 %v2776_v24  ;;  %v2761_v24 = vld [vmem:[#allocation7] sm:$0xff] }
 0x5c6   : > { %2166 = vmatpush.bf16.msra.mxu0 %v2784_v38 }
 0x5c7   : > { %2154 = vmatpush.bf16.msrb.mxu3 %v2775_v34 }
 0x5ca   : > { %2167 = vmatpush.bf16.msra.mxu0 %v2783_v45  ;;  %v2762_v45 = vld [vmem:[#allocation7 + $0x8] sm:$0xff] }
 0x5ce   : > { %2168 = vmatpush.bf16.msra.mxu0 %v2782_v27  ;;  %v2769_v27 = vld [vmem:[#allocation7 + $0x40] sm:$0xff] }
 0x5d2   : > { %2169 = vmatpush.bf16.msra.mxu0 %v2781_v37 }
 0x628   : > { %v1532_v44 = vpop.xlane.xlu1 %1531 }
 0x629   : > { %v1533_v46 = vmul.f32 %v1532_v44, %v3197_v16  ;;  %v2483_v44 = vld [vmem:[#allocation6 + $0x58] sm:$0xf0] }
 0x62b   : > { %v3416_v47 = vsub.f32 %v3411_v28, %v1533_v46  ;;  %v2486_v46 = vor.u32 %v2738_v43, %v2483_v44  ;;  %v2766_v44 = vld [vmem:[#allocation7 + $0x28] sm:$0xff] }
 0x62d   : > { %v1535_v48 = vmul.f32 %v3416_v47, %v3416_v47  ;;  %1806 = vmatpush.bf16.msra.mxu1 %v2486_v46  ;;  %v2774_v46 = vld [vmem:[#allocation7 + $0x68] sm:$0xff] }
 0x62e   : > { %2155 = vmatpush.bf16.msrb.mxu3 %v2774_v46 }
 0x62f   : > { %1536 = vadd.xlane.f32.xlu2 %v1535_v48  ;;  %v2457_v48 = vld [vmem:[#allocation6 + $0x20] sm:$0xf] }
 0x630   : > { %v2458_v51 = vor.u32 %v2735_v49, %v2457_v48  ;;  %v2780_v49 = vld [vmem:[#allocation7 + $0x98] sm:$0xff] }
 0x631   : > { %1807 = vmatpush.bf16.msra.mxu1 %v2470_v61  ;;  %2170 = vmatpush.bf16.msra.mxu0 %v2780_v49 }
 0x632   : > { %1768 = vmatpush.bf16.msrb.mxu2 %v2458_v51  ;;  %2156 = vmatpush.bf16.msrb.mxu3 %v2773_v59 }
 0x635   : > { %1808 = vmatpush.bf16.msra.mxu1 %v2454_v56 }
 0x636   : > { %1769 = vmatpush.bf16.msrb.mxu2 %v2442_v25  ;;  %v2779_v25 = vld [vmem:[#allocation7 + $0x90] sm:$0xff]  ;;  %2157 = vmatpush.bf16.msrb.mxu3 %v2772_v5 }
 0x637   : > { %2171 = vmatpush.bf16.msra.mxu0 %v2779_v25 }
 0x639   : > { %2179 = vmatpush.bf16.msrb.mxu1 %v2792_v21 }
 0x63a   : > { %2140 = vmatpush.bf16.msra.mxu2 %v2768_v23 }
 0x63d   : > { %2180 = vmatpush.bf16.msrb.mxu1 %v2791_v22  ;;  %v2770_v22 = vld [vmem:[#allocation7 + $0x48] sm:$0xff] }
 0x63e   : > { %2141 = vmatpush.bf16.msra.mxu2 %v2767_v33 }
 0x641   : > { %2181 = vmatpush.bf16.msrb.mxu1 %v2790_v29 }
 0x642   : > { %2142 = vmatpush.bf16.msra.mxu2 %v2766_v44 }
 0x645   : > { %2182 = vmatpush.bf16.msrb.mxu1 %v2789_v40 }
 0x646   : > { %2143 = vmatpush.bf16.msra.mxu2 %v2765_v58 }
 0x649   : > { %2183 = vmatpush.bf16.msrb.mxu1 %v2788_v50 }
 0x64a   : > { %2144 = vmatpush.bf16.msra.mxu2 %v2764_v4 }
 0x64d   : > { %2184 = vmatpush.bf16.msrb.mxu1 %v2787_v26 }
 0x6a2   : > { %v1537_v6 = vpop.xlane.xlu2 %1536 }
 0x6a3   : > { %v1538_v7 = vmul.f32 %v1537_v6, %v3197_v16  ;;  %v2859_v16 = vld [vmem:[%s3475_s8] ss:$0 sm:$0xff] }
 0x6a5   : > { %v1539_v8 = vadd.f32 1e-05, %v1538_v7 }
 0x6a7   : > { %2881 = vrsqrt.f32 %v1539_v8  ;;  %vm1546_vm11 = vweird.f32 %v1539_v8 }
 0x6ad   : > { %v2882_v32 = vpop.eup %2881 }
 0x6ae   : > { %v1541_v9 = vmul.f32 %v2882_v32, %v1539_v8  ;;  %vm1547_vm10 = vweird.f32 %v2882_v32  ;;  %v2778_v8 = vld [vmem:[#allocation7 + $0x88] sm:$0xff] }
 0x6af   : > { %vm1548_vm12 = vmor %vm1546_vm11, %vm1547_vm10  ;;  %2172 = vmatpush.bf16.msra.mxu0 %v2778_v8 }
 0x6b0   : > { %v1542_v10 = vmul.f32 %v2882_v32, %v1541_v9 }
 0x6b2   : > { %v1543_v11 = vmul.f32 0.5, %v1542_v10 }
 0x6b4   : > { %v1544_v39 = vsub.f32 1.5, %v1543_v11 }
 0x6b6   : > { %v1545_v12 = vmul.f32 %v2882_v32, %v1544_v39 }
 0x6b8   : > { %v1549_v13 = vsel %vm1548_vm12, %v2882_v32, %v1545_v12  ;;  %v2786_v32 = vld [vmem:[#allocation7 + $0xc8] sm:$0xff] }
 0x6b9   : > { %v1550_v15 = vmul.f32 %v1549_v13, %v3416_v47  ;;  %v1592_v47 = vld [vmem:[%s3477_s10] sm:$0xf]  ;;  %2185 = vmatpush.bf16.msrb.mxu1 %v2786_v32  ;;  %v2771_v13 = vld [vmem:[#allocation7 + $0x50] sm:$0xff] }
 0x6ba   : > { %v1596_v30 = vperm.slane %v1592_v47, 2  ;;  %v1597_v31 = vperm.slane %v1592_v47, 3  ;;  %v1594_v42 = vperm.slane %v1592_v47, 0  ;;  %v1595_v43 = vperm.slane %v1592_v47, 1  ;;  %2158 = vmatpush.bf16.msrb.mxu3 %v2771_v13 }
 0x6bb   : > { %v1554_v17 = vmul.f32 %v2858_v14, %v1550_v15  ;;  %v2763_v14 = vld [vmem:[#allocation7 + $0x10] sm:$0xff] }
 0x6bc   : > { %2145 = vmatpush.bf16.msra.mxu2 %v2763_v14 }
 0x6bd   : > { %v1558_v18 = vadd.f32 %v2859_v16, %v1554_v17 }
 0x6be   : > { %2159 = vmatpush.bf16.msrb.mxu3 %v2770_v22 }
 0x6bf   : > { %v1559_v20 = vpack.c.bf16 %v1558_v18, %v1558_v18  ;;  %v2777_v18 = vld [vmem:[#allocation7 + $0x80] sm:$0xff] }
 0x6c0   : > { %2173 = vmatpush.bf16.msra.mxu0 %v2777_v18  ;;  %2146 = vmatpush.bf16.msra.mxu2 %v2762_v45 }
 0x6c1   : > { %1770 = vmatmul.bf16.vlgmr.msrb.gmra.mxu2 %v1559_v20  ;;  %1783 = vmatmul.bf16.vlgmr.msra.gmra.mxu3 %v1559_v20 }
 0x6c2   : > { %1796 = vmatmul.bf16.vlgmr.msrb.gmra.mxu0 %v1559_v20  ;;  %1809 = vmatmul.bf16.vlgmr.msra.gmra.mxu1 %v1559_v20  ;;  %v2785_v20 = vld [vmem:[#allocation7 + $0xc0] sm:$0xff] }
 0x6c3   : > { %2186 = vmatpush.bf16.msrb.mxu1 %v2785_v20  ;;  %2160 = vmatpush.bf16.msrb.mxu3 %v2769_v27 }
 0x6c4   : > { %2147 = vmatpush.bf16.msra.mxu2 %v2761_v24 }
 0x73f   : > { %v1797_v35 = vpop.f32.mrf.mxu0  ;;  %v1810_v36 = vpop.f32.mrf.mxu1 }
 0x740   : > { %v1798_v19 = vadd.f32 %v1797_v35, %v1596_v30  ;;  %v1811_v41 = vadd.f32 %v1810_v36, %v1597_v31 }
 0x742   : > { %v3431_v48 = vpack.c.bf16 %v1811_v41, %v1798_v19 }
 0x744   : > { %v1818_v51 = vunpack.c.l.bf16 %v3431_v48  ;;  %v1819_v52 = vunpack.c.h.bf16 %v3431_v48  ;;  %v1771_v53 = vpop.f32.mrf.mxu2  ;;  %v1784_v54 = vpop.f32.mrf.mxu3 }
 0x745   : > { %v1772_v55 = vadd.f32 %v1771_v53, %v1594_v42  ;;  %v1785_v57 = vadd.f32 %v1784_v54, %v1595_v43  ;;  %v3056_v54 = vmov 1065369472  }
 0x746   : > { %v1822_v60 = vmul.f32 1.703125, %v1818_v51  ;;  %v1823_v61 = vmul.f32 1.703125, %v1819_v52  ;;  %v1853_v59 = vunpack.c.l.bf16 %v3056_v54 }
 0x747   : > { %v3439_v62 = vpack.c.bf16 %v1785_v57, %v1772_v55  ;;  %v1799_v63 = vpop.f32.mrf.mxu0  ;;  %v1812_v0 = vpop.f32.mrf.mxu1  ;;  %v1852_v55 = vunpack.c.h.bf16 %v3056_v54 }
 0x748   : > { %v1825_v1 = vpack.c.bf16 %v1823_v61, %v1822_v60 }
 0x749   : > { %v1816_v2 = vunpack.c.l.bf16 %v3439_v62  ;;  %v1817_v3 = vunpack.c.h.bf16 %v3439_v62 }
 0x74a   : > { %v1827_v56 = vxor.u32 2147516416, %v1825_v1 }
 0x74b   : > { %v1820_v6 = vmul.f32 1.703125, %v1816_v2  ;;  %v1821_v7 = vmul.f32 1.703125, %v1817_v3 }
 0x74c   : > { %v1830_v9 = vunpack.c.l.bf16 %v1827_v56  ;;  %v1831_v10 = vunpack.c.h.bf16 %v1827_v56  ;;  %v1773_v11 = vpop.f32.mrf.mxu2  ;;  %v1786_v39 = vpop.f32.mrf.mxu3 }
 0x74d   : > { %v1824_v12 = vpack.c.bf16 %v1821_v7, %v1820_v6 }
 0x74e   : > { %v1836_v15 = vmul.f32 1.442695, %v1830_v9  ;;  %v1838_v16 = vmul.f32 1.442695, %v1831_v10 }
 0x74f   : > { %v1826_v17 = vxor.u32 2147516416, %v1824_v12 }
 0x750   : > { %2883 = vpow2.f32 %v1836_v15 }
 0x751   : > { %2885 = vpow2.f32 %v1838_v16  ;;  %v1828_v38 = vunpack.c.l.bf16 %v1826_v17  ;;  %v1829_v21 = vunpack.c.h.bf16 %v1826_v17  ;;  %v2860_v17 = vld [vmem:[%s3479_s12] ss:$0 sm:$0xff] }
 0x753   : > { %v1832_v47 = vmul.f32 1.442695, %v1828_v38  ;;  %v1834_v23 = vmul.f32 1.442695, %v1829_v21 }
 0x755   : > { %2887 = vpow2.f32 %v1832_v47 }
 0x756   : > { %v2884_v29 = vpop.eup %2883  ;;  %2889 = vpow2.f32 %v1834_v23 }
 0x757   : > { %v2886_v30 = vpop.eup %2885 }
 0x758   : > { %v1841_v31 = vpack.c.bf16 %v2886_v30, %v2884_v29 }
 0x75a   : > { %v1844_v33 = vunpack.c.l.bf16 %v1841_v31  ;;  %v1845_v34 = vunpack.c.h.bf16 %v1841_v31 }
 0x75b   : > { %v2888_v35 = vpop.eup %2887 }
 0x75c   : > { %v2890_v36 = vpop.eup %2889  ;;  %v1848_v37 = vadd.f32 1.0, %v1844_v33  ;;  %v1849_v40 = vadd.f32 1.0, %v1845_v34 }
 0x75d   : > { %v1840_v19 = vpack.c.bf16 %v2890_v36, %v2888_v35 }
 0x75e   : > { %v1851_v41 = vpack.c.bf16 %v1849_v40, %v1848_v37 }
 0x75f   : > { %v1842_v42 = vunpack.c.l.bf16 %v1840_v19  ;;  %v1843_v43 = vunpack.c.h.bf16 %v1840_v19 }
 0x760   : > { %v1861_v44 = vunpack.c.h.bf16 %v1851_v41  ;;  %v1862_v46 = vunpack.c.l.bf16 %v1851_v41 }
 0x761   : > { %v1846_v49 = vadd.f32 1.0, %v1842_v42  ;;  %v1847_v50 = vadd.f32 1.0, %v1843_v43 }
 0x762   : > { %2891 = vrcp.f32 %v1861_v44 }
 0x763   : > { %2893 = vrcp.f32 %v1862_v46  ;;  %v1850_v53 = vpack.c.bf16 %v1847_v50, %v1846_v49 }
 0x765   : > { %v1854_v57 = vunpack.c.h.bf16 %v1850_v53  ;;  %v1855_v58 = vunpack.c.l.bf16 %v1850_v53 }
 0x767   : > { %2895 = vrcp.f32 %v1854_v57 }
 0x768   : > { %v2892_v60 = vpop.eup %2891  ;;  %2897 = vrcp.f32 %v1855_v58 }
 0x769   : > { %v2894_v61 = vpop.eup %2893  ;;  %v1864_v63 = vmul.f32 %v2892_v60, %v1852_v55 }
 0x76a   : > { %v1866_v0 = vmul.f32 %v2894_v61, %v1853_v59 }
 0x76c   : > { %v1867_v25 = vpack.c.bf16 %v1864_v63, %v1866_v0 }
 0x76d   : > { %v2896_v26 = vpop.eup %2895 }
 0x76e   : > { %v2898_v1 = vpop.eup %2897  ;;  %v1870_v4 = vunpack.c.l.bf16 %v1867_v25  ;;  %v1871_v5 = vunpack.c.h.bf16 %v1867_v25  ;;  %v1857_v56 = vmul.f32 %v2896_v26, %v1852_v55 }
 0x76f   : > { %v1859_v6 = vmul.f32 %v2898_v1, %v1853_v59 }
 0x770   : > { %v1874_v7 = vmul.f32 %v1870_v4, %v1818_v51  ;;  %v1875_v8 = vmul.f32 %v1871_v5, %v1819_v52 }
 0x771   : > { %v1860_v32 = vpack.c.bf16 %v1857_v56, %v1859_v6 }
 0x772   : > { %v1878_v9 = vpack.c.bf16 %v1874_v7, %v1874_v7  ;;  %v1879_v10 = vpack.c.bf16 %v1875_v8, %v1875_v8 }
 0x773   : > { %v1868_v11 = vunpack.c.l.bf16 %v1860_v32  ;;  %v1869_v39 = vunpack.c.h.bf16 %v1860_v32 }
 0x774   : > { %2174 = vmatmul.bf16.vlgmr.msra.gmra.mxu0 %v1878_v9  ;;  %2187 = vmatmul.bf16.vlgmr.msrb.gmra.mxu1 %v1879_v10 }
 0x775   : > { %v1872_v12 = vmul.f32 %v1868_v11, %v1816_v2  ;;  %v1873_v14 = vmul.f32 %v1869_v39, %v1817_v3 }
 0x777   : > { %v1876_v13 = vpack.c.bf16 %v1872_v12, %v1872_v12  ;;  %v1877_v15 = vpack.c.bf16 %v1873_v14, %v1873_v14 }
 0x779   : > { %2148 = vmatmul.bf16.vlgmr.msra.gmra.mxu2 %v1876_v13  ;;  %2161 = vmatmul.bf16.vlgmr.msrb.gmra.mxu3 %v1877_v15 }
 0x7f1   : > { %v2175_v48 = vpop.f32.mrf.mxu0  ;;  %v2188_v51 = vpop.f32.mrf.mxu1 }
 0x7f9   : > { %v2177_v52 = vpop.f32.mrf.mxu0  ;;  %v2190_v16 = vpop.f32.mrf.mxu1 }
 0x7fc   : > { %v2149_v18 = vpop.f32.mrf.mxu2  ;;  %v2162_v20 = vpop.f32.mrf.mxu3 }
 0x7fd   : > { %v2150_v38 = vadd.f32 %v2860_v17, %v2149_v18 }
 0x7ff   : > { %v2163_v2 = vadd.f32 %v2162_v20, %v2150_v38 }
 0x801   : > { %v2176_v21 = vadd.f32 %v2175_v48, %v2163_v2 }
 0x803   : > { %v2189_v62 = vadd.f32 %v2188_v51, %v2176_v21 }
 0x804   : > { %v2151_v3 = vpop.f32.mrf.mxu2  ;;  %v2164_v45 = vpop.f32.mrf.mxu3 }
 0x805   : > { %v2192_v22 = vadd.f32 %v2189_v62, %v3411_v28 }
 0x807   : > { %2193 = vst [vmem:[%s502_s22] sm:$0xff] %v2192_v22 }
 0x808 PF: > { %s3491_s23 = sld [smem:[#allocation12_spill]] }
 0x80e   : > { %s26_s25 = sadd.s32 1, %s3491_s23  }
 0x80f   : > { %p23_p7 = scmp.ge.s32.totalorder %s26_s25, 4  }
 0x811   :  { %25 = sbr.rel (!%p23_p7) target bundleno = 7 (0x7), region = 119 }
 0x816   :  { %2213 = vsyncpa [#allocation3], 1 }
 0x817   :  { %2215 = vsyncpa [#allocation3 + $0x1], 1 }
 0x818   :  { %2216 = vsyncpa [#allocation5], 1 }
 0x819   :  { %2217 = vsyncpa [#allocation8], 1 }

</bundles_post_ra>
